<compile_context>
chip_gen: v6e
topology: v6e:2x2x1
jax: 0.10.0
libtpu: 0.0.40
codegen_flags: <defaults>
</compile_context>

<pallas_src>
import functools
import math

import jax
import jax.numpy as jnp
from jax.experimental import pallas as pl
from jax.experimental.pallas import tpu as pltpu

# ----------------------------- configuration --------------------------------
IMG_SIZE = 16
PATCH_SIZE = 4
IN_CHANNELS = 3
EMBED_DIM = 32          # d_model
NUM_LAYERS = 2
NUM_HEADS = 4
MLP_RATIO = 4
BATCH = 2
LN_EPS = 1e-6
# out_indices = -1 resolved -> final norm applied after the last block only.
OUT_INDICES = (NUM_LAYERS - 1,)

HP = IMG_SIZE // PATCH_SIZE       # patches along H
WP = IMG_SIZE // PATCH_SIZE       # patches along W
NUM_PATCHES = HP * WP
SEQ = NUM_PATCHES + 1             # + cls token
SEQ_PAD = ((SEQ + 7) // 8) * 8    # pad token rows to a multiple of 8 sublanes
HEAD_DIM = EMBED_DIM // NUM_HEADS
MLP_HIDDEN = EMBED_DIM * MLP_RATIO
PATCH_DIM = IN_CHANNELS * PATCH_SIZE * PATCH_SIZE


# ------------------------------ kernel helpers -------------------------------
def _layernorm(x, w, b, eps):
    mu = jnp.mean(x, axis=-1, keepdims=True)
    xc = x - mu
    var = jnp.mean(xc * xc, axis=-1, keepdims=True)
    return xc * jax.lax.rsqrt(var + eps) * w + b


def _gelu(x):
    # TODO(synk): PyTorch nn.GELU default is exact erf-GELU; tanh approximation
    # used here since erf lowering on Mosaic is not guaranteed on all targets.
    c = math.sqrt(2.0 / math.pi)
    return 0.5 * x * (1.0 + jnp.tanh(c * (x + 0.044715 * x * x * x)))


def _mm(a, b):
    """MXU matmul with f32 accumulation; operands cast to bf16 only if needed
    (weights are pre-cast bf16 in the wrapper)."""
    if a.dtype != jnp.bfloat16:
        a = a.astype(jnp.bfloat16)
    if b.dtype != jnp.bfloat16:
        b = b.astype(jnp.bfloat16)
    return jnp.dot(a, b, preferred_element_type=jnp.float32)


def _mm_t(a, b):
    """a @ b^T (contract last dims), bf16 operands, f32 accumulation."""
    if a.dtype != jnp.bfloat16:
        a = a.astype(jnp.bfloat16)
    if b.dtype != jnp.bfloat16:
        b = b.astype(jnp.bfloat16)
    return jax.lax.dot_general(a, b, (((1,), (1,)), ((), ())),
                               preferred_element_type=jnp.float32)


# ------------------------------ fused ViT kernel ------------------------------
def vit_fused_kernel(
    patches_ref, patch_w_ref, pbpos_ref, clspad_ref, hmask_ref, bias_ref,
    ln1w_ref, ln1b_ref, wq_ref, bq_ref, wk_ref, bk_ref, wv_ref, bv_ref,
    projw_ref, projb_ref, ln2w_ref, ln2b_ref,
    fc1w_ref, fc1b_ref, fc2w_ref, fc2b_ref, normw_ref, normb_ref,
    o_ref,
    *, num_layers, num_heads, eps, n_pad,
):
    G, P, PD = patches_ref.shape          # G batch elements folded into rows
    D = pbpos_ref.shape[-1]

    # --- patch embedding (one MXU pass over all folded batch elements) -------
    patches = patches_ref[...].reshape(G * P, PD)
    tok = _mm(patches, patch_w_ref[...]) + pbpos_ref[...]        # (G*P, D) f32
    # pbpos already contains conv bias + sincos positional encoding.

    # --- 8-aligned token rows per group: [patch tokens | cls | zero pad] -----
    pieces = []
    for g in range(G):
        pieces.append(tok[g * P:(g + 1) * P, :])
        pieces.append(clspad_ref[...])                           # (n_pad-P, D)
    x = jnp.concatenate(pieces, axis=0)                          # (G*n_pad, D)

    bias = bias_ref[...]            # additive mask: 0 valid / -1e30 masked

    for l in range(num_layers):
        # --- attention branch -------------------------------------------------
        xn = _layernorm(x, ln1w_ref[l], ln1b_ref[l], eps)        # (N, D)
        q = _mm(xn, wq_ref[l]) + bq_ref[l]                       # scale folded
        k = _mm(xn, wk_ref[l]) + bk_ref[l]
        v = _mm(xn, wv_ref[l]) + bv_ref[l]

        ctx = jnp.zeros(x.shape, jnp.float32)                    # (N, D)
        for h in range(num_heads):
            m = hmask_ref[h]                                     # (1, D) 0/1
            s = _mm_t(q * m, k) + bias                           # (N, N)
            s = s - jnp.max(s, axis=-1, keepdims=True)
            p = jnp.exp(s)
            p = p * pl.reciprocal(jnp.sum(p, axis=-1, keepdims=True),
                                  approx=True)
            # masked v keeps only head-h lanes -> ctx accumulates the
            # head-concat directly, no lane shuffles.
            ctx = ctx + _mm(p, v * m)
        # single full-width output projection.
        x = x + _mm(ctx, projw_ref[l]) + projb_ref[l]

        # --- MLP branch --------------------------------------------------------
        xn2 = _layernorm(x, ln2w_ref[l], ln2b_ref[l], eps)
        h1 = _gelu(_mm(xn2, fc1w_ref[l]) + fc1b_ref[l])
        x = x + _mm(h1, fc2w_ref[l]) + fc2b_ref[l]

    # --- final LayerNorm; per group: keep patch rows, drop cls + padding -----
    xf = _layernorm(x, normw_ref[...], normb_ref[...], eps)
    for g in range(G):
        o_ref[g] = xf[g * n_pad:g * n_pad + P, :]                # aligned store


# ------------------------------ pallas wrapper --------------------------------
def _rep_spec(shape):
    nd = len(shape)
    return pl.BlockSpec(shape, lambda b, _nd=nd: (0,) * _nd)


def sincos_pos_embed_2d(hp, wp, d):
    """2D sin-cos positional encoding, (hp*wp, d).
    TODO(synk): stand-in for SinCosPositionEncoding (source not provided)."""
    assert d % 4 == 0
    quarter = d // 4
    omega = 1.0 / (10000.0 ** (jnp.arange(quarter, dtype=jnp.float32) / quarter))
    yy, xx = jnp.meshgrid(
        jnp.arange(hp, dtype=jnp.float32),
        jnp.arange(wp, dtype=jnp.float32),
        indexing="ij",
    )
    oy = yy[..., None] * omega
    ox = xx[..., None] * omega
    pe = jnp.concatenate(
        [jnp.sin(oy), jnp.cos(oy), jnp.sin(ox), jnp.cos(ox)], axis=-1)
    return pe.reshape(hp * wp, d)


def vit_forward(params, x, shifts=None):
    """x: (B, C, H, W) NCHW float32 — returns list of NCHW feature maps."""
    B, C, H, W = x.shape
    hp, wp = H // PATCH_SIZE, W // PATCH_SIZE
    P = hp * wp
    seq = P + 1
    n_pad = ((seq + 7) // 8) * 8

    # Batch strategy per chip: v7x has two TensorCores -> keep a "parallel"
    # batch grid; single-TC v5e/v6e -> fold the whole batch into the row
    # (sublane) dimension and run one grid step.
    kind = jax.devices()[0].device_kind.lower()
    two_tc = ("v7" in kind) or ("7x" in kind)
    steps = 2 if (two_tc and B >= 2 and B % 2 == 0) else 1
    G = B // steps                      # batch elements folded per grid step
    N = G * n_pad

    # unfold into patch rows (plain-JAX glue, fused by XLA with the call).
    patches = x.reshape(B, C, hp, PATCH_SIZE, wp, PATCH_SIZE)
    patches = patches.transpose(0, 2, 4, 1, 3, 5).reshape(B, P, PATCH_DIM)

    pos = sincos_pos_embed_2d(hp, wp, EMBED_DIM)                 # (P, D)
    pb_pos = jnp.tile(pos, (G, 1)) + params["patch_b"]           # (G*P, D)

    # cls token padded to a full 8-sublane block: [cls, zeros...]
    cls_pad = jnp.concatenate(
        [params["cls_token"],
         jnp.zeros((n_pad - P - 1, EMBED_DIM), jnp.float32)], axis=0)

    # per-head 0/1 lane masks (H, 1, D)
    lane = jnp.arange(EMBED_DIM)
    hmask = ((lane[None, :] // HEAD_DIM) ==
             jnp.arange(NUM_HEADS)[:, None]).astype(jnp.float32)[:, None, :]

    # additive attention bias: block-diagonal over folded batch groups and
    # masking the zero-padded key rows (0 where valid, -1e30 where masked).
    idx = jnp.arange(N)
    same_grp = (idx[:, None] // n_pad) == (idx[None, :] // n_pad)
    col_ok = (idx % n_pad) < seq
    attn_bias = jnp.where(same_grp & col_ok[None, :], 0.0, -1e30
                          ).astype(jnp.float32)                  # (N, N)

    kern = functools.partial(
        vit_fused_kernel, num_layers=NUM_LAYERS, num_heads=NUM_HEADS,
        eps=LN_EPS, n_pad=n_pad)

    args = (
        patches, params["patch_w"], pb_pos, cls_pad, hmask, attn_bias,
        params["ln1_w"], params["ln1_b"],
        params["wq"], params["bq"], params["wk"], params["bk"],
        params["wv"], params["bv"], params["proj_w"], params["proj_b"],
        params["ln2_w"], params["ln2_b"],
        params["fc1_w"], params["fc1_b"], params["fc2_w"], params["fc2_b"],
        params["norm_w"], params["norm_b"],
    )
    in_specs = [pl.BlockSpec((G, P, PATCH_DIM), lambda b: (b, 0, 0))] + [
        _rep_spec(a.shape) for a in args[1:]
    ]

    out = pl.pallas_call(
        kern,
        out_shape=jax.ShapeDtypeStruct((B, P, EMBED_DIM), jnp.float32),
        grid=(steps,),
        in_specs=in_specs,
        out_specs=pl.BlockSpec((G, P, EMBED_DIM), lambda b: (b, 0, 0)),
        compiler_params=pltpu.CompilerParams(
            dimension_semantics=("parallel",),     # batch -> both TCs on v7x
            vmem_limit_bytes=32 * 1024 * 1024,
        ),
    )(*args)

    # (B, P, D) -> NCHW feature map, like x[:, 1:].reshape(...).permute(0,3,1,2)
    out = out.reshape(B, hp, wp, EMBED_DIM).transpose(0, 3, 1, 2)
    return [out]                                   # one entry per OUT_INDICES


# ------------------------------ parameter init --------------------------------
def init_params(key):
    """PyTorch-style init, then kernel-ready transforms:
       matmul weights bf16, 1/sqrt(dh) scale folded into Wq/bq."""
    keys = jax.random.split(key, 2 + 4 * NUM_LAYERS)
    k_it = iter(keys)

    def tn(k, shape, std):
        return jax.random.truncated_normal(k, -2.0, 2.0, shape, jnp.float32) * std

    scale = HEAD_DIM ** -0.5
    params = {}
    # patch-embed conv (D, C, ps, ps) -> flattened matmul weight (K, D), bf16
    conv_w = tn(next(k_it), (EMBED_DIM, IN_CHANNELS, PATCH_SIZE, PATCH_SIZE), 0.02)
    params["patch_w"] = conv_w.reshape(EMBED_DIM, PATCH_DIM).T.astype(jnp.bfloat16)
    params["patch_b"] = jnp.zeros((1, EMBED_DIM), jnp.float32)
    params["cls_token"] = tn(next(k_it), (1, EMBED_DIM), 0.2)   # ref uses std=0.2
    params["norm_w"] = jnp.ones((1, EMBED_DIM), jnp.float32)
    params["norm_b"] = jnp.zeros((1, EMBED_DIM), jnp.float32)

    acc = {name: [] for name in (
        "ln1_w", "ln1_b", "wq", "bq", "wk", "bk", "wv", "bv",
        "proj_w", "proj_b", "ln2_w", "ln2_b", "fc1_w", "fc1_b", "fc2_w", "fc2_b")}
    for _ in range(NUM_LAYERS):
        qkv_w = tn(next(k_it), (EMBED_DIM, 3 * EMBED_DIM), 0.02)
        acc["ln1_w"].append(jnp.ones((1, EMBED_DIM), jnp.float32))
        acc["ln1_b"].append(jnp.zeros((1, EMBED_DIM), jnp.float32))
        acc["wq"].append((qkv_w[:, :EMBED_DIM] * scale).astype(jnp.bfloat16))
        acc["bq"].append(jnp.zeros((1, EMBED_DIM), jnp.float32))   # 0 * scale = 0
        acc["wk"].append(qkv_w[:, EMBED_DIM:2 * EMBED_DIM].astype(jnp.bfloat16))
        acc["bk"].append(jnp.zeros((1, EMBED_DIM), jnp.float32))
        acc["wv"].append(qkv_w[:, 2 * EMBED_DIM:].astype(jnp.bfloat16))
        acc["bv"].append(jnp.zeros((1, EMBED_DIM), jnp.float32))
        acc["proj_w"].append(
            tn(next(k_it), (EMBED_DIM, EMBED_DIM), 0.02).astype(jnp.bfloat16))
        acc["proj_b"].append(jnp.zeros((1, EMBED_DIM), jnp.float32))
        acc["ln2_w"].append(jnp.ones((1, EMBED_DIM), jnp.float32))
        acc["ln2_b"].append(jnp.zeros((1, EMBED_DIM), jnp.float32))
        acc["fc1_w"].append(
            tn(next(k_it), (EMBED_DIM, MLP_HIDDEN), 0.02).astype(jnp.bfloat16))
        acc["fc1_b"].append(jnp.zeros((1, MLP_HIDDEN), jnp.float32))
        acc["fc2_w"].append(
            tn(next(k_it), (MLP_HIDDEN, EMBED_DIM), 0.02).astype(jnp.bfloat16))
        acc["fc2_b"].append(jnp.zeros((1, EMBED_DIM), jnp.float32))

    for name, vals in acc.items():
        params[name] = jnp.stack(vals, axis=0)
    return params


# --------------------------------- main ---------------------------------------
if __name__ == "__main__":
    key = jax.random.PRNGKey(0)
    pkey, xkey = jax.random.split(key)
    params = init_params(pkey)
    x = jax.random.normal(xkey, (BATCH, IN_CHANNELS, IMG_SIZE, IMG_SIZE), jnp.float32)

    fwd = jax.jit(vit_forward)
    outs = fwd(params, x)
    outs = [jax.block_until_ready(o) for o in outs]

    assert len(outs) == len(OUT_INDICES)
    assert outs[0].shape == (BATCH, EMBED_DIM, HP, WP), outs[0].shape
    assert bool(jnp.all(jnp.isfinite(outs[0])))
    print("KERNEL_OK")
</pallas_src>

<mosaic_0001>
module attributes {stable_mosaic.version = 11 : i64} {
  func.func @vit_fused_kernel(%arg0: i32, %arg1: memref<2x16x48xf32, #tpu.memory_space<vmem>>, %arg2: memref<48x32xbf16, #tpu.memory_space<vmem>>, %arg3: memref<32x32xf32, #tpu.memory_space<vmem>>, %arg4: memref<8x32xf32, #tpu.memory_space<vmem>>, %arg5: memref<4x1x32xf32, #tpu.memory_space<vmem>>, %arg6: memref<48x48xf32, #tpu.memory_space<vmem>>, %arg7: memref<2x1x32xf32, #tpu.memory_space<vmem>>, %arg8: memref<2x1x32xf32, #tpu.memory_space<vmem>>, %arg9: memref<2x32x32xbf16, #tpu.memory_space<vmem>>, %arg10: memref<2x1x32xf32, #tpu.memory_space<vmem>>, %arg11: memref<2x32x32xbf16, #tpu.memory_space<vmem>>, %arg12: memref<2x1x32xf32, #tpu.memory_space<vmem>>, %arg13: memref<2x32x32xbf16, #tpu.memory_space<vmem>>, %arg14: memref<2x1x32xf32, #tpu.memory_space<vmem>>, %arg15: memref<2x32x32xbf16, #tpu.memory_space<vmem>>, %arg16: memref<2x1x32xf32, #tpu.memory_space<vmem>>, %arg17: memref<2x1x32xf32, #tpu.memory_space<vmem>>, %arg18: memref<2x1x32xf32, #tpu.memory_space<vmem>>, %arg19: memref<2x32x128xbf16, #tpu.memory_space<vmem>>, %arg20: memref<2x1x128xf32, #tpu.memory_space<vmem>>, %arg21: memref<2x128x32xbf16, #tpu.memory_space<vmem>>, %arg22: memref<2x1x32xf32, #tpu.memory_space<vmem>>, %arg23: memref<1x32xf32, #tpu.memory_space<vmem>>, %arg24: memref<1x32xf32, #tpu.memory_space<vmem>>, %arg25: memref<2x16x32xf32, #tpu.memory_space<vmem>>) attributes {dimension_semantics = [#tpu.dimension_semantics<parallel>], iteration_bounds = array<i64: 1>, scalar_prefetch = 0 : i64, scratch_operands = 0 : i64, tpu.core_type = #tpu.core_type<tc>, window_params = [{transform_indices = @transform_0, window_bounds = array<i64: 2, 16, 48>}, {pipeline_mode = #tpu.pipeline_mode<synchronous>, transform_indices = @transform_1, window_bounds = array<i64: 48, 32>}, {pipeline_mode = #tpu.pipeline_mode<synchronous>, transform_indices = @transform_2, window_bounds = array<i64: 32, 32>}, {pipeline_mode = #tpu.pipeline_mode<synchronous>, transform_indices = @transform_3, window_bounds = array<i64: 8, 32>}, {pipeline_mode = #tpu.pipeline_mode<synchronous>, transform_indices = @transform_4, window_bounds = array<i64: 4, 1, 32>}, {pipeline_mode = #tpu.pipeline_mode<synchronous>, transform_indices = @transform_5, window_bounds = array<i64: 48, 48>}, {pipeline_mode = #tpu.pipeline_mode<synchronous>, transform_indices = @transform_6, window_bounds = array<i64: 2, 1, 32>}, {pipeline_mode = #tpu.pipeline_mode<synchronous>, transform_indices = @transform_7, window_bounds = array<i64: 2, 1, 32>}, {pipeline_mode = #tpu.pipeline_mode<synchronous>, transform_indices = @transform_8, window_bounds = array<i64: 2, 32, 32>}, {pipeline_mode = #tpu.pipeline_mode<synchronous>, transform_indices = @transform_9, window_bounds = array<i64: 2, 1, 32>}, {pipeline_mode = #tpu.pipeline_mode<synchronous>, transform_indices = @transform_10, window_bounds = array<i64: 2, 32, 32>}, {pipeline_mode = #tpu.pipeline_mode<synchronous>, transform_indices = @transform_11, window_bounds = array<i64: 2, 1, 32>}, {pipeline_mode = #tpu.pipeline_mode<synchronous>, transform_indices = @transform_12, window_bounds = array<i64: 2, 32, 32>}, {pipeline_mode = #tpu.pipeline_mode<synchronous>, transform_indices = @transform_13, window_bounds = array<i64: 2, 1, 32>}, {pipeline_mode = #tpu.pipeline_mode<synchronous>, transform_indices = @transform_14, window_bounds = array<i64: 2, 32, 32>}, {pipeline_mode = #tpu.pipeline_mode<synchronous>, transform_indices = @transform_15, window_bounds = array<i64: 2, 1, 32>}, {pipeline_mode = #tpu.pipeline_mode<synchronous>, transform_indices = @transform_16, window_bounds = array<i64: 2, 1, 32>}, {pipeline_mode = #tpu.pipeline_mode<synchronous>, transform_indices = @transform_17, window_bounds = array<i64: 2, 1, 32>}, {pipeline_mode = #tpu.pipeline_mode<synchronous>, transform_indices = @transform_18, window_bounds = array<i64: 2, 32, 128>}, {pipeline_mode = #tpu.pipeline_mode<synchronous>, transform_indices = @transform_19, window_bounds = array<i64: 2, 1, 128>}, {pipeline_mode = #tpu.pipeline_mode<synchronous>, transform_indices = @transform_20, window_bounds = array<i64: 2, 128, 32>}, {pipeline_mode = #tpu.pipeline_mode<synchronous>, transform_indices = @transform_21, window_bounds = array<i64: 2, 1, 32>}, {pipeline_mode = #tpu.pipeline_mode<synchronous>, transform_indices = @transform_22, window_bounds = array<i64: 1, 32>}, {pipeline_mode = #tpu.pipeline_mode<synchronous>, transform_indices = @transform_23, window_bounds = array<i64: 1, 32>}, {transform_indices = @transform_24, window_bounds = array<i64: 2, 16, 32>}]} {
    %c0 = arith.constant 0 : index
    %c0_0 = arith.constant 0 : index
    %c0_1 = arith.constant 0 : index
    %0 = vector.load %arg1[%c0, %c0_0, %c0_1] : memref<2x16x48xf32, #tpu.memory_space<vmem>>, vector<2x16x48xf32>
    %1 = vector.shape_cast %0 : vector<2x16x48xf32> to vector<32x48xf32>
    %c0_2 = arith.constant 0 : index
    %c0_3 = arith.constant 0 : index
    %2 = vector.load %arg2[%c0_2, %c0_3] : memref<48x32xbf16, #tpu.memory_space<vmem>>, vector<48x32xbf16>
    %3 = arith.truncf %1 : vector<32x48xf32> to vector<32x48xbf16>
    %cst = arith.constant dense<0.000000e+00> : vector<32x32xf32>
    %4 = tpu.matmul %3, %2, %cst {dimension_numbers = #tpu.dot_dimension_numbers<[1], [0], [0], [1], [0, 0, 1, 1], [], []>} : vector<32x48xbf16>, vector<48x32xbf16>, vector<32x32xf32> -> vector<32x32xf32>
    %c0_4 = arith.constant 0 : index
    %c0_5 = arith.constant 0 : index
    %5 = vector.load %arg3[%c0_4, %c0_5] : memref<32x32xf32, #tpu.memory_space<vmem>>, vector<32x32xf32>
    %6 = arith.addf %4, %5 : vector<32x32xf32>
    %7 = vector.extract_strided_slice %6 {offsets = [0, 0], sizes = [16, 32], strides = [1, 1]} : vector<32x32xf32> to vector<16x32xf32>
    %c0_6 = arith.constant 0 : index
    %c0_7 = arith.constant 0 : index
    %8 = vector.load %arg4[%c0_6, %c0_7] : memref<8x32xf32, #tpu.memory_space<vmem>>, vector<8x32xf32>
    %9 = vector.extract_strided_slice %6 {offsets = [16, 0], sizes = [16, 32], strides = [1, 1]} : vector<32x32xf32> to vector<16x32xf32>
    %c0_8 = arith.constant 0 : index
    %c0_9 = arith.constant 0 : index
    %10 = vector.load %arg4[%c0_8, %c0_9] : memref<8x32xf32, #tpu.memory_space<vmem>>, vector<8x32xf32>
    %11 = tpu.concatenate %7, %8, %9, %10 in 0 : vector<16x32xf32>, vector<8x32xf32>, vector<16x32xf32>, vector<8x32xf32> -> vector<48x32xf32>
    %c0_10 = arith.constant 0 : index
    %c0_11 = arith.constant 0 : index
    %12 = vector.load %arg6[%c0_10, %c0_11] : memref<48x48xf32, #tpu.memory_space<vmem>>, vector<48x48xf32>
    %c0_12 = arith.constant 0 : index
    %c0_13 = arith.constant 0 : index
    %c0_14 = arith.constant 0 : index
    %13 = vector.load %arg7[%c0_12, %c0_13, %c0_14] : memref<2x1x32xf32, #tpu.memory_space<vmem>>, vector<1x1x32xf32>
    %14 = vector.shape_cast %13 : vector<1x1x32xf32> to vector<1x32xf32>
    %c0_15 = arith.constant 0 : index
    %c0_16 = arith.constant 0 : index
    %c0_17 = arith.constant 0 : index
    %15 = vector.load %arg8[%c0_15, %c0_16, %c0_17] : memref<2x1x32xf32, #tpu.memory_space<vmem>>, vector<1x1x32xf32>
    %16 = vector.shape_cast %15 : vector<1x1x32xf32> to vector<1x32xf32>
    %cst_18 = arith.constant dense<0.000000e+00> : vector<48xf32>
    %17 = vector.multi_reduction <add>, %11, %cst_18 [1] : vector<48x32xf32> to vector<48xf32>
    %18 = vector.shape_cast %17 : vector<48xf32> to vector<48x1xf32>
    %cst_19 = arith.constant 3.200000e+01 : f32
    %19 = vector.broadcast %cst_19 : f32 to vector<48x1xf32>
    %20 = arith.divf %18, %19 : vector<48x1xf32>
    %21 = vector.broadcast %20 : vector<48x1xf32> to vector<48x32xf32>
    %22 = arith.subf %11, %21 : vector<48x32xf32>
    %23 = arith.mulf %22, %22 : vector<48x32xf32>
    %cst_20 = arith.constant dense<0.000000e+00> : vector<48xf32>
    %24 = vector.multi_reduction <add>, %23, %cst_20 [1] : vector<48x32xf32> to vector<48xf32>
    %25 = vector.shape_cast %24 : vector<48xf32> to vector<48x1xf32>
    %cst_21 = arith.constant 3.200000e+01 : f32
    %26 = vector.broadcast %cst_21 : f32 to vector<48x1xf32>
    %27 = arith.divf %25, %26 : vector<48x1xf32>
    %cst_22 = arith.constant 9.99999997E-7 : f32
    %28 = vector.broadcast %cst_22 : f32 to vector<48x1xf32>
    %29 = arith.addf %27, %28 : vector<48x1xf32>
    %30 = math.rsqrt %29 : vector<48x1xf32>
    %31 = vector.broadcast %30 : vector<48x1xf32> to vector<48x32xf32>
    %32 = arith.mulf %22, %31 : vector<48x32xf32>
    %33 = vector.broadcast %14 : vector<1x32xf32> to vector<48x32xf32>
    %34 = arith.mulf %32, %33 : vector<48x32xf32>
    %35 = vector.broadcast %16 : vector<1x32xf32> to vector<48x32xf32>
    %36 = arith.addf %34, %35 : vector<48x32xf32>
    %c0_23 = arith.constant 0 : index
    %c0_24 = arith.constant 0 : index
    %c0_25 = arith.constant 0 : index
    %37 = vector.load %arg9[%c0_23, %c0_24, %c0_25] : memref<2x32x32xbf16, #tpu.memory_space<vmem>>, vector<1x32x32xbf16>
    %38 = vector.shape_cast %37 : vector<1x32x32xbf16> to vector<32x32xbf16>
    %39 = arith.truncf %36 : vector<48x32xf32> to vector<48x32xbf16>
    %cst_26 = arith.constant dense<0.000000e+00> : vector<48x32xf32>
    %40 = tpu.matmul %39, %38, %cst_26 {dimension_numbers = #tpu.dot_dimension_numbers<[1], [0], [0], [1], [0, 0, 1, 1], [], []>} : vector<48x32xbf16>, vector<32x32xbf16>, vector<48x32xf32> -> vector<48x32xf32>
    %c0_27 = arith.constant 0 : index
    %c0_28 = arith.constant 0 : index
    %c0_29 = arith.constant 0 : index
    %41 = vector.load %arg10[%c0_27, %c0_28, %c0_29] : memref<2x1x32xf32, #tpu.memory_space<vmem>>, vector<1x1x32xf32>
    %42 = vector.shape_cast %41 : vector<1x1x32xf32> to vector<1x32xf32>
    %43 = vector.broadcast %42 : vector<1x32xf32> to vector<48x32xf32>
    %44 = arith.addf %40, %43 : vector<48x32xf32>
    %c0_30 = arith.constant 0 : index
    %c0_31 = arith.constant 0 : index
    %c0_32 = arith.constant 0 : index
    %45 = vector.load %arg11[%c0_30, %c0_31, %c0_32] : memref<2x32x32xbf16, #tpu.memory_space<vmem>>, vector<1x32x32xbf16>
    %46 = vector.shape_cast %45 : vector<1x32x32xbf16> to vector<32x32xbf16>
    %47 = arith.truncf %36 : vector<48x32xf32> to vector<48x32xbf16>
    %cst_33 = arith.constant dense<0.000000e+00> : vector<48x32xf32>
    %48 = tpu.matmul %47, %46, %cst_33 {dimension_numbers = #tpu.dot_dimension_numbers<[1], [0], [0], [1], [0, 0, 1, 1], [], []>} : vector<48x32xbf16>, vector<32x32xbf16>, vector<48x32xf32> -> vector<48x32xf32>
    %c0_34 = arith.constant 0 : index
    %c0_35 = arith.constant 0 : index
    %c0_36 = arith.constant 0 : index
    %49 = vector.load %arg12[%c0_34, %c0_35, %c0_36] : memref<2x1x32xf32, #tpu.memory_space<vmem>>, vector<1x1x32xf32>
    %50 = vector.shape_cast %49 : vector<1x1x32xf32> to vector<1x32xf32>
    %51 = vector.broadcast %50 : vector<1x32xf32> to vector<48x32xf32>
    %52 = arith.addf %48, %51 : vector<48x32xf32>
    %c0_37 = arith.constant 0 : index
    %c0_38 = arith.constant 0 : index
    %c0_39 = arith.constant 0 : index
    %53 = vector.load %arg13[%c0_37, %c0_38, %c0_39] : memref<2x32x32xbf16, #tpu.memory_space<vmem>>, vector<1x32x32xbf16>
    %54 = vector.shape_cast %53 : vector<1x32x32xbf16> to vector<32x32xbf16>
    %55 = arith.truncf %36 : vector<48x32xf32> to vector<48x32xbf16>
    %cst_40 = arith.constant dense<0.000000e+00> : vector<48x32xf32>
    %56 = tpu.matmul %55, %54, %cst_40 {dimension_numbers = #tpu.dot_dimension_numbers<[1], [0], [0], [1], [0, 0, 1, 1], [], []>} : vector<48x32xbf16>, vector<32x32xbf16>, vector<48x32xf32> -> vector<48x32xf32>
    %c0_41 = arith.constant 0 : index
    %c0_42 = arith.constant 0 : index
    %c0_43 = arith.constant 0 : index
    %57 = vector.load %arg14[%c0_41, %c0_42, %c0_43] : memref<2x1x32xf32, #tpu.memory_space<vmem>>, vector<1x1x32xf32>
    %58 = vector.shape_cast %57 : vector<1x1x32xf32> to vector<1x32xf32>
    %59 = vector.broadcast %58 : vector<1x32xf32> to vector<48x32xf32>
    %60 = arith.addf %56, %59 : vector<48x32xf32>
    %cst_44 = arith.constant 0.000000e+00 : f32
    %61 = vector.broadcast %cst_44 : f32 to vector<48x32xf32>
    %c0_45 = arith.constant 0 : index
    %c0_46 = arith.constant 0 : index
    %c0_47 = arith.constant 0 : index
    %62 = vector.load %arg5[%c0_45, %c0_46, %c0_47] : memref<4x1x32xf32, #tpu.memory_space<vmem>>, vector<1x1x32xf32>
    %63 = vector.shape_cast %62 : vector<1x1x32xf32> to vector<1x32xf32>
    %64 = vector.broadcast %63 : vector<1x32xf32> to vector<48x32xf32>
    %65 = arith.mulf %44, %64 : vector<48x32xf32>
    %66 = arith.truncf %65 : vector<48x32xf32> to vector<48x32xbf16>
    %67 = arith.truncf %52 : vector<48x32xf32> to vector<48x32xbf16>
    %cst_48 = arith.constant dense<0.000000e+00> : vector<48x48xf32>
    %68 = tpu.matmul %66, %67, %cst_48 {dimension_numbers = #tpu.dot_dimension_numbers<[1], [1], [0], [0], [0, 0, 1, 0], [], []>} : vector<48x32xbf16>, vector<48x32xbf16>, vector<48x48xf32> -> vector<48x48xf32>
    %69 = arith.addf %68, %12 : vector<48x48xf32>
    %cst_49 = arith.constant dense<0xFF800000> : vector<48xf32>
    %70 = vector.multi_reduction <maximumf>, %69, %cst_49 [1] : vector<48x48xf32> to vector<48xf32>
    %71 = vector.shape_cast %70 : vector<48xf32> to vector<48x1xf32>
    %72 = vector.broadcast %71 : vector<48x1xf32> to vector<48x48xf32>
    %73 = arith.subf %69, %72 : vector<48x48xf32>
    %74 = math.exp %73 : vector<48x48xf32>
    %cst_50 = arith.constant dense<0.000000e+00> : vector<48xf32>
    %75 = vector.multi_reduction <add>, %74, %cst_50 [1] : vector<48x48xf32> to vector<48xf32>
    %76 = vector.shape_cast %75 : vector<48xf32> to vector<48x1xf32>
    %77 = tpu.reciprocal %76 {approx = true} : vector<48x1xf32> -> vector<48x1xf32>
    %78 = vector.broadcast %77 : vector<48x1xf32> to vector<48x48xf32>
    %79 = arith.mulf %74, %78 : vector<48x48xf32>
    %80 = vector.broadcast %63 : vector<1x32xf32> to vector<48x32xf32>
    %81 = arith.mulf %60, %80 : vector<48x32xf32>
    %82 = arith.truncf %79 : vector<48x48xf32> to vector<48x48xbf16>
    %83 = arith.truncf %81 : vector<48x32xf32> to vector<48x32xbf16>
    %cst_51 = arith.constant dense<0.000000e+00> : vector<48x32xf32>
    %84 = tpu.matmul %82, %83, %cst_51 {dimension_numbers = #tpu.dot_dimension_numbers<[1], [0], [0], [1], [0, 0, 1, 1], [], []>} : vector<48x48xbf16>, vector<48x32xbf16>, vector<48x32xf32> -> vector<48x32xf32>
    %85 = arith.addf %61, %84 : vector<48x32xf32>
    %c1 = arith.constant 1 : index
    %c0_52 = arith.constant 0 : index
    %c0_53 = arith.constant 0 : index
    %86 = vector.load %arg5[%c1, %c0_52, %c0_53] : memref<4x1x32xf32, #tpu.memory_space<vmem>>, vector<1x1x32xf32>
    %87 = vector.shape_cast %86 : vector<1x1x32xf32> to vector<1x32xf32>
    %88 = vector.broadcast %87 : vector<1x32xf32> to vector<48x32xf32>
    %89 = arith.mulf %44, %88 : vector<48x32xf32>
    %90 = arith.truncf %89 : vector<48x32xf32> to vector<48x32xbf16>
    %91 = arith.truncf %52 : vector<48x32xf32> to vector<48x32xbf16>
    %cst_54 = arith.constant dense<0.000000e+00> : vector<48x48xf32>
    %92 = tpu.matmul %90, %91, %cst_54 {dimension_numbers = #tpu.dot_dimension_numbers<[1], [1], [0], [0], [0, 0, 1, 0], [], []>} : vector<48x32xbf16>, vector<48x32xbf16>, vector<48x48xf32> -> vector<48x48xf32>
    %93 = arith.addf %92, %12 : vector<48x48xf32>
    %cst_55 = arith.constant dense<0xFF800000> : vector<48xf32>
    %94 = vector.multi_reduction <maximumf>, %93, %cst_55 [1] : vector<48x48xf32> to vector<48xf32>
    %95 = vector.shape_cast %94 : vector<48xf32> to vector<48x1xf32>
    %96 = vector.broadcast %95 : vector<48x1xf32> to vector<48x48xf32>
    %97 = arith.subf %93, %96 : vector<48x48xf32>
    %98 = math.exp %97 : vector<48x48xf32>
    %cst_56 = arith.constant dense<0.000000e+00> : vector<48xf32>
    %99 = vector.multi_reduction <add>, %98, %cst_56 [1] : vector<48x48xf32> to vector<48xf32>
    %100 = vector.shape_cast %99 : vector<48xf32> to vector<48x1xf32>
    %101 = tpu.reciprocal %100 {approx = true} : vector<48x1xf32> -> vector<48x1xf32>
    %102 = vector.broadcast %101 : vector<48x1xf32> to vector<48x48xf32>
    %103 = arith.mulf %98, %102 : vector<48x48xf32>
    %104 = vector.broadcast %87 : vector<1x32xf32> to vector<48x32xf32>
    %105 = arith.mulf %60, %104 : vector<48x32xf32>
    %106 = arith.truncf %103 : vector<48x48xf32> to vector<48x48xbf16>
    %107 = arith.truncf %105 : vector<48x32xf32> to vector<48x32xbf16>
    %cst_57 = arith.constant dense<0.000000e+00> : vector<48x32xf32>
    %108 = tpu.matmul %106, %107, %cst_57 {dimension_numbers = #tpu.dot_dimension_numbers<[1], [0], [0], [1], [0, 0, 1, 1], [], []>} : vector<48x48xbf16>, vector<48x32xbf16>, vector<48x32xf32> -> vector<48x32xf32>
    %109 = arith.addf %85, %108 : vector<48x32xf32>
    %c2 = arith.constant 2 : index
    %c0_58 = arith.constant 0 : index
    %c0_59 = arith.constant 0 : index
    %110 = vector.load %arg5[%c2, %c0_58, %c0_59] : memref<4x1x32xf32, #tpu.memory_space<vmem>>, vector<1x1x32xf32>
    %111 = vector.shape_cast %110 : vector<1x1x32xf32> to vector<1x32xf32>
    %112 = vector.broadcast %111 : vector<1x32xf32> to vector<48x32xf32>
    %113 = arith.mulf %44, %112 : vector<48x32xf32>
    %114 = arith.truncf %113 : vector<48x32xf32> to vector<48x32xbf16>
    %115 = arith.truncf %52 : vector<48x32xf32> to vector<48x32xbf16>
    %cst_60 = arith.constant dense<0.000000e+00> : vector<48x48xf32>
    %116 = tpu.matmul %114, %115, %cst_60 {dimension_numbers = #tpu.dot_dimension_numbers<[1], [1], [0], [0], [0, 0, 1, 0], [], []>} : vector<48x32xbf16>, vector<48x32xbf16>, vector<48x48xf32> -> vector<48x48xf32>
    %117 = arith.addf %116, %12 : vector<48x48xf32>
    %cst_61 = arith.constant dense<0xFF800000> : vector<48xf32>
    %118 = vector.multi_reduction <maximumf>, %117, %cst_61 [1] : vector<48x48xf32> to vector<48xf32>
    %119 = vector.shape_cast %118 : vector<48xf32> to vector<48x1xf32>
    %120 = vector.broadcast %119 : vector<48x1xf32> to vector<48x48xf32>
    %121 = arith.subf %117, %120 : vector<48x48xf32>
    %122 = math.exp %121 : vector<48x48xf32>
    %cst_62 = arith.constant dense<0.000000e+00> : vector<48xf32>
    %123 = vector.multi_reduction <add>, %122, %cst_62 [1] : vector<48x48xf32> to vector<48xf32>
    %124 = vector.shape_cast %123 : vector<48xf32> to vector<48x1xf32>
    %125 = tpu.reciprocal %124 {approx = true} : vector<48x1xf32> -> vector<48x1xf32>
    %126 = vector.broadcast %125 : vector<48x1xf32> to vector<48x48xf32>
    %127 = arith.mulf %122, %126 : vector<48x48xf32>
    %128 = vector.broadcast %111 : vector<1x32xf32> to vector<48x32xf32>
    %129 = arith.mulf %60, %128 : vector<48x32xf32>
    %130 = arith.truncf %127 : vector<48x48xf32> to vector<48x48xbf16>
    %131 = arith.truncf %129 : vector<48x32xf32> to vector<48x32xbf16>
    %cst_63 = arith.constant dense<0.000000e+00> : vector<48x32xf32>
    %132 = tpu.matmul %130, %131, %cst_63 {dimension_numbers = #tpu.dot_dimension_numbers<[1], [0], [0], [1], [0, 0, 1, 1], [], []>} : vector<48x48xbf16>, vector<48x32xbf16>, vector<48x32xf32> -> vector<48x32xf32>
    %133 = arith.addf %109, %132 : vector<48x32xf32>
    %c3 = arith.constant 3 : index
    %c0_64 = arith.constant 0 : index
    %c0_65 = arith.constant 0 : index
    %134 = vector.load %arg5[%c3, %c0_64, %c0_65] : memref<4x1x32xf32, #tpu.memory_space<vmem>>, vector<1x1x32xf32>
    %135 = vector.shape_cast %134 : vector<1x1x32xf32> to vector<1x32xf32>
    %136 = vector.broadcast %135 : vector<1x32xf32> to vector<48x32xf32>
    %137 = arith.mulf %44, %136 : vector<48x32xf32>
    %138 = arith.truncf %137 : vector<48x32xf32> to vector<48x32xbf16>
    %139 = arith.truncf %52 : vector<48x32xf32> to vector<48x32xbf16>
    %cst_66 = arith.constant dense<0.000000e+00> : vector<48x48xf32>
    %140 = tpu.matmul %138, %139, %cst_66 {dimension_numbers = #tpu.dot_dimension_numbers<[1], [1], [0], [0], [0, 0, 1, 0], [], []>} : vector<48x32xbf16>, vector<48x32xbf16>, vector<48x48xf32> -> vector<48x48xf32>
    %141 = arith.addf %140, %12 : vector<48x48xf32>
    %cst_67 = arith.constant dense<0xFF800000> : vector<48xf32>
    %142 = vector.multi_reduction <maximumf>, %141, %cst_67 [1] : vector<48x48xf32> to vector<48xf32>
    %143 = vector.shape_cast %142 : vector<48xf32> to vector<48x1xf32>
    %144 = vector.broadcast %143 : vector<48x1xf32> to vector<48x48xf32>
    %145 = arith.subf %141, %144 : vector<48x48xf32>
    %146 = math.exp %145 : vector<48x48xf32>
    %cst_68 = arith.constant dense<0.000000e+00> : vector<48xf32>
    %147 = vector.multi_reduction <add>, %146, %cst_68 [1] : vector<48x48xf32> to vector<48xf32>
    %148 = vector.shape_cast %147 : vector<48xf32> to vector<48x1xf32>
    %149 = tpu.reciprocal %148 {approx = true} : vector<48x1xf32> -> vector<48x1xf32>
    %150 = vector.broadcast %149 : vector<48x1xf32> to vector<48x48xf32>
    %151 = arith.mulf %146, %150 : vector<48x48xf32>
    %152 = vector.broadcast %135 : vector<1x32xf32> to vector<48x32xf32>
    %153 = arith.mulf %60, %152 : vector<48x32xf32>
    %154 = arith.truncf %151 : vector<48x48xf32> to vector<48x48xbf16>
    %155 = arith.truncf %153 : vector<48x32xf32> to vector<48x32xbf16>
    %cst_69 = arith.constant dense<0.000000e+00> : vector<48x32xf32>
    %156 = tpu.matmul %154, %155, %cst_69 {dimension_numbers = #tpu.dot_dimension_numbers<[1], [0], [0], [1], [0, 0, 1, 1], [], []>} : vector<48x48xbf16>, vector<48x32xbf16>, vector<48x32xf32> -> vector<48x32xf32>
    %157 = arith.addf %133, %156 : vector<48x32xf32>
    %c0_70 = arith.constant 0 : index
    %c0_71 = arith.constant 0 : index
    %c0_72 = arith.constant 0 : index
    %158 = vector.load %arg15[%c0_70, %c0_71, %c0_72] : memref<2x32x32xbf16, #tpu.memory_space<vmem>>, vector<1x32x32xbf16>
    %159 = vector.shape_cast %158 : vector<1x32x32xbf16> to vector<32x32xbf16>
    %160 = arith.truncf %157 : vector<48x32xf32> to vector<48x32xbf16>
    %cst_73 = arith.constant dense<0.000000e+00> : vector<48x32xf32>
    %161 = tpu.matmul %160, %159, %cst_73 {dimension_numbers = #tpu.dot_dimension_numbers<[1], [0], [0], [1], [0, 0, 1, 1], [], []>} : vector<48x32xbf16>, vector<32x32xbf16>, vector<48x32xf32> -> vector<48x32xf32>
    %162 = arith.addf %11, %161 : vector<48x32xf32>
    %c0_74 = arith.constant 0 : index
    %c0_75 = arith.constant 0 : index
    %c0_76 = arith.constant 0 : index
    %163 = vector.load %arg16[%c0_74, %c0_75, %c0_76] : memref<2x1x32xf32, #tpu.memory_space<vmem>>, vector<1x1x32xf32>
    %164 = vector.shape_cast %163 : vector<1x1x32xf32> to vector<1x32xf32>
    %165 = vector.broadcast %164 : vector<1x32xf32> to vector<48x32xf32>
    %166 = arith.addf %162, %165 : vector<48x32xf32>
    %c0_77 = arith.constant 0 : index
    %c0_78 = arith.constant 0 : index
    %c0_79 = arith.constant 0 : index
    %167 = vector.load %arg17[%c0_77, %c0_78, %c0_79] : memref<2x1x32xf32, #tpu.memory_space<vmem>>, vector<1x1x32xf32>
    %168 = vector.shape_cast %167 : vector<1x1x32xf32> to vector<1x32xf32>
    %c0_80 = arith.constant 0 : index
    %c0_81 = arith.constant 0 : index
    %c0_82 = arith.constant 0 : index
    %169 = vector.load %arg18[%c0_80, %c0_81, %c0_82] : memref<2x1x32xf32, #tpu.memory_space<vmem>>, vector<1x1x32xf32>
    %170 = vector.shape_cast %169 : vector<1x1x32xf32> to vector<1x32xf32>
    %cst_83 = arith.constant dense<0.000000e+00> : vector<48xf32>
    %171 = vector.multi_reduction <add>, %166, %cst_83 [1] : vector<48x32xf32> to vector<48xf32>
    %172 = vector.shape_cast %171 : vector<48xf32> to vector<48x1xf32>
    %cst_84 = arith.constant 3.200000e+01 : f32
    %173 = vector.broadcast %cst_84 : f32 to vector<48x1xf32>
    %174 = arith.divf %172, %173 : vector<48x1xf32>
    %175 = vector.broadcast %174 : vector<48x1xf32> to vector<48x32xf32>
    %176 = arith.subf %166, %175 : vector<48x32xf32>
    %177 = arith.mulf %176, %176 : vector<48x32xf32>
    %cst_85 = arith.constant dense<0.000000e+00> : vector<48xf32>
    %178 = vector.multi_reduction <add>, %177, %cst_85 [1] : vector<48x32xf32> to vector<48xf32>
    %179 = vector.shape_cast %178 : vector<48xf32> to vector<48x1xf32>
    %cst_86 = arith.constant 3.200000e+01 : f32
    %180 = vector.broadcast %cst_86 : f32 to vector<48x1xf32>
    %181 = arith.divf %179, %180 : vector<48x1xf32>
    %cst_87 = arith.constant 9.99999997E-7 : f32
    %182 = vector.broadcast %cst_87 : f32 to vector<48x1xf32>
    %183 = arith.addf %181, %182 : vector<48x1xf32>
    %184 = math.rsqrt %183 : vector<48x1xf32>
    %185 = vector.broadcast %184 : vector<48x1xf32> to vector<48x32xf32>
    %186 = arith.mulf %176, %185 : vector<48x32xf32>
    %187 = vector.broadcast %168 : vector<1x32xf32> to vector<48x32xf32>
    %188 = arith.mulf %186, %187 : vector<48x32xf32>
    %189 = vector.broadcast %170 : vector<1x32xf32> to vector<48x32xf32>
    %190 = arith.addf %188, %189 : vector<48x32xf32>
    %c0_88 = arith.constant 0 : index
    %c0_89 = arith.constant 0 : index
    %c0_90 = arith.constant 0 : index
    %191 = vector.load %arg19[%c0_88, %c0_89, %c0_90] : memref<2x32x128xbf16, #tpu.memory_space<vmem>>, vector<1x32x128xbf16>
    %192 = vector.shape_cast %191 : vector<1x32x128xbf16> to vector<32x128xbf16>
    %193 = arith.truncf %190 : vector<48x32xf32> to vector<48x32xbf16>
    %cst_91 = arith.constant dense<0.000000e+00> : vector<48x128xf32>
    %194 = tpu.matmul %193, %192, %cst_91 {dimension_numbers = #tpu.dot_dimension_numbers<[1], [0], [0], [1], [0, 0, 1, 1], [], []>} : vector<48x32xbf16>, vector<32x128xbf16>, vector<48x128xf32> -> vector<48x128xf32>
    %c0_92 = arith.constant 0 : index
    %c0_93 = arith.constant 0 : index
    %c0_94 = arith.constant 0 : index
    %195 = vector.load %arg20[%c0_92, %c0_93, %c0_94] : memref<2x1x128xf32, #tpu.memory_space<vmem>>, vector<1x1x128xf32>
    %196 = vector.shape_cast %195 : vector<1x1x128xf32> to vector<1x128xf32>
    %197 = vector.broadcast %196 : vector<1x128xf32> to vector<48x128xf32>
    %198 = arith.addf %194, %197 : vector<48x128xf32>
    %cst_95 = arith.constant 5.000000e-01 : f32
    %199 = vector.broadcast %cst_95 : f32 to vector<48x128xf32>
    %200 = arith.mulf %199, %198 : vector<48x128xf32>
    %cst_96 = arith.constant 4.471500e-02 : f32
    %201 = vector.broadcast %cst_96 : f32 to vector<48x128xf32>
    %202 = arith.mulf %201, %198 : vector<48x128xf32>
    %203 = arith.mulf %202, %198 : vector<48x128xf32>
    %204 = arith.mulf %203, %198 : vector<48x128xf32>
    %205 = arith.addf %198, %204 : vector<48x128xf32>
    %cst_97 = arith.constant 0.797884583 : f32
    %206 = vector.broadcast %cst_97 : f32 to vector<48x128xf32>
    %207 = arith.mulf %206, %205 : vector<48x128xf32>
    %208 = math.tanh %207 : vector<48x128xf32>
    %cst_98 = arith.constant 1.000000e+00 : f32
    %209 = vector.broadcast %cst_98 : f32 to vector<48x128xf32>
    %210 = arith.addf %209, %208 : vector<48x128xf32>
    %211 = arith.mulf %200, %210 : vector<48x128xf32>
    %c0_99 = arith.constant 0 : index
    %c0_100 = arith.constant 0 : index
    %c0_101 = arith.constant 0 : index
    %212 = vector.load %arg21[%c0_99, %c0_100, %c0_101] : memref<2x128x32xbf16, #tpu.memory_space<vmem>>, vector<1x128x32xbf16>
    %213 = vector.shape_cast %212 : vector<1x128x32xbf16> to vector<128x32xbf16>
    %214 = arith.truncf %211 : vector<48x128xf32> to vector<48x128xbf16>
    %cst_102 = arith.constant dense<0.000000e+00> : vector<48x32xf32>
    %215 = tpu.matmul %214, %213, %cst_102 {dimension_numbers = #tpu.dot_dimension_numbers<[1], [0], [0], [1], [0, 0, 1, 1], [], []>} : vector<48x128xbf16>, vector<128x32xbf16>, vector<48x32xf32> -> vector<48x32xf32>
    %216 = arith.addf %166, %215 : vector<48x32xf32>
    %c0_103 = arith.constant 0 : index
    %c0_104 = arith.constant 0 : index
    %c0_105 = arith.constant 0 : index
    %217 = vector.load %arg22[%c0_103, %c0_104, %c0_105] : memref<2x1x32xf32, #tpu.memory_space<vmem>>, vector<1x1x32xf32>
    %218 = vector.shape_cast %217 : vector<1x1x32xf32> to vector<1x32xf32>
    %219 = vector.broadcast %218 : vector<1x32xf32> to vector<48x32xf32>
    %220 = arith.addf %216, %219 : vector<48x32xf32>
    %c1_106 = arith.constant 1 : index
    %c0_107 = arith.constant 0 : index
    %c0_108 = arith.constant 0 : index
    %221 = vector.load %arg7[%c1_106, %c0_107, %c0_108] : memref<2x1x32xf32, #tpu.memory_space<vmem>>, vector<1x1x32xf32>
    %222 = vector.shape_cast %221 : vector<1x1x32xf32> to vector<1x32xf32>
    %c1_109 = arith.constant 1 : index
    %c0_110 = arith.constant 0 : index
    %c0_111 = arith.constant 0 : index
    %223 = vector.load %arg8[%c1_109, %c0_110, %c0_111] : memref<2x1x32xf32, #tpu.memory_space<vmem>>, vector<1x1x32xf32>
    %224 = vector.shape_cast %223 : vector<1x1x32xf32> to vector<1x32xf32>
    %cst_112 = arith.constant dense<0.000000e+00> : vector<48xf32>
    %225 = vector.multi_reduction <add>, %220, %cst_112 [1] : vector<48x32xf32> to vector<48xf32>
    %226 = vector.shape_cast %225 : vector<48xf32> to vector<48x1xf32>
    %cst_113 = arith.constant 3.200000e+01 : f32
    %227 = vector.broadcast %cst_113 : f32 to vector<48x1xf32>
    %228 = arith.divf %226, %227 : vector<48x1xf32>
    %229 = vector.broadcast %228 : vector<48x1xf32> to vector<48x32xf32>
    %230 = arith.subf %220, %229 : vector<48x32xf32>
    %231 = arith.mulf %230, %230 : vector<48x32xf32>
    %cst_114 = arith.constant dense<0.000000e+00> : vector<48xf32>
    %232 = vector.multi_reduction <add>, %231, %cst_114 [1] : vector<48x32xf32> to vector<48xf32>
    %233 = vector.shape_cast %232 : vector<48xf32> to vector<48x1xf32>
    %cst_115 = arith.constant 3.200000e+01 : f32
    %234 = vector.broadcast %cst_115 : f32 to vector<48x1xf32>
    %235 = arith.divf %233, %234 : vector<48x1xf32>
    %cst_116 = arith.constant 9.99999997E-7 : f32
    %236 = vector.broadcast %cst_116 : f32 to vector<48x1xf32>
    %237 = arith.addf %235, %236 : vector<48x1xf32>
    %238 = math.rsqrt %237 : vector<48x1xf32>
    %239 = vector.broadcast %238 : vector<48x1xf32> to vector<48x32xf32>
    %240 = arith.mulf %230, %239 : vector<48x32xf32>
    %241 = vector.broadcast %222 : vector<1x32xf32> to vector<48x32xf32>
    %242 = arith.mulf %240, %241 : vector<48x32xf32>
    %243 = vector.broadcast %224 : vector<1x32xf32> to vector<48x32xf32>
    %244 = arith.addf %242, %243 : vector<48x32xf32>
    %c1_117 = arith.constant 1 : index
    %c0_118 = arith.constant 0 : index
    %c0_119 = arith.constant 0 : index
    %245 = vector.load %arg9[%c1_117, %c0_118, %c0_119] : memref<2x32x32xbf16, #tpu.memory_space<vmem>>, vector<1x32x32xbf16>
    %246 = vector.shape_cast %245 : vector<1x32x32xbf16> to vector<32x32xbf16>
    %247 = arith.truncf %244 : vector<48x32xf32> to vector<48x32xbf16>
    %cst_120 = arith.constant dense<0.000000e+00> : vector<48x32xf32>
    %248 = tpu.matmul %247, %246, %cst_120 {dimension_numbers = #tpu.dot_dimension_numbers<[1], [0], [0], [1], [0, 0, 1, 1], [], []>} : vector<48x32xbf16>, vector<32x32xbf16>, vector<48x32xf32> -> vector<48x32xf32>
    %c1_121 = arith.constant 1 : index
    %c0_122 = arith.constant 0 : index
    %c0_123 = arith.constant 0 : index
    %249 = vector.load %arg10[%c1_121, %c0_122, %c0_123] : memref<2x1x32xf32, #tpu.memory_space<vmem>>, vector<1x1x32xf32>
    %250 = vector.shape_cast %249 : vector<1x1x32xf32> to vector<1x32xf32>
    %251 = vector.broadcast %250 : vector<1x32xf32> to vector<48x32xf32>
    %252 = arith.addf %248, %251 : vector<48x32xf32>
    %c1_124 = arith.constant 1 : index
    %c0_125 = arith.constant 0 : index
    %c0_126 = arith.constant 0 : index
    %253 = vector.load %arg11[%c1_124, %c0_125, %c0_126] : memref<2x32x32xbf16, #tpu.memory_space<vmem>>, vector<1x32x32xbf16>
    %254 = vector.shape_cast %253 : vector<1x32x32xbf16> to vector<32x32xbf16>
    %255 = arith.truncf %244 : vector<48x32xf32> to vector<48x32xbf16>
    %cst_127 = arith.constant dense<0.000000e+00> : vector<48x32xf32>
    %256 = tpu.matmul %255, %254, %cst_127 {dimension_numbers = #tpu.dot_dimension_numbers<[1], [0], [0], [1], [0, 0, 1, 1], [], []>} : vector<48x32xbf16>, vector<32x32xbf16>, vector<48x32xf32> -> vector<48x32xf32>
    %c1_128 = arith.constant 1 : index
    %c0_129 = arith.constant 0 : index
    %c0_130 = arith.constant 0 : index
    %257 = vector.load %arg12[%c1_128, %c0_129, %c0_130] : memref<2x1x32xf32, #tpu.memory_space<vmem>>, vector<1x1x32xf32>
    %258 = vector.shape_cast %257 : vector<1x1x32xf32> to vector<1x32xf32>
    %259 = vector.broadcast %258 : vector<1x32xf32> to vector<48x32xf32>
    %260 = arith.addf %256, %259 : vector<48x32xf32>
    %c1_131 = arith.constant 1 : index
    %c0_132 = arith.constant 0 : index
    %c0_133 = arith.constant 0 : index
    %261 = vector.load %arg13[%c1_131, %c0_132, %c0_133] : memref<2x32x32xbf16, #tpu.memory_space<vmem>>, vector<1x32x32xbf16>
    %262 = vector.shape_cast %261 : vector<1x32x32xbf16> to vector<32x32xbf16>
    %263 = arith.truncf %244 : vector<48x32xf32> to vector<48x32xbf16>
    %cst_134 = arith.constant dense<0.000000e+00> : vector<48x32xf32>
    %264 = tpu.matmul %263, %262, %cst_134 {dimension_numbers = #tpu.dot_dimension_numbers<[1], [0], [0], [1], [0, 0, 1, 1], [], []>} : vector<48x32xbf16>, vector<32x32xbf16>, vector<48x32xf32> -> vector<48x32xf32>
    %c1_135 = arith.constant 1 : index
    %c0_136 = arith.constant 0 : index
    %c0_137 = arith.constant 0 : index
    %265 = vector.load %arg14[%c1_135, %c0_136, %c0_137] : memref<2x1x32xf32, #tpu.memory_space<vmem>>, vector<1x1x32xf32>
    %266 = vector.shape_cast %265 : vector<1x1x32xf32> to vector<1x32xf32>
    %267 = vector.broadcast %266 : vector<1x32xf32> to vector<48x32xf32>
    %268 = arith.addf %264, %267 : vector<48x32xf32>
    %cst_138 = arith.constant 0.000000e+00 : f32
    %269 = vector.broadcast %cst_138 : f32 to vector<48x32xf32>
    %c0_139 = arith.constant 0 : index
    %c0_140 = arith.constant 0 : index
    %c0_141 = arith.constant 0 : index
    %270 = vector.load %arg5[%c0_139, %c0_140, %c0_141] : memref<4x1x32xf32, #tpu.memory_space<vmem>>, vector<1x1x32xf32>
    %271 = vector.shape_cast %270 : vector<1x1x32xf32> to vector<1x32xf32>
    %272 = vector.broadcast %271 : vector<1x32xf32> to vector<48x32xf32>
    %273 = arith.mulf %252, %272 : vector<48x32xf32>
    %274 = arith.truncf %273 : vector<48x32xf32> to vector<48x32xbf16>
    %275 = arith.truncf %260 : vector<48x32xf32> to vector<48x32xbf16>
    %cst_142 = arith.constant dense<0.000000e+00> : vector<48x48xf32>
    %276 = tpu.matmul %274, %275, %cst_142 {dimension_numbers = #tpu.dot_dimension_numbers<[1], [1], [0], [0], [0, 0, 1, 0], [], []>} : vector<48x32xbf16>, vector<48x32xbf16>, vector<48x48xf32> -> vector<48x48xf32>
    %277 = arith.addf %276, %12 : vector<48x48xf32>
    %cst_143 = arith.constant dense<0xFF800000> : vector<48xf32>
    %278 = vector.multi_reduction <maximumf>, %277, %cst_143 [1] : vector<48x48xf32> to vector<48xf32>
    %279 = vector.shape_cast %278 : vector<48xf32> to vector<48x1xf32>
    %280 = vector.broadcast %279 : vector<48x1xf32> to vector<48x48xf32>
    %281 = arith.subf %277, %280 : vector<48x48xf32>
    %282 = math.exp %281 : vector<48x48xf32>
    %cst_144 = arith.constant dense<0.000000e+00> : vector<48xf32>
    %283 = vector.multi_reduction <add>, %282, %cst_144 [1] : vector<48x48xf32> to vector<48xf32>
    %284 = vector.shape_cast %283 : vector<48xf32> to vector<48x1xf32>
    %285 = tpu.reciprocal %284 {approx = true} : vector<48x1xf32> -> vector<48x1xf32>
    %286 = vector.broadcast %285 : vector<48x1xf32> to vector<48x48xf32>
    %287 = arith.mulf %282, %286 : vector<48x48xf32>
    %288 = vector.broadcast %271 : vector<1x32xf32> to vector<48x32xf32>
    %289 = arith.mulf %268, %288 : vector<48x32xf32>
    %290 = arith.truncf %287 : vector<48x48xf32> to vector<48x48xbf16>
    %291 = arith.truncf %289 : vector<48x32xf32> to vector<48x32xbf16>
    %cst_145 = arith.constant dense<0.000000e+00> : vector<48x32xf32>
    %292 = tpu.matmul %290, %291, %cst_145 {dimension_numbers = #tpu.dot_dimension_numbers<[1], [0], [0], [1], [0, 0, 1, 1], [], []>} : vector<48x48xbf16>, vector<48x32xbf16>, vector<48x32xf32> -> vector<48x32xf32>
    %293 = arith.addf %269, %292 : vector<48x32xf32>
    %c1_146 = arith.constant 1 : index
    %c0_147 = arith.constant 0 : index
    %c0_148 = arith.constant 0 : index
    %294 = vector.load %arg5[%c1_146, %c0_147, %c0_148] : memref<4x1x32xf32, #tpu.memory_space<vmem>>, vector<1x1x32xf32>
    %295 = vector.shape_cast %294 : vector<1x1x32xf32> to vector<1x32xf32>
    %296 = vector.broadcast %295 : vector<1x32xf32> to vector<48x32xf32>
    %297 = arith.mulf %252, %296 : vector<48x32xf32>
    %298 = arith.truncf %297 : vector<48x32xf32> to vector<48x32xbf16>
    %299 = arith.truncf %260 : vector<48x32xf32> to vector<48x32xbf16>
    %cst_149 = arith.constant dense<0.000000e+00> : vector<48x48xf32>
    %300 = tpu.matmul %298, %299, %cst_149 {dimension_numbers = #tpu.dot_dimension_numbers<[1], [1], [0], [0], [0, 0, 1, 0], [], []>} : vector<48x32xbf16>, vector<48x32xbf16>, vector<48x48xf32> -> vector<48x48xf32>
    %301 = arith.addf %300, %12 : vector<48x48xf32>
    %cst_150 = arith.constant dense<0xFF800000> : vector<48xf32>
    %302 = vector.multi_reduction <maximumf>, %301, %cst_150 [1] : vector<48x48xf32> to vector<48xf32>
    %303 = vector.shape_cast %302 : vector<48xf32> to vector<48x1xf32>
    %304 = vector.broadcast %303 : vector<48x1xf32> to vector<48x48xf32>
    %305 = arith.subf %301, %304 : vector<48x48xf32>
    %306 = math.exp %305 : vector<48x48xf32>
    %cst_151 = arith.constant dense<0.000000e+00> : vector<48xf32>
    %307 = vector.multi_reduction <add>, %306, %cst_151 [1] : vector<48x48xf32> to vector<48xf32>
    %308 = vector.shape_cast %307 : vector<48xf32> to vector<48x1xf32>
    %309 = tpu.reciprocal %308 {approx = true} : vector<48x1xf32> -> vector<48x1xf32>
    %310 = vector.broadcast %309 : vector<48x1xf32> to vector<48x48xf32>
    %311 = arith.mulf %306, %310 : vector<48x48xf32>
    %312 = vector.broadcast %295 : vector<1x32xf32> to vector<48x32xf32>
    %313 = arith.mulf %268, %312 : vector<48x32xf32>
    %314 = arith.truncf %311 : vector<48x48xf32> to vector<48x48xbf16>
    %315 = arith.truncf %313 : vector<48x32xf32> to vector<48x32xbf16>
    %cst_152 = arith.constant dense<0.000000e+00> : vector<48x32xf32>
    %316 = tpu.matmul %314, %315, %cst_152 {dimension_numbers = #tpu.dot_dimension_numbers<[1], [0], [0], [1], [0, 0, 1, 1], [], []>} : vector<48x48xbf16>, vector<48x32xbf16>, vector<48x32xf32> -> vector<48x32xf32>
    %317 = arith.addf %293, %316 : vector<48x32xf32>
    %c2_153 = arith.constant 2 : index
    %c0_154 = arith.constant 0 : index
    %c0_155 = arith.constant 0 : index
    %318 = vector.load %arg5[%c2_153, %c0_154, %c0_155] : memref<4x1x32xf32, #tpu.memory_space<vmem>>, vector<1x1x32xf32>
    %319 = vector.shape_cast %318 : vector<1x1x32xf32> to vector<1x32xf32>
    %320 = vector.broadcast %319 : vector<1x32xf32> to vector<48x32xf32>
    %321 = arith.mulf %252, %320 : vector<48x32xf32>
    %322 = arith.truncf %321 : vector<48x32xf32> to vector<48x32xbf16>
    %323 = arith.truncf %260 : vector<48x32xf32> to vector<48x32xbf16>
    %cst_156 = arith.constant dense<0.000000e+00> : vector<48x48xf32>
    %324 = tpu.matmul %322, %323, %cst_156 {dimension_numbers = #tpu.dot_dimension_numbers<[1], [1], [0], [0], [0, 0, 1, 0], [], []>} : vector<48x32xbf16>, vector<48x32xbf16>, vector<48x48xf32> -> vector<48x48xf32>
    %325 = arith.addf %324, %12 : vector<48x48xf32>
    %cst_157 = arith.constant dense<0xFF800000> : vector<48xf32>
    %326 = vector.multi_reduction <maximumf>, %325, %cst_157 [1] : vector<48x48xf32> to vector<48xf32>
    %327 = vector.shape_cast %326 : vector<48xf32> to vector<48x1xf32>
    %328 = vector.broadcast %327 : vector<48x1xf32> to vector<48x48xf32>
    %329 = arith.subf %325, %328 : vector<48x48xf32>
    %330 = math.exp %329 : vector<48x48xf32>
    %cst_158 = arith.constant dense<0.000000e+00> : vector<48xf32>
    %331 = vector.multi_reduction <add>, %330, %cst_158 [1] : vector<48x48xf32> to vector<48xf32>
    %332 = vector.shape_cast %331 : vector<48xf32> to vector<48x1xf32>
    %333 = tpu.reciprocal %332 {approx = true} : vector<48x1xf32> -> vector<48x1xf32>
    %334 = vector.broadcast %333 : vector<48x1xf32> to vector<48x48xf32>
    %335 = arith.mulf %330, %334 : vector<48x48xf32>
    %336 = vector.broadcast %319 : vector<1x32xf32> to vector<48x32xf32>
    %337 = arith.mulf %268, %336 : vector<48x32xf32>
    %338 = arith.truncf %335 : vector<48x48xf32> to vector<48x48xbf16>
    %339 = arith.truncf %337 : vector<48x32xf32> to vector<48x32xbf16>
    %cst_159 = arith.constant dense<0.000000e+00> : vector<48x32xf32>
    %340 = tpu.matmul %338, %339, %cst_159 {dimension_numbers = #tpu.dot_dimension_numbers<[1], [0], [0], [1], [0, 0, 1, 1], [], []>} : vector<48x48xbf16>, vector<48x32xbf16>, vector<48x32xf32> -> vector<48x32xf32>
    %341 = arith.addf %317, %340 : vector<48x32xf32>
    %c3_160 = arith.constant 3 : index
    %c0_161 = arith.constant 0 : index
    %c0_162 = arith.constant 0 : index
    %342 = vector.load %arg5[%c3_160, %c0_161, %c0_162] : memref<4x1x32xf32, #tpu.memory_space<vmem>>, vector<1x1x32xf32>
    %343 = vector.shape_cast %342 : vector<1x1x32xf32> to vector<1x32xf32>
    %344 = vector.broadcast %343 : vector<1x32xf32> to vector<48x32xf32>
    %345 = arith.mulf %252, %344 : vector<48x32xf32>
    %346 = arith.truncf %345 : vector<48x32xf32> to vector<48x32xbf16>
    %347 = arith.truncf %260 : vector<48x32xf32> to vector<48x32xbf16>
    %cst_163 = arith.constant dense<0.000000e+00> : vector<48x48xf32>
    %348 = tpu.matmul %346, %347, %cst_163 {dimension_numbers = #tpu.dot_dimension_numbers<[1], [1], [0], [0], [0, 0, 1, 0], [], []>} : vector<48x32xbf16>, vector<48x32xbf16>, vector<48x48xf32> -> vector<48x48xf32>
    %349 = arith.addf %348, %12 : vector<48x48xf32>
    %cst_164 = arith.constant dense<0xFF800000> : vector<48xf32>
    %350 = vector.multi_reduction <maximumf>, %349, %cst_164 [1] : vector<48x48xf32> to vector<48xf32>
    %351 = vector.shape_cast %350 : vector<48xf32> to vector<48x1xf32>
    %352 = vector.broadcast %351 : vector<48x1xf32> to vector<48x48xf32>
    %353 = arith.subf %349, %352 : vector<48x48xf32>
    %354 = math.exp %353 : vector<48x48xf32>
    %cst_165 = arith.constant dense<0.000000e+00> : vector<48xf32>
    %355 = vector.multi_reduction <add>, %354, %cst_165 [1] : vector<48x48xf32> to vector<48xf32>
    %356 = vector.shape_cast %355 : vector<48xf32> to vector<48x1xf32>
    %357 = tpu.reciprocal %356 {approx = true} : vector<48x1xf32> -> vector<48x1xf32>
    %358 = vector.broadcast %357 : vector<48x1xf32> to vector<48x48xf32>
    %359 = arith.mulf %354, %358 : vector<48x48xf32>
    %360 = vector.broadcast %343 : vector<1x32xf32> to vector<48x32xf32>
    %361 = arith.mulf %268, %360 : vector<48x32xf32>
    %362 = arith.truncf %359 : vector<48x48xf32> to vector<48x48xbf16>
    %363 = arith.truncf %361 : vector<48x32xf32> to vector<48x32xbf16>
    %cst_166 = arith.constant dense<0.000000e+00> : vector<48x32xf32>
    %364 = tpu.matmul %362, %363, %cst_166 {dimension_numbers = #tpu.dot_dimension_numbers<[1], [0], [0], [1], [0, 0, 1, 1], [], []>} : vector<48x48xbf16>, vector<48x32xbf16>, vector<48x32xf32> -> vector<48x32xf32>
    %365 = arith.addf %341, %364 : vector<48x32xf32>
    %c1_167 = arith.constant 1 : index
    %c0_168 = arith.constant 0 : index
    %c0_169 = arith.constant 0 : index
    %366 = vector.load %arg15[%c1_167, %c0_168, %c0_169] : memref<2x32x32xbf16, #tpu.memory_space<vmem>>, vector<1x32x32xbf16>
    %367 = vector.shape_cast %366 : vector<1x32x32xbf16> to vector<32x32xbf16>
    %368 = arith.truncf %365 : vector<48x32xf32> to vector<48x32xbf16>
    %cst_170 = arith.constant dense<0.000000e+00> : vector<48x32xf32>
    %369 = tpu.matmul %368, %367, %cst_170 {dimension_numbers = #tpu.dot_dimension_numbers<[1], [0], [0], [1], [0, 0, 1, 1], [], []>} : vector<48x32xbf16>, vector<32x32xbf16>, vector<48x32xf32> -> vector<48x32xf32>
    %370 = arith.addf %220, %369 : vector<48x32xf32>
    %c1_171 = arith.constant 1 : index
    %c0_172 = arith.constant 0 : index
    %c0_173 = arith.constant 0 : index
    %371 = vector.load %arg16[%c1_171, %c0_172, %c0_173] : memref<2x1x32xf32, #tpu.memory_space<vmem>>, vector<1x1x32xf32>
    %372 = vector.shape_cast %371 : vector<1x1x32xf32> to vector<1x32xf32>
    %373 = vector.broadcast %372 : vector<1x32xf32> to vector<48x32xf32>
    %374 = arith.addf %370, %373 : vector<48x32xf32>
    %c1_174 = arith.constant 1 : index
    %c0_175 = arith.constant 0 : index
    %c0_176 = arith.constant 0 : index
    %375 = vector.load %arg17[%c1_174, %c0_175, %c0_176] : memref<2x1x32xf32, #tpu.memory_space<vmem>>, vector<1x1x32xf32>
    %376 = vector.shape_cast %375 : vector<1x1x32xf32> to vector<1x32xf32>
    %c1_177 = arith.constant 1 : index
    %c0_178 = arith.constant 0 : index
    %c0_179 = arith.constant 0 : index
    %377 = vector.load %arg18[%c1_177, %c0_178, %c0_179] : memref<2x1x32xf32, #tpu.memory_space<vmem>>, vector<1x1x32xf32>
    %378 = vector.shape_cast %377 : vector<1x1x32xf32> to vector<1x32xf32>
    %cst_180 = arith.constant dense<0.000000e+00> : vector<48xf32>
    %379 = vector.multi_reduction <add>, %374, %cst_180 [1] : vector<48x32xf32> to vector<48xf32>
    %380 = vector.shape_cast %379 : vector<48xf32> to vector<48x1xf32>
    %cst_181 = arith.constant 3.200000e+01 : f32
    %381 = vector.broadcast %cst_181 : f32 to vector<48x1xf32>
    %382 = arith.divf %380, %381 : vector<48x1xf32>
    %383 = vector.broadcast %382 : vector<48x1xf32> to vector<48x32xf32>
    %384 = arith.subf %374, %383 : vector<48x32xf32>
    %385 = arith.mulf %384, %384 : vector<48x32xf32>
    %cst_182 = arith.constant dense<0.000000e+00> : vector<48xf32>
    %386 = vector.multi_reduction <add>, %385, %cst_182 [1] : vector<48x32xf32> to vector<48xf32>
    %387 = vector.shape_cast %386 : vector<48xf32> to vector<48x1xf32>
    %cst_183 = arith.constant 3.200000e+01 : f32
    %388 = vector.broadcast %cst_183 : f32 to vector<48x1xf32>
    %389 = arith.divf %387, %388 : vector<48x1xf32>
    %cst_184 = arith.constant 9.99999997E-7 : f32
    %390 = vector.broadcast %cst_184 : f32 to vector<48x1xf32>
    %391 = arith.addf %389, %390 : vector<48x1xf32>
    %392 = math.rsqrt %391 : vector<48x1xf32>
    %393 = vector.broadcast %392 : vector<48x1xf32> to vector<48x32xf32>
    %394 = arith.mulf %384, %393 : vector<48x32xf32>
    %395 = vector.broadcast %376 : vector<1x32xf32> to vector<48x32xf32>
    %396 = arith.mulf %394, %395 : vector<48x32xf32>
    %397 = vector.broadcast %378 : vector<1x32xf32> to vector<48x32xf32>
    %398 = arith.addf %396, %397 : vector<48x32xf32>
    %c1_185 = arith.constant 1 : index
    %c0_186 = arith.constant 0 : index
    %c0_187 = arith.constant 0 : index
    %399 = vector.load %arg19[%c1_185, %c0_186, %c0_187] : memref<2x32x128xbf16, #tpu.memory_space<vmem>>, vector<1x32x128xbf16>
    %400 = vector.shape_cast %399 : vector<1x32x128xbf16> to vector<32x128xbf16>
    %401 = arith.truncf %398 : vector<48x32xf32> to vector<48x32xbf16>
    %cst_188 = arith.constant dense<0.000000e+00> : vector<48x128xf32>
    %402 = tpu.matmul %401, %400, %cst_188 {dimension_numbers = #tpu.dot_dimension_numbers<[1], [0], [0], [1], [0, 0, 1, 1], [], []>} : vector<48x32xbf16>, vector<32x128xbf16>, vector<48x128xf32> -> vector<48x128xf32>
    %c1_189 = arith.constant 1 : index
    %c0_190 = arith.constant 0 : index
    %c0_191 = arith.constant 0 : index
    %403 = vector.load %arg20[%c1_189, %c0_190, %c0_191] : memref<2x1x128xf32, #tpu.memory_space<vmem>>, vector<1x1x128xf32>
    %404 = vector.shape_cast %403 : vector<1x1x128xf32> to vector<1x128xf32>
    %405 = vector.broadcast %404 : vector<1x128xf32> to vector<48x128xf32>
    %406 = arith.addf %402, %405 : vector<48x128xf32>
    %cst_192 = arith.constant 5.000000e-01 : f32
    %407 = vector.broadcast %cst_192 : f32 to vector<48x128xf32>
    %408 = arith.mulf %407, %406 : vector<48x128xf32>
    %cst_193 = arith.constant 4.471500e-02 : f32
    %409 = vector.broadcast %cst_193 : f32 to vector<48x128xf32>
    %410 = arith.mulf %409, %406 : vector<48x128xf32>
    %411 = arith.mulf %410, %406 : vector<48x128xf32>
    %412 = arith.mulf %411, %406 : vector<48x128xf32>
    %413 = arith.addf %406, %412 : vector<48x128xf32>
    %cst_194 = arith.constant 0.797884583 : f32
    %414 = vector.broadcast %cst_194 : f32 to vector<48x128xf32>
    %415 = arith.mulf %414, %413 : vector<48x128xf32>
    %416 = math.tanh %415 : vector<48x128xf32>
    %cst_195 = arith.constant 1.000000e+00 : f32
    %417 = vector.broadcast %cst_195 : f32 to vector<48x128xf32>
    %418 = arith.addf %417, %416 : vector<48x128xf32>
    %419 = arith.mulf %408, %418 : vector<48x128xf32>
    %c1_196 = arith.constant 1 : index
    %c0_197 = arith.constant 0 : index
    %c0_198 = arith.constant 0 : index
    %420 = vector.load %arg21[%c1_196, %c0_197, %c0_198] : memref<2x128x32xbf16, #tpu.memory_space<vmem>>, vector<1x128x32xbf16>
    %421 = vector.shape_cast %420 : vector<1x128x32xbf16> to vector<128x32xbf16>
    %422 = arith.truncf %419 : vector<48x128xf32> to vector<48x128xbf16>
    %cst_199 = arith.constant dense<0.000000e+00> : vector<48x32xf32>
    %423 = tpu.matmul %422, %421, %cst_199 {dimension_numbers = #tpu.dot_dimension_numbers<[1], [0], [0], [1], [0, 0, 1, 1], [], []>} : vector<48x128xbf16>, vector<128x32xbf16>, vector<48x32xf32> -> vector<48x32xf32>
    %424 = arith.addf %374, %423 : vector<48x32xf32>
    %c1_200 = arith.constant 1 : index
    %c0_201 = arith.constant 0 : index
    %c0_202 = arith.constant 0 : index
    %425 = vector.load %arg22[%c1_200, %c0_201, %c0_202] : memref<2x1x32xf32, #tpu.memory_space<vmem>>, vector<1x1x32xf32>
    %426 = vector.shape_cast %425 : vector<1x1x32xf32> to vector<1x32xf32>
    %427 = vector.broadcast %426 : vector<1x32xf32> to vector<48x32xf32>
    %428 = arith.addf %424, %427 : vector<48x32xf32>
    %c0_203 = arith.constant 0 : index
    %c0_204 = arith.constant 0 : index
    %429 = vector.load %arg23[%c0_203, %c0_204] : memref<1x32xf32, #tpu.memory_space<vmem>>, vector<1x32xf32>
    %c0_205 = arith.constant 0 : index
    %c0_206 = arith.constant 0 : index
    %430 = vector.load %arg24[%c0_205, %c0_206] : memref<1x32xf32, #tpu.memory_space<vmem>>, vector<1x32xf32>
    %cst_207 = arith.constant dense<0.000000e+00> : vector<48xf32>
    %431 = vector.multi_reduction <add>, %428, %cst_207 [1] : vector<48x32xf32> to vector<48xf32>
    %432 = vector.shape_cast %431 : vector<48xf32> to vector<48x1xf32>
    %cst_208 = arith.constant 3.200000e+01 : f32
    %433 = vector.broadcast %cst_208 : f32 to vector<48x1xf32>
    %434 = arith.divf %432, %433 : vector<48x1xf32>
    %435 = vector.broadcast %434 : vector<48x1xf32> to vector<48x32xf32>
    %436 = arith.subf %428, %435 : vector<48x32xf32>
    %437 = arith.mulf %436, %436 : vector<48x32xf32>
    %cst_209 = arith.constant dense<0.000000e+00> : vector<48xf32>
    %438 = vector.multi_reduction <add>, %437, %cst_209 [1] : vector<48x32xf32> to vector<48xf32>
    %439 = vector.shape_cast %438 : vector<48xf32> to vector<48x1xf32>
    %cst_210 = arith.constant 3.200000e+01 : f32
    %440 = vector.broadcast %cst_210 : f32 to vector<48x1xf32>
    %441 = arith.divf %439, %440 : vector<48x1xf32>
    %cst_211 = arith.constant 9.99999997E-7 : f32
    %442 = vector.broadcast %cst_211 : f32 to vector<48x1xf32>
    %443 = arith.addf %441, %442 : vector<48x1xf32>
    %444 = math.rsqrt %443 : vector<48x1xf32>
    %445 = vector.broadcast %444 : vector<48x1xf32> to vector<48x32xf32>
    %446 = arith.mulf %436, %445 : vector<48x32xf32>
    %447 = vector.broadcast %429 : vector<1x32xf32> to vector<48x32xf32>
    %448 = arith.mulf %446, %447 : vector<48x32xf32>
    %449 = vector.broadcast %430 : vector<1x32xf32> to vector<48x32xf32>
    %450 = arith.addf %448, %449 : vector<48x32xf32>
    %451 = vector.extract_strided_slice %450 {offsets = [0, 0], sizes = [16, 32], strides = [1, 1]} : vector<48x32xf32> to vector<16x32xf32>
    %c0_212 = arith.constant 0 : index
    %c0_213 = arith.constant 0 : index
    %c0_214 = arith.constant 0 : index
    %452 = vector.load %arg25[%c0_212, %c0_213, %c0_214] : memref<2x16x32xf32, #tpu.memory_space<vmem>>, vector<1x16x32xf32>
    %453 = vector.shape_cast %452 : vector<1x16x32xf32> to vector<16x32xf32>
    %454 = vector.shape_cast %451 : vector<16x32xf32> to vector<1x16x32xf32>
    tpu.vector_store %arg25[%c0_212, %c0_213, %c0_214], %454 {strides = array<i32>} : memref<2x16x32xf32, #tpu.memory_space<vmem>>, vector<1x16x32xf32>,
    %455 = vector.extract_strided_slice %450 {offsets = [24, 0], sizes = [16, 32], strides = [1, 1]} : vector<48x32xf32> to vector<16x32xf32>
    %c1_215 = arith.constant 1 : index
    %c0_216 = arith.constant 0 : index
    %c0_217 = arith.constant 0 : index
    %456 = vector.load %arg25[%c1_215, %c0_216, %c0_217] : memref<2x16x32xf32, #tpu.memory_space<vmem>>, vector<1x16x32xf32>
    %457 = vector.shape_cast %456 : vector<1x16x32xf32> to vector<16x32xf32>
    %458 = vector.shape_cast %455 : vector<16x32xf32> to vector<1x16x32xf32>
    tpu.vector_store %arg25[%c1_215, %c0_216, %c0_217], %458 {strides = array<i32>} : memref<2x16x32xf32, #tpu.memory_space<vmem>>, vector<1x16x32xf32>,
    return
  }
  func.func @transform_0(%arg0: i32) -> (i32, i32, i32) {
    %c0_i32 = arith.constant 0 : i32
    %c0_i32_0 = arith.constant 0 : i32
    %c0_i32_1 = arith.constant 0 : i32
    return %arg0, %c0_i32, %c0_i32_0 : i32, i32, i32
  }
  func.func @transform_1(%arg0: i32) -> (i32, i32) {
    %c0_i32 = arith.constant 0 : i32
    %c0_i32_0 = arith.constant 0 : i32
    %c0_i32_1 = arith.constant 0 : i32
    return %c0_i32, %c0_i32_0 : i32, i32
  }
  func.func @transform_2(%arg0: i32) -> (i32, i32) {
    %c0_i32 = arith.constant 0 : i32
    %c0_i32_0 = arith.constant 0 : i32
    %c0_i32_1 = arith.constant 0 : i32
    return %c0_i32, %c0_i32_0 : i32, i32
  }
  func.func @transform_3(%arg0: i32) -> (i32, i32) {
    %c0_i32 = arith.constant 0 : i32
    %c0_i32_0 = arith.constant 0 : i32
    %c0_i32_1 = arith.constant 0 : i32
    return %c0_i32, %c0_i32_0 : i32, i32
  }
  func.func @transform_4(%arg0: i32) -> (i32, i32, i32) {
    %c0_i32 = arith.constant 0 : i32
    %c0_i32_0 = arith.constant 0 : i32
    %c0_i32_1 = arith.constant 0 : i32
    %c0_i32_2 = arith.constant 0 : i32
    return %c0_i32, %c0_i32_0, %c0_i32_1 : i32, i32, i32
  }
  func.func @transform_5(%arg0: i32) -> (i32, i32) {
    %c0_i32 = arith.constant 0 : i32
    %c0_i32_0 = arith.constant 0 : i32
    %c0_i32_1 = arith.constant 0 : i32
    return %c0_i32, %c0_i32_0 : i32, i32
  }
  func.func @transform_6(%arg0: i32) -> (i32, i32, i32) {
    %c0_i32 = arith.constant 0 : i32
    %c0_i32_0 = arith.constant 0 : i32
    %c0_i32_1 = arith.constant 0 : i32
    %c0_i32_2 = arith.constant 0 : i32
    return %c0_i32, %c0_i32_0, %c0_i32_1 : i32, i32, i32
  }
  func.func @transform_7(%arg0: i32) -> (i32, i32, i32) {
    %c0_i32 = arith.constant 0 : i32
    %c0_i32_0 = arith.constant 0 : i32
    %c0_i32_1 = arith.constant 0 : i32
    %c0_i32_2 = arith.constant 0 : i32
    return %c0_i32, %c0_i32_0, %c0_i32_1 : i32, i32, i32
  }
  func.func @transform_8(%arg0: i32) -> (i32, i32, i32) {
    %c0_i32 = arith.constant 0 : i32
    %c0_i32_0 = arith.constant 0 : i32
    %c0_i32_1 = arith.constant 0 : i32
    %c0_i32_2 = arith.constant 0 : i32
    return %c0_i32, %c0_i32_0, %c0_i32_1 : i32, i32, i32
  }
  func.func @transform_9(%arg0: i32) -> (i32, i32, i32) {
    %c0_i32 = arith.constant 0 : i32
    %c0_i32_0 = arith.constant 0 : i32
    %c0_i32_1 = arith.constant 0 : i32
    %c0_i32_2 = arith.constant 0 : i32
    return %c0_i32, %c0_i32_0, %c0_i32_1 : i32, i32, i32
  }
  func.func @transform_10(%arg0: i32) -> (i32, i32, i32) {
    %c0_i32 = arith.constant 0 : i32
    %c0_i32_0 = arith.constant 0 : i32
    %c0_i32_1 = arith.constant 0 : i32
    %c0_i32_2 = arith.constant 0 : i32
    return %c0_i32, %c0_i32_0, %c0_i32_1 : i32, i32, i32
  }
  func.func @transform_11(%arg0: i32) -> (i32, i32, i32) {
    %c0_i32 = arith.constant 0 : i32
    %c0_i32_0 = arith.constant 0 : i32
    %c0_i32_1 = arith.constant 0 : i32
    %c0_i32_2 = arith.constant 0 : i32
    return %c0_i32, %c0_i32_0, %c0_i32_1 : i32, i32, i32
  }
  func.func @transform_12(%arg0: i32) -> (i32, i32, i32) {
    %c0_i32 = arith.constant 0 : i32
    %c0_i32_0 = arith.constant 0 : i32
    %c0_i32_1 = arith.constant 0 : i32
    %c0_i32_2 = arith.constant 0 : i32
    return %c0_i32, %c0_i32_0, %c0_i32_1 : i32, i32, i32
  }
  func.func @transform_13(%arg0: i32) -> (i32, i32, i32) {
    %c0_i32 = arith.constant 0 : i32
    %c0_i32_0 = arith.constant 0 : i32
    %c0_i32_1 = arith.constant 0 : i32
    %c0_i32_2 = arith.constant 0 : i32
    return %c0_i32, %c0_i32_0, %c0_i32_1 : i32, i32, i32
  }
  func.func @transform_14(%arg0: i32) -> (i32, i32, i32) {
    %c0_i32 = arith.constant 0 : i32
    %c0_i32_0 = arith.constant 0 : i32
    %c0_i32_1 = arith.constant 0 : i32
    %c0_i32_2 = arith.constant 0 : i32
    return %c0_i32, %c0_i32_0, %c0_i32_1 : i32, i32, i32
  }
  func.func @transform_15(%arg0: i32) -> (i32, i32, i32) {
    %c0_i32 = arith.constant 0 : i32
    %c0_i32_0 = arith.constant 0 : i32
    %c0_i32_1 = arith.constant 0 : i32
    %c0_i32_2 = arith.constant 0 : i32
    return %c0_i32, %c0_i32_0, %c0_i32_1 : i32, i32, i32
  }
  func.func @transform_16(%arg0: i32) -> (i32, i32, i32) {
    %c0_i32 = arith.constant 0 : i32
    %c0_i32_0 = arith.constant 0 : i32
    %c0_i32_1 = arith.constant 0 : i32
    %c0_i32_2 = arith.constant 0 : i32
    return %c0_i32, %c0_i32_0, %c0_i32_1 : i32, i32, i32
  }
  func.func @transform_17(%arg0: i32) -> (i32, i32, i32) {
    %c0_i32 = arith.constant 0 : i32
    %c0_i32_0 = arith.constant 0 : i32
    %c0_i32_1 = arith.constant 0 : i32
    %c0_i32_2 = arith.constant 0 : i32
    return %c0_i32, %c0_i32_0, %c0_i32_1 : i32, i32, i32
  }
  func.func @transform_18(%arg0: i32) -> (i32, i32, i32) {
    %c0_i32 = arith.constant 0 : i32
    %c0_i32_0 = arith.constant 0 : i32
    %c0_i32_1 = arith.constant 0 : i32
    %c0_i32_2 = arith.constant 0 : i32
    return %c0_i32, %c0_i32_0, %c0_i32_1 : i32, i32, i32
  }
  func.func @transform_19(%arg0: i32) -> (i32, i32, i32) {
    %c0_i32 = arith.constant 0 : i32
    %c0_i32_0 = arith.constant 0 : i32
    %c0_i32_1 = arith.constant 0 : i32
    %c0_i32_2 = arith.constant 0 : i32
    return %c0_i32, %c0_i32_0, %c0_i32_1 : i32, i32, i32
  }
  func.func @transform_20(%arg0: i32) -> (i32, i32, i32) {
    %c0_i32 = arith.constant 0 : i32
    %c0_i32_0 = arith.constant 0 : i32
    %c0_i32_1 = arith.constant 0 : i32
    %c0_i32_2 = arith.constant 0 : i32
    return %c0_i32, %c0_i32_0, %c0_i32_1 : i32, i32, i32
  }
  func.func @transform_21(%arg0: i32) -> (i32, i32, i32) {
    %c0_i32 = arith.constant 0 : i32
    %c0_i32_0 = arith.constant 0 : i32
    %c0_i32_1 = arith.constant 0 : i32
    %c0_i32_2 = arith.constant 0 : i32
    return %c0_i32, %c0_i32_0, %c0_i32_1 : i32, i32, i32
  }
  func.func @transform_22(%arg0: i32) -> (i32, i32) {
    %c0_i32 = arith.constant 0 : i32
    %c0_i32_0 = arith.constant 0 : i32
    %c0_i32_1 = arith.constant 0 : i32
    return %c0_i32, %c0_i32_0 : i32, i32
  }
  func.func @transform_23(%arg0: i32) -> (i32, i32) {
    %c0_i32 = arith.constant 0 : i32
    %c0_i32_0 = arith.constant 0 : i32
    %c0_i32_1 = arith.constant 0 : i32
    return %c0_i32, %c0_i32_0 : i32, i32
  }
  func.func @transform_24(%arg0: i32) -> (i32, i32, i32) {
    %c0_i32 = arith.constant 0 : i32
    %c0_i32_0 = arith.constant 0 : i32
    %c0_i32_1 = arith.constant 0 : i32
    return %arg0, %c0_i32, %c0_i32_0 : i32, i32, i32
  }
}

</mosaic_0001>

<bundles_post_ra>
// kernel: vit_forward.1
= control target key start
LH: loop header
LB: loop body
LE: loop exit
PB: predicated region body
PF: predicated region fallthrough
CT: control target
= control target key end

     0   :  { %s7002_s0 = inlined_call_operand.vmem [shape: f32[2,16,48], index: 0, kind: input, shape index: {}]   ;;  %s7003_s1 = inlined_call_operand.vmem [shape: bf16[48,32], index: 1, kind: input, shape index: {}]   ;;  %s7004_s2 = inlined_call_operand.vmem [shape: f32[32,32], index: 2, kind: input, shape index: {}]   ;;  %s7005_s3 = inlined_call_operand.vmem [shape: f32[8,32], index: 3, kind: input, shape index: {}]   ;;  %s7006_s4 = inlined_call_operand.vmem [shape: f32[4,1,32], index: 4, kind: input, shape index: {}]   ;;  %s7007_s5 = inlined_call_operand.vmem [shape: f32[48,48], index: 5, kind: input, shape index: {}]   ;;  %s7008_s6 = inlined_call_operand.vmem [shape: f32[2,1,32], index: 6, kind: input, shape index: {}]   ;;  %s7009_s7 = inlined_call_operand.vmem [shape: f32[2,1,32], index: 7, kind: input, shape index: {}]   ;;  %s7010_s8 = inlined_call_operand.vmem [shape: bf16[2,32,32], index: 8, kind: input, shape index: {}]   ;;  %s7011_s9 = inlined_call_operand.vmem [shape: f32[2,1,32], index: 9, kind: input, shape index: {}]   ;;  %s7012_s10 = inlined_call_operand.vmem [shape: bf16[2,32,32], index: 10, kind: input, shape index: {}]   ;;  %s7013_s11 = inlined_call_operand.vmem [shape: f32[2,1,32], index: 11, kind: input, shape index: {}]   ;;  %s7014_s12 = inlined_call_operand.vmem [shape: bf16[2,32,32], index: 12, kind: input, shape index: {}]   ;;  %s7015_s13 = inlined_call_operand.vmem [shape: f32[2,1,32], index: 13, kind: input, shape index: {}]   ;;  %s7016_s14 = inlined_call_operand.vmem [shape: bf16[2,32,32], index: 14, kind: input, shape index: {}]   ;;  %s7017_s15 = inlined_call_operand.vmem [shape: f32[2,1,32], index: 15, kind: input, shape index: {}]   ;;  %s7018_s16 = inlined_call_operand.vmem [shape: f32[2,1,32], index: 16, kind: input, shape index: {}]   ;;  %s7019_s17 = inlined_call_operand.vmem [shape: f32[2,1,32], index: 17, kind: input, shape index: {}]   ;;  %s7020_s18 = inlined_call_operand.vmem [shape: bf16[2,32,128], index: 18, kind: input, shape index: {}]   ;;  %s7021_s19 = inlined_call_operand.vmem [shape: f32[2,1,128], index: 19, kind: input, shape index: {}]   ;;  %s7022_s20 = inlined_call_operand.vmem [shape: bf16[2,128,32], index: 20, kind: input, shape index: {}]   ;;  %s7023_s21 = inlined_call_operand.vmem [shape: f32[2,1,32], index: 21, kind: input, shape index: {}]   ;;  %s7024_s22 = inlined_call_operand.vmem [shape: f32[1,32], index: 22, kind: input, shape index: {}]   ;;  %s7025_s23 = inlined_call_operand.vmem [shape: f32[1,32], index: 23, kind: input, shape index: {}]   ;;  %s7026_s24 = inlined_call_operand.hbm [shape: f32[2,16,32], index: 24, kind: output, shape index: {}]  }
   0x1   :  { %7043 = sst [smem:[#allocation9_spill]] %s7002_s0 }
   0x2   :  { %7044 = sst [smem:[#allocation10_spill]] %s7003_s1 }
   0x3   :  { %7045 = sst [smem:[#allocation11_spill]] %s7004_s2 }
   0x4   :  { %7046 = sst [smem:[#allocation12_spill]] %s7005_s3 }
   0x5   :  { %7047 = sst [smem:[#allocation13_spill]] %s7006_s4 }
   0x6   :  { %7048 = sst [smem:[#allocation14_spill]] %s7007_s5 }
   0x7   :  { %7049 = sst [smem:[#allocation15_spill]] %s7008_s6 }
   0x8   :  { %7050 = sst [smem:[#allocation16_spill]] %s7009_s7 }
   0x9   :  { %7051 = sst [smem:[#allocation17_spill]] %s7010_s8 }
   0xa   :  { %s7052_s27 = sld [smem:[#allocation10_spill]]  ;;  %vm178_vm0 = vcmask 261120   ;;  %vm113_vm1 = vcmask 392192  }
   0xb   :  { %s7053_s0 = sld [smem:[#allocation9_spill]] }
   0xc   :  { %s7054_s1 = sld [smem:[#allocation12_spill]] }
  0x10   :  { %v4691_v0 = vld [vmem:[%s7052_s27 + $0x10] sm:$0xff]   ;;  %v4692_v1 = vld [vmem:[%s7052_s27 + $0x8] sm:$0xff]   ;;  %v4693_v4 = vld [vmem:[%s7052_s27] sm:$0xff]  }
  0x11   :  { %4172 = vmatprep.subr.bf16.mxu1 %v4691_v0  ;;  %v79_v2 = vld [vmem:[%s7053_s0] sm:$0xff]  ;;  %v80_v3 = vld [vmem:[%s7053_s0 + $0x8] sm:$0xff]  ;;  %v81_v7 = vld [vmem:[%s7053_s0 + $0x10] sm:$0xff] }
  0x12   :  { %4173 = vmatpush3.bf16.msra.mxu1 %v4691_v0  ;;  %v89_v5 = vpack.c.bf16 %v80_v3, %v79_v2  ;;  %v169_v6 = vld [vmem:[%s7054_s1] sm:$0xff]  ;;  %v82_v8 = vld [vmem:[%s7053_s0 + $0x18] sm:$0xff] }
  0x13   :  { %4174 = vmatprep.subr.bf16.mxu1 %v4692_v1  ;;  %v185_v9 = vsel %vm178_vm0, %v169_v6, 0.0  ;;  %v90_v10 = vpack.c.bf16 %v82_v8, %v81_v7 }
  0x14   :  { %4178 = vmatprep.mubr.msk.bf16.mxu1 %vm113_vm1, %v89_v5  ;;  %186 = vadd.xlane.f32.xlu1 %v185_v9 }
  0x16   :  { %4175 = vmatpush3.bf16.msra.mxu1 %v4692_v1 }
  0x17   :  { %4176 = vmatprep.subr.bf16.mxu1 %v4693_v4 }
  0x1a   :  { %4177 = vmatpush3.bf16.msra.mxu1 %v4693_v4 }
  0x1d   :  { %4179 = vmatmul.mubr.msk.bf16.vlgmr.msra.gmra.mxu1 %vm113_vm1, %v90_v10 }
  0x1e   :  { %29 = vsyncpa [#allocation3], 0  ;;  %s7055_s29 = sld [smem:[#allocation11_spill]]  ;;  %v4695_v53 = vld [vmem:[%s7012_s10 + $0x8] sm:$0xff]   ;;  %v7036_v54 = vmov 0.0   ;;  %v4697_v56 = vld [vmem:[%s7012_s10] sm:$0xff]  }
  0x1f   :  { %s7057_s26 = sld [smem:[#allocation17_spill]]  ;;  %4182 = vmatprep.subr.bf16.mxu1 %v7036_v54  ;;  %4198 = vmatprep.subr.bf16.mxu0 %v7036_v54  ;;  %vm5034_vm2 = vmmov 0  }
  0x20   :  { %4199 = vmatpush3.bf16.msra.mxu0 %v4695_v53  ;;  %4186 = vmatprep.mubr.msk.bf16.mxu1 %vm5034_vm2, %v7036_v54  ;;  %s7058_s3 = sld [smem:[#allocation15_spill]] }
  0x21   :  { %4200 = vmatprep.subr.bf16.mxu0 %v7036_v54  ;;  %4202 = vmatprep.mubr.msk.bf16.mxu0 %vm5034_vm2, %v7036_v54  ;;  %s7059_s4 = sld [smem:[#allocation16_spill]] }
  0x22   :  { %s7060_s0 = sld [smem:[#allocation13_spill]] }
  0x23   :  { %s7061_s5 = sld [smem:[#allocation14_spill]] }
  0x24   :  { %v93_v11 = vld [vmem:[%s7055_s29 + $0x10] sm:$0xff]  ;;  %v91_v13 = vld [vmem:[%s7055_s29] sm:$0xff]  ;;  %v92_v19 = vld [vmem:[%s7055_s29 + $0x8] sm:$0xff]  ;;  %4201 = vmatpush3.bf16.msra.mxu0 %v4697_v56 }
  0x25   :  { %v94_v21 = vld [vmem:[%s7055_s29 + $0x18] sm:$0xff]  ;;  %v4694_v52 = vld [vmem:[%s7057_s26 + $0x8] sm:$0xff]   ;;  %v4696_v55 = vld [vmem:[%s7057_s26] sm:$0xff]   ;;  %4230 = vmatprep.subr.bf16.mxu0 %v7036_v54 }
  0x26   :  { %4183 = vmatpush3.bf16.msra.mxu1 %v4694_v52  ;;  %v3810_v10 = vld [vmem:[%s7058_s3] ss:$0 sm:$0xff] }
  0x27   :  { %4184 = vmatprep.subr.bf16.mxu1 %v7036_v54 }
  0x2a   :  { %4185 = vmatpush3.bf16.msra.mxu1 %v4696_v55 }
  0x2b   :  { %4214 = vmatprep.subr.bf16.mxu1 %v7036_v54 }
  0x9d   :  { %v187_v27 = vpop.xlane.xlu1 %186 }
  0x9e   :  { %v197_v28 = vmul.f32 0.03125, %v187_v27 }
  0xa0   :  { %v5218_v31 = vsub.f32 %v169_v6, %v197_v28  ;;  %v4698_v28 = vld [vmem:[%s7014_s12 + $0x8] sm:$0xff]  }
  0xa2   :  { %v207_v38 = vmul.f32 %v5218_v31, %v5218_v31 }
  0xa4   :  { %v216_v44 = vsel %vm178_vm0, %v207_v38, 0.0 }
  0xdd   :  { %v4180_v12 = vpop.f32.mrf.mxu1 }
  0xde   :  { %v5196_v14 = vadd.f32 %v4180_v12, %v93_v11 }
  0xdf   :  { %v154_v15 = vpop.f32.mrf.mxu1 }
  0xe0   :  { %v5198_v16 = vadd.f32 %v154_v15, %v91_v13  ;;  %v188_v17 = vsel %vm178_vm0, %v5196_v14, 0.0 }
  0xe1   :  { %189 = vadd.xlane.f32.xlu1 %v188_v17  ;;  %v4181_v18 = vpop.f32.mrf.mxu1  ;;  %v3811_v17 = vld [vmem:[%s7059_s4] ss:$0 sm:$0xff] }
  0xe2   :  { %v179_v20 = vsel %vm178_vm0, %v5198_v16, 0.0  ;;  %v5212_v24 = vadd.f32 %v4181_v18, %v94_v21 }
  0xe3   :  { %v157_v22 = vpop.f32.mrf.mxu1  ;;  %180 = vadd.xlane.f32.xlu0 %v179_v20 }
  0xe4   :  { %v5210_v23 = vadd.f32 %v157_v22, %v92_v19  ;;  %7056 = vst [vmem:[#allocation5_spill] sm:$0xff] %v5212_v24  ;;  %v191_v26 = vsel %vm178_vm0, %v5212_v24, 0.0 }
  0xe6   :  { %v182_v25 = vsel %vm178_vm0, %v5210_v23, 0.0 }
  0xe7   :  { %183 = vadd.xlane.f32.xlu0 %v182_v25 }
  0xeb   :  { %192 = vadd.xlane.f32.xlu0 %v191_v26 }
 0x16a   :  { %v190_v29 = vpop.xlane.xlu1 %189 }
 0x16b   :  { %v198_v33 = vmul.f32 0.03125, %v190_v29 }
 0x16c   :  { %v181_v30 = vpop.xlane.xlu0 %180 }
 0x16d   :  { %v195_v32 = vmul.f32 0.03125, %v181_v30  ;;  %v5224_v39 = vsub.f32 %v5196_v14, %v198_v33  ;;  %v4699_v33 = vld [vmem:[%s7014_s12] sm:$0xff]  }
 0x16f   :  { %v200_v34 = vsub.f32 %v5198_v16, %v195_v32  ;;  %v208_v48 = vmul.f32 %v5224_v39, %v5224_v39 }
 0x170   :  { %v184_v35 = vpop.xlane.xlu0 %183 }
 0x171   :  { %v196_v36 = vmul.f32 0.03125, %v184_v35  ;;  %v205_v37 = vmul.f32 %v200_v34, %v200_v34  ;;  %v219_v50 = vsel %vm178_vm0, %v208_v48, 0.0 }
 0x173   :  { %v201_v40 = vsub.f32 %v5210_v23, %v196_v36  ;;  %v210_v41 = vsel %vm178_vm0, %v205_v37, 0.0 }
 0x174   :  { %211 = vadd.xlane.f32.xlu1 %v210_v41  ;;  %v193_v42 = vpop.xlane.xlu0 %192 }
 0x175   :  { %v199_v43 = vmul.f32 0.03125, %v193_v42  ;;  %v206_v45 = vmul.f32 %v201_v40, %v201_v40 }
 0x177   :  { %v5230_v46 = vsub.f32 %v5212_v24, %v199_v43  ;;  %v213_v47 = vsel %vm178_vm0, %v206_v45, 0.0  ;;  %v5315_v45 = vld [vmem:[%s7060_s0 + $0x2] ss:$0 sm:$0xff] }
 0x178   :  { %217 = vadd.xlane.f32.xlu1 %v216_v44  ;;  %214 = vadd.xlane.f32.xlu0 %v213_v47 }
 0x179   :  { %v209_v49 = vmul.f32 %v5230_v46, %v5230_v46 }
 0x17b   :  { %v222_v51 = vsel %vm178_vm0, %v209_v49, 0.0 }
 0x17c   :  { %220 = vadd.xlane.f32.xlu0 %v219_v50  ;;  %223 = vadd.xlane.f32.xlu1 %v222_v51 }
 0x1fd   :  { %v212_v57 = vpop.xlane.xlu1 %211 }
 0x1fe   :  { %v225_v58 = vmul.f32 0.03125, %v212_v57 }
 0x200   :  { %v230_v59 = vadd.f32 1e-06, %v225_v58 }
 0x201   :  { %v218_v60 = vpop.xlane.xlu1 %217  ;;  %v215_v61 = vpop.xlane.xlu0 %214 }
 0x202   :  { %4730 = vrsqrt.f32 %v230_v59  ;;  %v227_v62 = vmul.f32 0.03125, %v218_v60  ;;  %v226_v63 = vmul.f32 0.03125, %v215_v61 }
 0x204   :  { %v231_v0 = vadd.f32 1e-06, %v226_v63  ;;  %v232_v1 = vadd.f32 1e-06, %v227_v62 }
 0x205   :  { %v224_v2 = vpop.xlane.xlu1 %223  ;;  %v221_v3 = vpop.xlane.xlu0 %220 }
 0x206   :  { %v228_v4 = vmul.f32 0.03125, %v221_v3  ;;  %4732 = vrsqrt.f32 %v231_v0  ;;  %v229_v5 = vmul.f32 0.03125, %v224_v2 }
 0x207   :  { %4734 = vrsqrt.f32 %v232_v1 }
 0x208   :  { %v233_v6 = vadd.f32 1e-06, %v228_v4  ;;  %v234_v7 = vadd.f32 1e-06, %v229_v5 }
 0x20a   :  { %4736 = vrsqrt.f32 %v233_v6 }
 0x20b   :  { %4738 = vrsqrt.f32 %v234_v7 }
 0x20f   :  { %v4731_v8 = vpop.eup %4730 }
 0x210   :  { %v240_v9 = vmul.f32 %v4731_v8, %v200_v34 }
 0x212   :  { %v251_v13 = vmul.f32 %v3810_v10, %v240_v9 }
 0x213   :  { %v4733_v11 = vpop.eup %4732 }
 0x214   :  { %v241_v12 = vmul.f32 %v4733_v11, %v201_v40  ;;  %v4735_v15 = vpop.eup %4734  ;;  %v262_v20 = vadd.f32 %v3811_v17, %v251_v13 }
 0x215   :  { %v242_v22 = vmul.f32 %v4735_v15, %v5218_v31 }
 0x216   :  { %v252_v18 = vmul.f32 %v3810_v10, %v241_v12 }
 0x217   :  { %v4737_v19 = vpop.eup %4736  ;;  %v253_v30 = vmul.f32 %v3810_v10, %v242_v22 }
 0x218   :  { %v263_v21 = vadd.f32 %v3811_v17, %v252_v18  ;;  %v243_v25 = vmul.f32 %v4737_v19, %v5224_v39  ;;  %v4739_v29 = vpop.eup %4738  ;;  %v3812_v39 = vld [vmem:[%s7011_s9] ss:$0 sm:$0xff] }
 0x219   :  { %v244_v32 = vmul.f32 %v4739_v29, %v5230_v46  ;;  %v264_v34 = vadd.f32 %v3811_v17, %v253_v30  ;;  %v5320_v46 = vld [vmem:[%s7060_s0 + $0x3] ss:$0 sm:$0xff]  ;;  %v3818_v18 = vld [vmem:[%s7013_s11] ss:$0 sm:$0xff] }
 0x21a   :  { %v271_v26 = vpack.c.bf16 %v263_v21, %v262_v20  ;;  %v254_v27 = vmul.f32 %v3810_v10, %v243_v25 }
 0x21b   :  { %v255_v36 = vmul.f32 %v3810_v10, %v244_v32 }
 0x21c   :  { %4187 = vmatmul.mubr.msk.bf16.vlgmr.msra.gmra.mxu1 %vm178_vm0, %v271_v26  ;;  %4203 = vmatmul.mubr.msk.bf16.vlgmr.msra.gmra.mxu0 %vm178_vm0, %v271_v26  ;;  %v265_v31 = vadd.f32 %v3811_v17, %v254_v27 }
 0x21d   :  { %4190 = vmatprep.mubr.msk.bf16.mxu1 %vm5034_vm2, %v7036_v54  ;;  %4206 = vmatprep.mubr.msk.bf16.mxu0 %vm5034_vm2, %v7036_v54  ;;  %v266_v37 = vadd.f32 %v3811_v17, %v255_v36 }
 0x21e   :  { %4215 = vmatpush3.bf16.msra.mxu1 %v4698_v28  ;;  %v272_v35 = vpack.c.bf16 %v265_v31, %v264_v34 }
 0x21f   :  { %4216 = vmatprep.subr.bf16.mxu1 %v7036_v54  ;;  %v273_v38 = vpack.c.bf16 %v264_v34, %v266_v37 }
 0x222   :  { %4217 = vmatpush3.bf16.msra.mxu1 %v4699_v33  ;;  %v3824_v33 = vld [vmem:[%s7015_s13] ss:$0 sm:$0xff] }
 0x223   :  { %4248 = vmatprep.subr.bf16.mxu1 %v7036_v54 }
 0x224   :  { %4191 = vmatmul.mubr.msk.bf16.gmra.mxu1 %vm178_vm0, %v272_v35  ;;  %4207 = vmatmul.mubr.msk.bf16.gmra.mxu0 %vm178_vm0, %v272_v35 }
 0x225   :  { %4194 = vmatprep.mubr.msk.bf16.mxu1 %vm5034_vm2, %v7036_v54  ;;  %4210 = vmatprep.mubr.msk.bf16.mxu0 %vm5034_vm2, %v7036_v54 }
 0x22c   :  { %4195 = vmatmul.mubr.msk.bf16.gmra.mxu1 %vm178_vm0, %v273_v38  ;;  %4211 = vmatmul.mubr.msk.bf16.gmra.mxu0 %vm178_vm0, %v273_v38 }
 0x22d   :  { %4218 = vmatprep.mubr.msk.bf16.mxu1 %vm5034_vm2, %v7036_v54  ;;  %4236 = vmatprep.mubr.msk.bf16.mxu0 %vm5034_vm2, %v7036_v54 }
 0x234   :  { %4219 = vmatmul.mubr.msk.bf16.vlgmr.msra.gmra.mxu1 %vm178_vm0, %v271_v26 }
 0x235   :  { %4222 = vmatprep.mubr.msk.bf16.mxu1 %vm5034_vm2, %v7036_v54 }
 0x23c   :  { %4223 = vmatmul.mubr.msk.bf16.gmra.mxu1 %vm178_vm0, %v272_v35 }
 0x23d   :  { %4226 = vmatprep.mubr.msk.bf16.mxu1 %vm5034_vm2, %v7036_v54 }
 0x244   :  { %4227 = vmatmul.mubr.msk.bf16.gmra.mxu1 %vm178_vm0, %v273_v38 }
 0x245   :  { %4254 = vmatprep.mubr.msk.bf16.mxu1 %vm5034_vm2, %v7036_v54 }
 0x2dc   :  { %v336_v40 = vpop.f32.mrf.mxu1  ;;  %v5308_v41 = vpop.f32.mrf.mxu0 }
 0x2dd   :  { %v5310_v44 = vadd.f32 %v3812_v39, %v336_v40 }
 0x2de   :  { %v4188_v42 = vpop.f32.mrf.mxu1  ;;  %v4204_v43 = vpop.f32.mrf.mxu0 }
 0x2df   :  { %v5328_v52 = vmul.f32 %v5315_v45, %v5310_v44  ;;  %v5332_v53 = vmul.f32 %v5320_v46, %v5310_v44 }
 0x2e0   :  { %v339_v47 = vpop.f32.mrf.mxu1  ;;  %v5322_v48 = vpop.f32.mrf.mxu0 }
 0x2e1   :  { %v5324_v49 = vadd.f32 %v3812_v39, %v339_v47 }
 0x2e2   :  { %v4189_v50 = vpop.f32.mrf.mxu1  ;;  %v4205_v51 = vpop.f32.mrf.mxu0 }
 0x2e3   :  { %v5336_v55 = vmul.f32 %v5315_v45, %v5324_v49  ;;  %v5340_v56 = vmul.f32 %v5320_v46, %v5324_v49 }
 0x2e4   :  { %v344_v57 = vpop.f32.mrf.mxu1  ;;  %v424_v58 = vpop.f32.mrf.mxu0 }
 0x2e5   :  { %v5346_v63 = vadd.f32 %v3812_v39, %v344_v57  ;;  %v425_v42 = vadd.f32 %v3818_v18, %v424_v58 }
 0x2e6   :  { %v4192_v61 = vpop.f32.mrf.mxu1  ;;  %v4208_v62 = vpop.f32.mrf.mxu0 }
 0x2e7   :  { %v5360_v7 = vmul.f32 %v5315_v45, %v5346_v63  ;;  %v5364_v8 = vmul.f32 %v5320_v46, %v5346_v63 }
 0x2e8   :  { %v347_v0 = vpop.f32.mrf.mxu1  ;;  %v427_v1 = vpop.f32.mrf.mxu0 }
 0x2e9   :  { %v5348_v2 = vadd.f32 %v3812_v39, %v347_v0  ;;  %v428_v36 = vadd.f32 %v3818_v18, %v427_v1 }
 0x2ea   :  { %v4193_v3 = vpop.f32.mrf.mxu1  ;;  %v4209_v4 = vpop.f32.mrf.mxu0 }
 0x2eb   :  { %v5352_v5 = vmul.f32 %v5315_v45, %v5348_v2  ;;  %v5356_v6 = vmul.f32 %v5320_v46, %v5348_v2  ;;  %v536_v50 = vpack.c.bf16 %v428_v36, %v425_v42  ;;  %v420_v3 = vadd.f32 %v3818_v18, %v5322_v48  ;;  %v5462_v36 = vld [vmem:[%s7060_s0 + $0x1] ss:$0 sm:$0xff] }
 0x2ec   :  { %v352_v9 = vpop.f32.mrf.mxu1  ;;  %v432_v10 = vpop.f32.mrf.mxu0 }
 0x2ed   :  { %v5370_v17 = vadd.f32 %v3812_v39, %v352_v9  ;;  %v433_v25 = vadd.f32 %v3818_v18, %v432_v10  ;;  %v5431_v9 = vsel %vm178_vm0, %v536_v50, 0 }
 0x2ee   :  { %v4196_v11 = vpop.f32.mrf.mxu1  ;;  %v4212_v12 = vpop.f32.mrf.mxu0 }
 0x2ef   :  { %v5379_v28 = vmul.f32 %v5315_v45, %v5370_v17  ;;  %v5391_v31 = vmul.f32 %v5320_v46, %v5370_v17  ;;  %v417_v12 = vadd.f32 %v3818_v18, %v5308_v41 }
 0x2f0   :  { %v355_v19 = vpop.f32.mrf.mxu1  ;;  %v435_v20 = vpop.f32.mrf.mxu0 }
 0x2f1   :  { %v5375_v21 = vadd.f32 %v3812_v39, %v355_v19  ;;  %v436_v22 = vadd.f32 %v3818_v18, %v435_v20  ;;  %v535_v48 = vpack.c.bf16 %v420_v3, %v417_v12  ;;  %v699_v12 = vmul.f32 %v5462_v36, %v5310_v44 }
 0x2f2   :  { %v4197_v26 = vpop.f32.mrf.mxu1  ;;  %v4213_v27 = vpop.f32.mrf.mxu0 }
 0x2f3   :  { %v5383_v29 = vmul.f32 %v5315_v45, %v5375_v21  ;;  %v5387_v30 = vmul.f32 %v5320_v46, %v5375_v21  ;;  %v537_v32 = vpack.c.bf16 %v436_v22, %v433_v25 }
 0x2f4   :  { %v496_v34 = vpop.f32.mrf.mxu1 }
 0x2f5   :  { %v5399_v38 = vsel %vm178_vm0, %v537_v32, 0  ;;  %v5403_v40 = vadd.f32 %v3824_v33, %v496_v34  ;;  %v5457_v34 = vld [vmem:[%s7060_s0] ss:$0 sm:$0xff] }
 0x2f6   :  { %v4220_v37 = vpop.f32.mrf.mxu1  ;;  %4231 = vmatpush3.bf16.xpose.msra.mxu0 %v5399_v38  ;;  %4249 = vmatpush3.bf16.xpose.msra.mxu1 %v5399_v38 }
 0x2f7   :  { %4232 = vmatprep.subr.bf16.mxu0 %v7036_v54  ;;  %4250 = vmatprep.subr.bf16.mxu1 %v7036_v54  ;;  %v5413_v57 = vmul.f32 %v5315_v45, %v5403_v40  ;;  %v5425_v62 = vmul.f32 %v5320_v46, %v5403_v40 }
 0x2f8   :  { %v499_v43 = vpop.f32.mrf.mxu1 }
 0x2f9   :  { %v5408_v47 = vadd.f32 %v3824_v33, %v499_v43  ;;  %v5465_v43 = vsel %vm178_vm0, %v535_v48, 0 }
 0x2fa   :  { %v4221_v51 = vpop.f32.mrf.mxu1 }
 0x2fb   :  { %v5417_v61 = vmul.f32 %v5315_v45, %v5408_v47  ;;  %v5421_v58 = vmul.f32 %v5320_v46, %v5408_v47  ;;  %v527_v51 = vmul.f32 %v5457_v34, %v5324_v49 }
 0x2fc   :  { %v504_v0 = vpop.f32.mrf.mxu1 }
 0x2fd   :  { %v505_v11 = vadd.f32 %v3824_v33, %v504_v0  ;;  %v700_v0 = vmul.f32 %v5462_v36, %v5324_v49 }
 0x2fe   :  { %v4224_v4 = vpop.f32.mrf.mxu1  ;;  %4233 = vmatpush3.bf16.xpose.msra.mxu0 %v5431_v9  ;;  %4251 = vmatpush3.bf16.xpose.msra.mxu1 %v5431_v9 }
 0x2ff   :  { %4234 = vmatprep.subr.bf16.mxu0 %v7036_v54  ;;  %4252 = vmatprep.subr.bf16.mxu1 %v7036_v54  ;;  %v5441_v25 = vmul.f32 %v5315_v45, %v505_v11  ;;  %v5450_v41 = vmul.f32 %v5320_v46, %v505_v11  ;;  %v526_v4 = vmul.f32 %v5457_v34, %v5310_v44 }
 0x300   :  { %v507_v19 = vpop.f32.mrf.mxu1  ;;  %v705_v1 = vpack.c.bf16 %v700_v0, %v699_v12  ;;  %v530_v12 = vmul.f32 %v5457_v34, %v5370_v17 }
 0x301   :  { %v508_v20 = vadd.f32 %v3824_v33, %v507_v19 }
 0x302   :  { %v4225_v22 = vpop.f32.mrf.mxu1 }
 0x303   :  { %v5444_v26 = vmul.f32 %v5315_v45, %v508_v20  ;;  %v5447_v27 = vmul.f32 %v5320_v46, %v508_v20  ;;  %v843_v32 = vmul.f32 %v5462_v36, %v508_v20  ;;  %v682_v60 = vmul.f32 %v5457_v34, %v508_v20 }
 0x304   :  { %v512_v18 = vpop.f32.mrf.mxu1  ;;  %v841_v20 = vmul.f32 %v5462_v36, %v5408_v47 }
 0x305   :  { %v513_v37 = vadd.f32 %v3824_v33, %v512_v18 }
 0x306   :  { %v4228_v42 = vpop.f32.mrf.mxu1  ;;  %4235 = vmatpush3.bf16.xpose.msra.mxu0 %v5465_v43  ;;  %4253 = vmatpush3.bf16.xpose.msra.mxu1 %v5465_v43 }
 0x307   :  { %4266 = vmatprep.subr.bf16.mxu0 %v7036_v54  ;;  %4284 = vmatprep.subr.bf16.mxu1 %v7036_v54  ;;  %v683_v48 = vmul.f32 %v5457_v34, %v513_v37  ;;  %v844_v22 = vmul.f32 %v5462_v36, %v513_v37  ;;  %v5484_v49 = vmul.f32 %v5315_v45, %v513_v37 }
 0x308   :  { %v515_v3 = vpop.f32.mrf.mxu1  ;;  %v5487_v18 = vmul.f32 %v5320_v46, %v513_v37 }
 0x309   :  { %v516_v19 = vadd.f32 %v3824_v33, %v515_v3  ;;  %v532_v3 = vpack.c.bf16 %v527_v51, %v526_v4 }
 0x30a   :  { %v4229_v42 = vpop.f32.mrf.mxu1 }
 0x30b   :  { %v684_v10 = vmul.f32 %v5457_v34, %v516_v19  ;;  %v845_v50 = vmul.f32 %v5462_v36, %v516_v19  ;;  %v5492_v44 = vmul.f32 %v5315_v45, %v516_v19  ;;  %v5495_v33 = vmul.f32 %v5320_v46, %v516_v19 }
 0x30c   :  { %v842_v45 = vmul.f32 %v5462_v36, %v505_v11  ;;  %v529_v46 = vmul.f32 %v5457_v34, %v5348_v2  ;;  %v703_v19 = vmul.f32 %v5462_v36, %v5370_v17 }
 0x30d   :  { %v851_v39 = vpack.c.bf16 %v845_v50, %v844_v22  ;;  %v690_v15 = vpack.c.bf16 %v684_v10, %v683_v48  ;;  %4237 = vmatmul.mubr.msk.bf16.vlgmr.msra.gmra.mxu0 %vm178_vm0, %v532_v3  ;;  %4255 = vmatmul.mubr.msk.bf16.vlgmr.msra.gmra.mxu1 %vm178_vm0, %v705_v1  ;;  %v681_v10 = vmul.f32 %v5457_v34, %v505_v11 }
 0x30e   :  { %v702_v50 = vmul.f32 %v5462_v36, %v5348_v2  ;;  %v850_v51 = vpack.c.bf16 %v843_v32, %v842_v45  ;;  %4240 = vmatprep.mubr.msk.bf16.mxu0 %vm5034_vm2, %v7036_v54  ;;  %4258 = vmatprep.mubr.msk.bf16.mxu1 %vm5034_vm2, %v7036_v54  ;;  %v701_v2 = vmul.f32 %v5462_v36, %v5346_v63 }
 0x30f   :  { %4267 = vmatpush3.bf16.msra.mxu0 %v851_v39  ;;  %4285 = vmatpush3.bf16.msra.mxu1 %v690_v15  ;;  %v528_v39 = vmul.f32 %v5457_v34, %v5346_v63  ;;  %v680_v15 = vmul.f32 %v5457_v34, %v5408_v47  ;;  %v689_v1 = vpack.c.bf16 %v682_v60, %v681_v10 }
 0x310   :  { %4268 = vmatprep.subr.bf16.mxu0 %v7036_v54  ;;  %4286 = vmatprep.subr.bf16.mxu1 %v7036_v54  ;;  %v840_v11 = vmul.f32 %v5462_v36, %v5403_v40  ;;  %v679_v32 = vmul.f32 %v5457_v34, %v5403_v40  ;;  %v706_v4 = vpack.c.bf16 %v702_v50, %v701_v2 }
 0x311   :  { %v533_v0 = vpack.c.bf16 %v529_v46, %v528_v39  ;;  %v531_v63 = vmul.f32 %v5457_v34, %v5375_v21  ;;  %v704_v40 = vmul.f32 %v5462_v36, %v5375_v21  ;;  %v5556_v21 = vld [vmem:[%s7061_s5] sm:$0xff]  ;;  %v5564_v46 = vld [vmem:[%s7061_s5 + $0x8] sm:$0xff] }
 0x312   :  { %v849_v60 = vpack.c.bf16 %v841_v20, %v840_v11  ;;  %v688_v47 = vpack.c.bf16 %v680_v15, %v679_v32 }
 0x313   :  { %4269 = vmatpush3.bf16.msra.mxu0 %v850_v51  ;;  %4287 = vmatpush3.bf16.msra.mxu1 %v689_v1  ;;  %v534_v48 = vpack.c.bf16 %v531_v63, %v530_v12  ;;  %v707_v22 = vpack.c.bf16 %v704_v40, %v703_v19  ;;  %v5573_v1 = vld [vmem:[%s7061_s5 + $0x10] sm:$0xff] }
 0x314   :  { %4270 = vmatprep.subr.bf16.mxu0 %v7036_v54  ;;  %4288 = vmatprep.subr.bf16.mxu1 %v7036_v54 }
 0x315   :  { %4241 = vmatmul.mubr.msk.bf16.gmra.mxu0 %vm178_vm0, %v533_v0  ;;  %4259 = vmatmul.mubr.msk.bf16.gmra.mxu1 %vm178_vm0, %v706_v4 }
 0x316   :  { %4244 = vmatprep.mubr.msk.bf16.mxu0 %vm5034_vm2, %v7036_v54  ;;  %4262 = vmatprep.mubr.msk.bf16.mxu1 %vm5034_vm2, %v7036_v54 }
 0x317   :  { %4271 = vmatpush3.bf16.msra.mxu0 %v849_v60  ;;  %4289 = vmatpush3.bf16.msra.mxu1 %v688_v47  ;;  %v5582_v47 = vld [vmem:[%s7061_s5 + $0x18] sm:$0xff] }
 0x318   :  { %4302 = vmatprep.subr.bf16.mxu0 %v7036_v54  ;;  %4320 = vmatprep.subr.bf16.mxu1 %v7036_v54 }
 0x31d   :  { %4245 = vmatmul.mubr.msk.bf16.gmra.mxu0 %vm178_vm0, %v534_v48  ;;  %4263 = vmatmul.mubr.msk.bf16.gmra.mxu1 %vm178_vm0, %v707_v22 }
 0x31e   :  { %4272 = vmatprep.mubr.msk.bf16.mxu0 %vm5034_vm2, %v7036_v54  ;;  %4290 = vmatprep.mubr.msk.bf16.mxu1 %vm5034_vm2, %v7036_v54 }
 0x3cd   :  { %v5558_v34 = vpop.f32.mrf.mxu0  ;;  %v751_v17 = vpop.f32.mrf.mxu1 }
 0x3ce   :  { %v752_v36 = vadd.f32 %v751_v17, %v5556_v21  ;;  %v5591_v17 = vld [vmem:[%s7061_s5 + $0x20] sm:$0xff] }
 0x3cf   :  { %v4238_v3 = vpop.f32.mrf.mxu0  ;;  %v4256_v45 = vpop.f32.mrf.mxu1 }
 0x3d0   :  { %v774_v50 = vsel %vm113_vm1, %v752_v36, -inf }
 0x3d1   :  { %v5566_v10 = vpop.f32.mrf.mxu0  ;;  %775 = vmax.xlane.f32.xlu0 %v774_v50  ;;  %v754_v20 = vpop.f32.mrf.mxu1 }
 0x3d2   :  { %v755_v51 = vadd.f32 %v754_v20, %v5564_v46 }
 0x3d3   :  { %v4239_v39 = vpop.f32.mrf.mxu0  ;;  %v4257_v15 = vpop.f32.mrf.mxu1 }
 0x3d4   :  { %v777_v11 = vsel %vm113_vm1, %v755_v51, -inf }
 0x3d5   :  { %v5575_v2 = vpop.f32.mrf.mxu0  ;;  %778 = vmax.xlane.f32.xlu1 %v777_v11  ;;  %v759_v32 = vpop.f32.mrf.mxu1  ;;  %v5600_v11 = vld [vmem:[%s7061_s5 + $0x28] sm:$0xff] }
 0x3d6   :  { %v760_v0 = vadd.f32 %v759_v32, %v5573_v1 }
 0x3d7   :  { %v4242_v4 = vpop.f32.mrf.mxu0  ;;  %v4260_v60 = vpop.f32.mrf.mxu1 }
 0x3d8   :  { %v780_v40 = vsel %vm113_vm1, %v760_v0, -inf }
 0x3d9   :  { %v5584_v63 = vpop.f32.mrf.mxu0  ;;  %781 = vmax.xlane.f32.xlu0 %v780_v40  ;;  %v762_v12 = vpop.f32.mrf.mxu1 }
 0x3da   :  { %v763_v19 = vadd.f32 %v762_v12, %v5582_v47 }
 0x3db   :  { %v4243_v48 = vpop.f32.mrf.mxu0  ;;  %v4261_v22 = vpop.f32.mrf.mxu1 }
 0x3dc   :  { %v783_v45 = vsel %vm113_vm1, %v763_v19, -inf }
 0x3dd   :  { %v5593_v3 = vpop.f32.mrf.mxu0  ;;  %784 = vmax.xlane.f32.xlu1 %v783_v45  ;;  %v767_v50 = vpop.f32.mrf.mxu1 }
 0x3de   :  { %v768_v20 = vadd.f32 %v767_v50, %v5591_v17 }
 0x3df   :  { %v4246_v39 = vpop.f32.mrf.mxu0  ;;  %v4264_v15 = vpop.f32.mrf.mxu1 }
 0x3e0   :  { %v786_v4 = vsel %vm113_vm1, %v768_v20, -inf }
 0x3e1   :  { %v609_v32 = vpop.f32.mrf.mxu0  ;;  %787 = vmax.xlane.f32.xlu0 %v786_v4  ;;  %v770_v60 = vpop.f32.mrf.mxu1 }
 0x3e2   :  { %v771_v40 = vadd.f32 %v770_v60, %v5600_v11 }
 0x3e3   :  { %v4247_v12 = vpop.f32.mrf.mxu0  ;;  %v4265_v48 = vpop.f32.mrf.mxu1 }
 0x3e4   :  { %v789_v22 = vsel %vm113_vm1, %v771_v40, -inf }
 0x3e5   :  { %790 = vmax.xlane.f32.xlu1 %v789_v22 }
 0x45a   :  { %v776_v45 = vpop.xlane.xlu0 %775 }
 0x45b   :  { %v792_v50 = vsub.f32 %v752_v36, %v776_v45 }
 0x45d   :  { %v798_v39 = vmul.f32 1.442695, %v792_v50 }
 0x45e   :  { %v779_v15 = vpop.xlane.xlu1 %778 }
 0x45f   :  { %4740 = vpow2.f32 %v798_v39  ;;  %v793_v42 = vsub.f32 %v755_v51, %v779_v15  ;;  %v5616_v39 = vadd.f32 %v5566_v10, %v5564_v46  ;;  %v5620_v15 = vadd.f32 %v5575_v2, %v5573_v1 }
 0x461   :  { %v800_v37 = vmul.f32 1.442695, %v793_v42  ;;  %v619_v10 = vsel %vm113_vm1, %v5620_v15, -inf  ;;  %v616_v2 = vsel %vm113_vm1, %v5616_v39, -inf }
 0x462   :  { %v782_v35 = vpop.xlane.xlu0 %781 }
 0x463   :  { %4742 = vpow2.f32 %v800_v37  ;;  %v794_v13 = vsub.f32 %v760_v0, %v782_v35 }
 0x465   :  { %v802_v59 = vmul.f32 1.442695, %v794_v13 }
 0x466   :  { %v785_v4 = vpop.xlane.xlu1 %784 }
 0x467   :  { %4744 = vpow2.f32 %v802_v59  ;;  %v795_v54 = vsub.f32 %v763_v19, %v785_v4  ;;  %v5611_v19 = vadd.f32 %v5558_v34, %v5556_v21  ;;  %v5627_v34 = vadd.f32 %v5584_v63, %v5582_v47 }
 0x469   :  { %v804_v60 = vmul.f32 1.442695, %v795_v54  ;;  %v613_v4 = vsel %vm113_vm1, %v5611_v19, -inf  ;;  %v622_v63 = vsel %vm113_vm1, %v5627_v34, -inf }
 0x46a   :  { %v788_v12 = vpop.xlane.xlu0 %787 }
 0x46b   :  { %4746 = vpow2.f32 %v804_v60  ;;  %v796_v48 = vsub.f32 %v768_v20, %v788_v12  ;;  %v5631_v12 = vadd.f32 %v5593_v3, %v5591_v17 }
 0x46c   :  { %v4741_v24 = vpop.eup %4740 }
 0x46d   :  { %v806_v22 = vmul.f32 1.442695, %v796_v48  ;;  %v810_v36 = vsel %vm113_vm1, %v4741_v24, 0.0  ;;  %v5638_v48 = vadd.f32 %v609_v32, %v5600_v11 }
 0x46e   :  { %811 = vadd.xlane.f32.xlu0 %v810_v36  ;;  %v791_v45 = vpop.xlane.xlu1 %790 }
 0x46f   :  { %4748 = vpow2.f32 %v806_v22  ;;  %v797_v51 = vsub.f32 %v771_v40, %v791_v45  ;;  %v625_v22 = vsel %vm113_vm1, %v5631_v12, -inf  ;;  %v628_v3 = vsel %vm113_vm1, %v5638_v48, -inf }
 0x470   :  { %v4743_v42 = vpop.eup %4742 }
 0x471   :  { %v808_v50 = vmul.f32 1.442695, %v797_v51  ;;  %v813_v35 = vsel %vm113_vm1, %v4743_v42, 0.0 }
 0x472   :  { %814 = vadd.xlane.f32.xlu1 %v813_v35 }
 0x473   :  { %4750 = vpow2.f32 %v808_v50 }
 0x474   :  { %v4745_v59 = vpop.eup %4744 }
 0x475   :  { %v816_v54 = vsel %vm113_vm1, %v4745_v59, 0.0 }
 0x476   :  { %817 = vadd.xlane.f32.xlu0 %v816_v54 }
 0x478   :  { %v4747_v13 = vpop.eup %4746 }
 0x479   :  { %v819_v37 = vsel %vm113_vm1, %v4747_v13, 0.0 }
 0x47a   :  { %820 = vadd.xlane.f32.xlu1 %v819_v37 }
 0x47c   :  { %v4749_v0 = vpop.eup %4748 }
 0x47d   :  { %v822_v20 = vsel %vm113_vm1, %v4749_v0, 0.0 }
 0x47e   :  { %823 = vadd.xlane.f32.xlu0 %v822_v20 }
 0x480   :  { %v4751_v40 = vpop.eup %4750 }
 0x481   :  { %v825_v60 = vsel %vm113_vm1, %v4751_v40, 0.0 }
 0x482   :  { %614 = vmax.xlane.f32.xlu0 %v613_v4  ;;  %826 = vadd.xlane.f32.xlu1 %v825_v60 }
 0x486   :  { %620 = vmax.xlane.f32.xlu0 %v619_v10  ;;  %617 = vmax.xlane.f32.xlu1 %v616_v2  ;;  %v7062_v2 = vmov 0.0  }
 0x48a   :  { %626 = vmax.xlane.f32.xlu0 %v625_v22  ;;  %623 = vmax.xlane.f32.xlu1 %v622_v63 }
 0x48e   :  { %629 = vmax.xlane.f32.xlu1 %v628_v3 }
 0x4f7   :  { %v812_v36 = vpop.xlane.xlu0 %811 }
 0x4f8   :  { %4752 = vrcp.f32 %v812_v36 }
 0x4fb   :  { %v815_v45 = vpop.xlane.xlu1 %814 }
 0x4fc   :  { %4754 = vrcp.f32 %v815_v45 }
 0x4ff   :  { %v818_v51 = vpop.xlane.xlu0 %817 }
 0x500   :  { %4756 = vrcp.f32 %v818_v51 }
 0x503   :  { %v821_v32 = vpop.xlane.xlu1 %820 }
 0x504   :  { %4758 = vrcp.f32 %v821_v32 }
 0x505   :  { %v4753_v50 = vpop.eup %4752 }
 0x506   :  { %v834_v37 = vmul.f32 %v4753_v50, %v4741_v24 }
 0x507   :  { %v824_v35 = vpop.xlane.xlu0 %823 }
 0x508   :  { %4760 = vrcp.f32 %v824_v35 }
 0x509   :  { %v4755_v54 = vpop.eup %4754 }
 0x50a   :  { %v835_v20 = vmul.f32 %v4755_v54, %v4743_v42 }
 0x50b   :  { %v827_v4 = vpop.xlane.xlu1 %826 }
 0x50c   :  { %4762 = vrcp.f32 %v827_v4  ;;  %v846_v60 = vpack.c.bf16 %v835_v20, %v834_v37 }
 0x50d   :  { %v4757_v10 = vpop.eup %4756 }
 0x50e   :  { %4273 = vmatmul.mubr.msk.bf16.vlgmr.msra.gmra.mxu0 %vm113_vm1, %v846_v60  ;;  %v836_v63 = vmul.f32 %v4757_v10, %v4745_v59  ;;  %v7063_v59 = vpack.c.bf16 %v5336_v55, %v5328_v52  ;;  %v7065_v52 = vpack.c.bf16 %v5383_v29, %v5379_v28  ;;  %v7066_v55 = vpack.c.bf16 %v5340_v56, %v5332_v53 }
 0x50f   :  { %4303 = vmatpush3.bf16.xpose.msra.mxu0 %v5399_v38  ;;  %4276 = vmatprep.mubr.msk.bf16.mxu0 %vm5034_vm2, %v7062_v2 }
 0x510   :  { %4304 = vmatprep.subr.bf16.mxu0 %v7062_v2 }
 0x511   :  { %v4759_v22 = vpop.eup %4758 }
 0x512   :  { %v837_v3 = vmul.f32 %v4759_v22, %v4747_v13  ;;  %v7064_v13 = vpack.c.bf16 %v5352_v5, %v5360_v7  ;;  %v7067_v5 = vpack.c.bf16 %v5356_v6, %v5364_v8  ;;  %v7068_v7 = vpack.c.bf16 %v5387_v30, %v5391_v31 }
 0x514   :  { %v847_v36 = vpack.c.bf16 %v837_v3, %v836_v63 }
 0x515   :  { %v4761_v24 = vpop.eup %4760 }
 0x516   :  { %4277 = vmatmul.mubr.msk.bf16.gmra.mxu0 %vm113_vm1, %v847_v36  ;;  %v838_v45 = vmul.f32 %v4761_v24, %v4749_v0 }
 0x517   :  { %4305 = vmatpush3.bf16.xpose.msra.mxu0 %v5431_v9  ;;  %4280 = vmatprep.mubr.msk.bf16.mxu0 %vm5034_vm2, %v7062_v2 }
 0x518   :  { %4306 = vmatprep.subr.bf16.mxu0 %v7062_v2 }
 0x519   :  { %v4763_v42 = vpop.eup %4762 }
 0x51a   :  { %v839_v51 = vmul.f32 %v4763_v42, %v4751_v40 }
 0x51c   :  { %v848_v32 = vpack.c.bf16 %v839_v51, %v838_v45  ;;  %v615_v45 = vpop.xlane.xlu0 %614 }
 0x51e   :  { %4281 = vmatmul.mubr.msk.bf16.gmra.mxu0 %vm113_vm1, %v848_v32 }
 0x51f   :  { %4307 = vmatpush3.bf16.xpose.msra.mxu0 %v5465_v43  ;;  %4308 = vmatprep.mubr.msk.bf16.mxu0 %vm5034_vm2, %v7062_v2 }
 0x520   :  { %4338 = vmatprep.subr.bf16.mxu0 %v7062_v2 }
 0x526   :  { %4309 = vmatmul.mubr.msk.bf16.vlgmr.msra.gmra.mxu0 %vm178_vm0, %v7063_v59 }
 0x527   :  { %4339 = vmatpush3.bf16.xpose.msra.mxu0 %v5399_v38  ;;  %4312 = vmatprep.mubr.msk.bf16.mxu0 %vm5034_vm2, %v7062_v2 }
 0x528   :  { %4340 = vmatprep.subr.bf16.mxu0 %v7062_v2 }
 0x52e   :  { %4313 = vmatmul.mubr.msk.bf16.gmra.mxu0 %vm178_vm0, %v7064_v13 }
 0x52f   :  { %4341 = vmatpush3.bf16.xpose.msra.mxu0 %v5431_v9  ;;  %4316 = vmatprep.mubr.msk.bf16.mxu0 %vm5034_vm2, %v7062_v2 }
 0x530   :  { %4342 = vmatprep.subr.bf16.mxu0 %v7062_v2 }
 0x536   :  { %4317 = vmatmul.mubr.msk.bf16.gmra.mxu0 %vm178_vm0, %v7065_v52 }
 0x537   :  { %4343 = vmatpush3.bf16.xpose.msra.mxu0 %v5465_v43  ;;  %4344 = vmatprep.mubr.msk.bf16.mxu0 %vm5034_vm2, %v7062_v2 }
 0x538   :  { %4374 = vmatprep.subr.bf16.mxu0 %v7062_v2 }
 0x53e   :  { %4345 = vmatmul.mubr.msk.bf16.vlgmr.msra.gmra.mxu0 %vm178_vm0, %v7066_v55  ;;  %v618_v55 = vpop.xlane.xlu1 %617 }
 0x53f   :  { %4348 = vmatprep.mubr.msk.bf16.mxu0 %vm5034_vm2, %v7062_v2 }
 0x546   :  { %4349 = vmatmul.mubr.msk.bf16.gmra.mxu0 %vm178_vm0, %v7067_v5 }
 0x547   :  { %4352 = vmatprep.mubr.msk.bf16.mxu0 %vm5034_vm2, %v7062_v2 }
 0x54e   :  { %4353 = vmatmul.mubr.msk.bf16.gmra.mxu0 %vm178_vm0, %v7068_v7  ;;  %v621_v7 = vpop.xlane.xlu0 %620 }
 0x54f   :  { %4378 = vmatprep.mubr.msk.bf16.mxu0 %vm5034_vm2, %v7062_v2 }
 0x5ce   :  { %v5703_v53 = vpop.f32.mrf.mxu0 }
 0x5d0   :  { %v4274_v56 = vpop.f32.mrf.mxu0 }
 0x5d2   :  { %v5705_v28 = vpop.f32.mrf.mxu0 }
 0x5d4   :  { %v4275_v29 = vpop.f32.mrf.mxu0 }
 0x5d6   :  { %v5707_v6 = vpop.f32.mrf.mxu0 }
 0x5d8   :  { %v4278_v8 = vpop.f32.mrf.mxu0 }
 0x5d9   :  { %v631_v8 = vsub.f32 %v5611_v19, %v615_v45 }
 0x5da   :  { %v5709_v38 = vpop.f32.mrf.mxu0 }
 0x5dc   :  { %v4279_v9 = vpop.f32.mrf.mxu0 }
 0x5de   :  { %v5711_v43 = vpop.f32.mrf.mxu0 }
 0x5e0   :  { %v4282_v30 = vpop.f32.mrf.mxu0 }
 0x5e2   :  { %v5713_v31 = vpop.f32.mrf.mxu0 }
 0x5e4   :  { %v4283_v0 = vpop.f32.mrf.mxu0 }
 0x5e6   :  { %v1044_v40 = vpop.f32.mrf.mxu0 }
 0x5e7   :  { %v5716_v50 = vadd.f32 %v1044_v40, %v5556_v21  ;;  %v633_v40 = vsub.f32 %v5620_v15, %v621_v7 }
 0x5e8   :  { %v4310_v35 = vpop.f32.mrf.mxu0 }
 0x5e9   :  { %v1067_v54 = vsel %vm113_vm1, %v5716_v50, -inf  ;;  %v624_v35 = vpop.xlane.xlu1 %623 }
 0x5ea   :  { %1068 = vmax.xlane.f32.xlu0 %v1067_v54  ;;  %v1047_v37 = vpop.f32.mrf.mxu0 }
 0x5eb   :  { %v5721_v20 = vadd.f32 %v1047_v37, %v5564_v46  ;;  %v637_v37 = vmul.f32 1.442695, %v631_v8 }
 0x5ec   :  { %v4311_v4 = vpop.f32.mrf.mxu0 }
 0x5ed   :  { %v1070_v60 = vsel %vm113_vm1, %v5721_v20, -inf  ;;  %v632_v4 = vsub.f32 %v5616_v39, %v618_v55  ;;  %4764 = vpow2.f32 %v637_v37  ;;  %v630_v45 = vpop.xlane.xlu1 %629 }
 0x5ee   :  { %1071 = vmax.xlane.f32.xlu1 %v1070_v60  ;;  %v1052_v10 = vpop.f32.mrf.mxu0  ;;  %v627_v60 = vpop.xlane.xlu0 %626 }
 0x5ef   :  { %v5726_v22 = vadd.f32 %v1052_v10, %v5573_v1  ;;  %v639_v15 = vmul.f32 1.442695, %v632_v4 }
 0x5f0   :  { %v4314_v63 = vpop.f32.mrf.mxu0 }
 0x5f1   :  { %v1073_v3 = vsel %vm113_vm1, %v5726_v22, -inf }
 0x5f2   :  { %1074 = vmax.xlane.f32.xlu0 %v1073_v3  ;;  %v1055_v36 = vpop.f32.mrf.mxu0  ;;  %v641_v3 = vmul.f32 1.442695, %v633_v40 }
 0x5f3   :  { %v5731_v24 = vadd.f32 %v1055_v36, %v5582_v47 }
 0x5f4   :  { %v4315_v42 = vpop.f32.mrf.mxu0  ;;  %4766 = vpow2.f32 %v641_v3 }
 0x5f5   :  { %v1076_v51 = vsel %vm113_vm1, %v5731_v24, -inf  ;;  %v634_v42 = vsub.f32 %v5627_v34, %v624_v35  ;;  %4768 = vpow2.f32 %v639_v15 }
 0x5f6   :  { %1077 = vmax.xlane.f32.xlu1 %v1076_v51  ;;  %v1060_v32 = vpop.f32.mrf.mxu0 }
 0x5f7   :  { %v5736_v59 = vadd.f32 %v1060_v32, %v5591_v17 }
 0x5f8   :  { %v4318_v13 = vpop.f32.mrf.mxu0 }
 0x5f9   :  { %v1079_v52 = vsel %vm113_vm1, %v5736_v59, -inf }
 0x5fa   :  { %1080 = vmax.xlane.f32.xlu0 %v1079_v52  ;;  %v1063_v5 = vpop.f32.mrf.mxu0  ;;  %v643_v52 = vmul.f32 1.442695, %v634_v42  ;;  %v5776_v40 = vpop.eup %4764 }
 0x5fb   :  { %v5741_v56 = vadd.f32 %v1063_v5, %v5600_v11  ;;  %v649_v4 = vsel %vm113_vm1, %v5776_v40, 0.0 }
 0x5fc   :  { %v4319_v29 = vpop.f32.mrf.mxu0 }
 0x5fd   :  { %v1082_v9 = vsel %vm113_vm1, %v5741_v56, -inf }
 0x5fe   :  { %1083 = vmax.xlane.f32.xlu1 %v1082_v9  ;;  %v1277_v30 = vpop.f32.mrf.mxu0 }
 0x5ff   :  { %v5747_v0 = vadd.f32 %v1277_v30, %v5556_v21  ;;  %v635_v21 = vsub.f32 %v5631_v12, %v627_v60  ;;  %v636_v12 = vsub.f32 %v5638_v48, %v630_v45 }
 0x600   :  { %v4346_v54 = vpop.f32.mrf.mxu0 }
 0x601   :  { %v1300_v10 = vsel %vm113_vm1, %v5747_v0, -inf  ;;  %v5781_v37 = vpop.eup %4766 }
 0x602   :  { %1301 = vmax.xlane.f32.xlu0 %v1300_v10  ;;  %v1280_v19 = vpop.f32.mrf.mxu0  ;;  %v5787_v60 = vpop.eup %4768 }
 0x603   :  { %v5754_v63 = vadd.f32 %v1280_v19, %v5564_v46  ;;  %v645_v46 = vmul.f32 1.442695, %v635_v21  ;;  %v655_v19 = vsel %vm113_vm1, %v5781_v37, 0.0 }
 0x604   :  { %v4347_v36 = vpop.f32.mrf.mxu0 }
 0x605   :  { %v1303_v39 = vsel %vm113_vm1, %v5754_v63, -inf  ;;  %4770 = vpow2.f32 %v645_v46 }
 0x606   :  { %1304 = vmax.xlane.f32.xlu1 %v1303_v39  ;;  %v1285_v51 = vpop.f32.mrf.mxu0  ;;  %4772 = vpow2.f32 %v643_v52 }
 0x607   :  { %v5761_v32 = vadd.f32 %v1285_v51, %v5573_v1  ;;  %v647_v1 = vmul.f32 1.442695, %v636_v12 }
 0x608   :  { %v4350_v13 = vpop.f32.mrf.mxu0 }
 0x609   :  { %v1306_v55 = vsel %vm113_vm1, %v5761_v32, -inf  ;;  %4774 = vpow2.f32 %v647_v1 }
 0x60a   :  { %1307 = vmax.xlane.f32.xlu0 %v1306_v55  ;;  %v1288_v34 = vpop.f32.mrf.mxu0 }
 0x60b   :  { %v5767_v5 = vadd.f32 %v1288_v34, %v5582_v47 }
 0x60c   :  { %v4351_v7 = vpop.f32.mrf.mxu0 }
 0x60d   :  { %v1309_v29 = vsel %vm113_vm1, %v5767_v5, -inf }
 0x60e   :  { %1310 = vmax.xlane.f32.xlu1 %v1309_v29  ;;  %v1293_v8 = vpop.f32.mrf.mxu0 }
 0x60f   :  { %v5772_v9 = vadd.f32 %v1293_v8, %v5591_v17 }
 0x610   :  { %v4354_v48 = vpop.f32.mrf.mxu0 }
 0x611   :  { %v1312_v30 = vsel %vm113_vm1, %v5772_v9, -inf }
 0x612   :  { %1313 = vmax.xlane.f32.xlu0 %v1312_v30  ;;  %v1296_v47 = vpop.f32.mrf.mxu0  ;;  %v5789_v10 = vpop.eup %4770 }
 0x613   :  { %v5779_v35 = vadd.f32 %v1296_v47, %v5600_v11  ;;  %v652_v11 = vsel %vm113_vm1, %v5787_v60, 0.0  ;;  %v5795_v3 = vpop.eup %4772  ;;  %v661_v21 = vsel %vm113_vm1, %v5789_v10, 0.0 }
 0x614   :  { %v4355_v54 = vpop.f32.mrf.mxu0  ;;  %v658_v36 = vsel %vm113_vm1, %v5795_v3, 0.0 }
 0x615   :  { %v1315_v17 = vsel %vm113_vm1, %v5779_v35, -inf }
 0x616   :  { %650 = vadd.xlane.f32.xlu0 %v649_v4  ;;  %1316 = vmax.xlane.f32.xlu1 %v1315_v17  ;;  %v5801_v15 = vpop.eup %4774 }
 0x617   :  { %v664_v42 = vsel %vm113_vm1, %v5801_v15, 0.0 }
 0x61a   :  { %656 = vadd.xlane.f32.xlu0 %v655_v19  ;;  %653 = vadd.xlane.f32.xlu1 %v652_v11 }
 0x61e   :  { %662 = vadd.xlane.f32.xlu0 %v661_v21  ;;  %659 = vadd.xlane.f32.xlu1 %v658_v36 }
 0x622   :  { %665 = vadd.xlane.f32.xlu1 %v664_v42 }
 0x673   :  { %v1069_v39 = vpop.xlane.xlu0 %1068 }
 0x674   :  { %v1085_v45 = vsub.f32 %v5716_v50, %v1069_v39 }
 0x676   :  { %v1091_v51 = vmul.f32 1.442695, %v1085_v45 }
 0x677   :  { %v1072_v46 = vpop.xlane.xlu1 %1071 }
 0x678   :  { %4776 = vpow2.f32 %v1091_v51  ;;  %v1086_v13 = vsub.f32 %v5721_v20, %v1072_v46 }
 0x67a   :  { %v1093_v52 = vmul.f32 1.442695, %v1086_v13 }
 0x67b   :  { %v1075_v12 = vpop.xlane.xlu0 %1074 }
 0x67c   :  { %4778 = vpow2.f32 %v1093_v52  ;;  %v1087_v55 = vsub.f32 %v5726_v22, %v1075_v12 }
 0x67e   :  { %v1095_v34 = vmul.f32 1.442695, %v1087_v55 }
 0x67f   :  { %v1078_v7 = vpop.xlane.xlu1 %1077 }
 0x680   :  { %4780 = vpow2.f32 %v1095_v34  ;;  %v1088_v1 = vsub.f32 %v5731_v24, %v1078_v7 }
 0x682   :  { %v1097_v29 = vmul.f32 1.442695, %v1088_v1 }
 0x683   :  { %v1081_v8 = vpop.xlane.xlu0 %1080 }
 0x684   :  { %4782 = vpow2.f32 %v1097_v29  ;;  %v1089_v50 = vsub.f32 %v5736_v59, %v1081_v8 }
 0x685   :  { %v5810_v48 = vpop.eup %4776 }
 0x686   :  { %v1099_v30 = vmul.f32 1.442695, %v1089_v50  ;;  %v1103_v20 = vsel %vm113_vm1, %v5810_v48, 0.0 }
 0x687   :  { %1104 = vadd.xlane.f32.xlu0 %v1103_v20  ;;  %v1084_v47 = vpop.xlane.xlu1 %1083 }
 0x688   :  { %4784 = vpow2.f32 %v1099_v30  ;;  %v1090_v22 = vsub.f32 %v5741_v56, %v1084_v47 }
 0x689   :  { %v5815_v54 = vpop.eup %4778 }
 0x68a   :  { %v1101_v4 = vmul.f32 1.442695, %v1090_v22  ;;  %v1106_v24 = vsel %vm113_vm1, %v5815_v54, 0.0 }
 0x68b   :  { %v1302_v17 = vpop.xlane.xlu0 %1301  ;;  %1107 = vadd.xlane.f32.xlu1 %v1106_v24 }
 0x68c   :  { %4786 = vpow2.f32 %v1101_v4  ;;  %v1318_v59 = vsub.f32 %v5747_v0, %v1302_v17 }
 0x68d   :  { %v5820_v19 = vpop.eup %4780 }
 0x68e   :  { %v1324_v11 = vmul.f32 1.442695, %v1318_v59  ;;  %v1109_v21 = vsel %vm113_vm1, %v5820_v19, 0.0 }
 0x68f   :  { %1110 = vadd.xlane.f32.xlu0 %v1109_v21  ;;  %v1305_v36 = vpop.xlane.xlu1 %1304 }
 0x690   :  { %4788 = vpow2.f32 %v1324_v11  ;;  %v1319_v56 = vsub.f32 %v5754_v63, %v1305_v36 }
 0x691   :  { %v5825_v42 = vpop.eup %4782 }
 0x692   :  { %v1326_v39 = vmul.f32 1.442695, %v1319_v56  ;;  %v1112_v45 = vsel %vm113_vm1, %v5825_v42, 0.0 }
 0x693   :  { %v1308_v51 = vpop.xlane.xlu0 %1307  ;;  %1113 = vadd.xlane.f32.xlu1 %v1112_v45 }
 0x694   :  { %4790 = vpow2.f32 %v1326_v39  ;;  %v1320_v0 = vsub.f32 %v5761_v32, %v1308_v51 }
 0x695   :  { %v5830_v46 = vpop.eup %4784 }
 0x696   :  { %v1328_v13 = vmul.f32 1.442695, %v1320_v0  ;;  %v1115_v52 = vsel %vm113_vm1, %v5830_v46, 0.0 }
 0x697   :  { %1116 = vadd.xlane.f32.xlu0 %v1115_v52  ;;  %v1311_v12 = vpop.xlane.xlu1 %1310 }
 0x698   :  { %4792 = vpow2.f32 %v1328_v13  ;;  %v1321_v63 = vsub.f32 %v5767_v5, %v1311_v12 }
 0x699   :  { %v5835_v55 = vpop.eup %4786 }
 0x69a   :  { %v1330_v34 = vmul.f32 1.442695, %v1321_v63  ;;  %v1118_v7 = vsel %vm113_vm1, %v5835_v55, 0.0 }
 0x69b   :  { %v1314_v1 = vpop.xlane.xlu0 %1313  ;;  %1119 = vadd.xlane.f32.xlu1 %v1118_v7 }
 0x69c   :  { %4794 = vpow2.f32 %v1330_v34  ;;  %v1322_v32 = vsub.f32 %v5772_v9, %v1314_v1 }
 0x69d   :  { %v5840_v29 = vpop.eup %4788 }
 0x69e   :  { %v1332_v8 = vmul.f32 1.442695, %v1322_v32  ;;  %v1336_v50 = vsel %vm113_vm1, %v5840_v29, 0.0  ;;  %v7069_v32 = vpack.c.bf16 %v5492_v44, %v5484_v49  ;;  %v7071_v44 = vpack.c.bf16 %v5417_v61, %v5413_v57 }
 0x69f   :  { %1337 = vadd.xlane.f32.xlu0 %v1336_v50  ;;  %v1317_v30 = vpop.xlane.xlu1 %1316  ;;  %v651_v5 = vpop.xlane.xlu0 %650 }
 0x6a0   :  { %4796 = vpow2.f32 %v1332_v8  ;;  %v1323_v20 = vsub.f32 %v5779_v35, %v1317_v30 }
 0x6a1   :  { %v5845_v47 = vpop.eup %4790  ;;  %4798 = vrcp.f32 %v651_v5 }
 0x6a2   :  { %v1334_v22 = vmul.f32 1.442695, %v1323_v20  ;;  %v1339_v4 = vsel %vm113_vm1, %v5845_v47, 0.0 }
 0x6a3   :  { %1340 = vadd.xlane.f32.xlu1 %v1339_v4  ;;  %v654_v9 = vpop.xlane.xlu1 %653  ;;  %v657_v35 = vpop.xlane.xlu0 %656 }
 0x6a4   :  { %4800 = vpow2.f32 %v1334_v22 }
 0x6a5   :  { %v5849_v24 = vpop.eup %4792  ;;  %4802 = vrcp.f32 %v654_v9 }
 0x6a6   :  { %v1342_v17 = vsel %vm113_vm1, %v5849_v24, 0.0 }
 0x6a7   :  { %1343 = vadd.xlane.f32.xlu0 %v1342_v17  ;;  %v660_v59 = vpop.xlane.xlu1 %659  ;;  %v663_v0 = vpop.xlane.xlu0 %662 }
 0x6a8   :  { %4804 = vrcp.f32 %v660_v59 }
 0x6a9   :  { %v5853_v11 = vpop.eup %4794  ;;  %4806 = vrcp.f32 %v657_v35  ;;  %v7072_v35 = vpack.c.bf16 %v5495_v33, %v5487_v18 }
 0x6aa   :  { %v1345_v21 = vsel %vm113_vm1, %v5853_v11, 0.0 }
 0x6ab   :  { %1346 = vadd.xlane.f32.xlu1 %v1345_v21  ;;  %v666_v39 = vpop.xlane.xlu1 %665 }
 0x6ac   :  { %4808 = vrcp.f32 %v666_v39  ;;  %v7073_v39 = vpack.c.bf16 %v5447_v27, %v5450_v41 }
 0x6ad   :  { %v5857_v36 = vpop.eup %4796  ;;  %4810 = vrcp.f32 %v663_v0  ;;  %v7074_v0 = vpack.c.bf16 %v5421_v58, %v5425_v62 }
 0x6ae   :  { %v1348_v56 = vsel %vm113_vm1, %v5857_v36, 0.0  ;;  %v4799_v45 = vpop.eup %4798 }
 0x6af   :  { %1349 = vadd.xlane.f32.xlu0 %v1348_v56  ;;  %v673_v12 = vmul.f32 %v4799_v45, %v5776_v40 }
 0x6b1   :  { %v5861_v51 = vpop.eup %4800 }
 0x6b2   :  { %v1351_v13 = vsel %vm113_vm1, %v5861_v51, 0.0  ;;  %v4803_v52 = vpop.eup %4802 }
 0x6b3   :  { %1352 = vadd.xlane.f32.xlu1 %v1351_v13  ;;  %v674_v63 = vmul.f32 %v4803_v52, %v5787_v60  ;;  %v7070_v60 = vpack.c.bf16 %v5444_v26, %v5441_v25 }
 0x6b5   :  { %v685_v34 = vpack.c.bf16 %v674_v63, %v673_v12  ;;  %v4805_v7 = vpop.eup %4804 }
 0x6b6   :  { %v4807_v1 = vpop.eup %4806  ;;  %v676_v8 = vmul.f32 %v4805_v7, %v5795_v3 }
 0x6b7   :  { %4291 = vmatmul.mubr.msk.bf16.vlgmr.msra.gmra.mxu1 %vm113_vm1, %v685_v34  ;;  %v675_v40 = vmul.f32 %v4807_v1, %v5781_v37 }
 0x6b8   :  { %4321 = vmatpush3.bf16.msra.mxu1 %v7069_v32  ;;  %4294 = vmatprep.mubr.msk.bf16.mxu1 %vm5034_vm2, %v7062_v2 }
 0x6b9   :  { %4322 = vmatprep.subr.bf16.mxu1 %v7062_v2  ;;  %v686_v50 = vpack.c.bf16 %v676_v8, %v675_v40  ;;  %v4809_v30 = vpop.eup %4808 }
 0x6ba   :  { %v4811_v49 = vpop.eup %4810  ;;  %v678_v37 = vmul.f32 %v4809_v30, %v5801_v15 }
 0x6bb   :  { %v677_v25 = vmul.f32 %v4811_v49, %v5789_v10 }
 0x6bc   :  { %4323 = vmatpush3.bf16.msra.mxu1 %v7070_v60 }
 0x6bd   :  { %4324 = vmatprep.subr.bf16.mxu1 %v7062_v2  ;;  %v687_v26 = vpack.c.bf16 %v678_v37, %v677_v25 }
 0x6bf   :  { %4295 = vmatmul.mubr.msk.bf16.gmra.mxu1 %vm113_vm1, %v686_v50 }
 0x6c0   :  { %4325 = vmatpush3.bf16.msra.mxu1 %v7071_v44  ;;  %4298 = vmatprep.mubr.msk.bf16.mxu1 %vm5034_vm2, %v7062_v2 }
 0x6c1   :  { %4356 = vmatprep.subr.bf16.mxu1 %v7062_v2 }
 0x6c7   :  { %4299 = vmatmul.mubr.msk.bf16.gmra.mxu1 %vm113_vm1, %v687_v26 }
 0x6c8   :  { %4326 = vmatprep.mubr.msk.bf16.mxu1 %vm5034_vm2, %v7062_v2 }
 0x710   :  { %v1105_v3 = vpop.xlane.xlu0 %1104 }
 0x711   :  { %4812 = vrcp.f32 %v1105_v3 }
 0x714   :  { %v1108_v5 = vpop.xlane.xlu1 %1107 }
 0x715   :  { %4814 = vrcp.f32 %v1108_v5 }
 0x718   :  { %v1111_v57 = vpop.xlane.xlu0 %1110 }
 0x719   :  { %4816 = vrcp.f32 %v1111_v57 }
 0x71c   :  { %v1114_v61 = vpop.xlane.xlu1 %1113 }
 0x71d   :  { %4818 = vrcp.f32 %v1114_v61 }
 0x71e   :  { %v4813_v20 = vpop.eup %4812 }
 0x71f   :  { %v1127_v4 = vmul.f32 %v4813_v20, %v5810_v48 }
 0x720   :  { %v1117_v15 = vpop.xlane.xlu0 %1116 }
 0x721   :  { %4820 = vrcp.f32 %v1117_v15 }
 0x722   :  { %v4815_v22 = vpop.eup %4814 }
 0x723   :  { %v1128_v10 = vmul.f32 %v4815_v22, %v5815_v54 }
 0x724   :  { %v1120_v9 = vpop.xlane.xlu1 %1119 }
 0x725   :  { %4822 = vrcp.f32 %v1120_v9  ;;  %v1139_v17 = vpack.c.bf16 %v1128_v10, %v1127_v4 }
 0x726   :  { %v4817_v59 = vpop.eup %4816 }
 0x727   :  { %4327 = vmatmul.mubr.msk.bf16.vlgmr.msra.gmra.mxu1 %vm113_vm1, %v1139_v17  ;;  %v1129_v54 = vmul.f32 %v4817_v59, %v5820_v19 }
 0x728   :  { %4357 = vmatpush3.bf16.msra.mxu1 %v7072_v35  ;;  %v1338_v21 = vpop.xlane.xlu0 %1337  ;;  %4330 = vmatprep.mubr.msk.bf16.mxu1 %vm5034_vm2, %v7062_v2 }
 0x729   :  { %4358 = vmatprep.subr.bf16.mxu1 %v7062_v2  ;;  %4824 = vrcp.f32 %v1338_v21 }
 0x72a   :  { %v4819_v48 = vpop.eup %4818 }
 0x72b   :  { %v1130_v56 = vmul.f32 %v4819_v48, %v5825_v42 }
 0x72c   :  { %4359 = vmatpush3.bf16.msra.mxu1 %v7073_v39  ;;  %v1341_v45 = vpop.xlane.xlu1 %1340 }
 0x72d   :  { %4826 = vrcp.f32 %v1341_v45  ;;  %4360 = vmatprep.subr.bf16.mxu1 %v7062_v2  ;;  %v1140_v18 = vpack.c.bf16 %v1130_v56, %v1129_v54 }
 0x72e   :  { %v4821_v33 = vpop.eup %4820 }
 0x72f   :  { %4331 = vmatmul.mubr.msk.bf16.gmra.mxu1 %vm113_vm1, %v1140_v18  ;;  %v1131_v41 = vmul.f32 %v4821_v33, %v5830_v46 }
 0x730   :  { %4361 = vmatpush3.bf16.msra.mxu1 %v7074_v0  ;;  %v1344_v13 = vpop.xlane.xlu0 %1343  ;;  %4334 = vmatprep.mubr.msk.bf16.mxu1 %vm5034_vm2, %v7062_v2 }
 0x731   :  { %4390 = vmatprep.subr.bf16.mxu1 %v7062_v2  ;;  %4828 = vrcp.f32 %v1344_v13 }
 0x732   :  { %v4823_v27 = vpop.eup %4822 }
 0x733   :  { %v1132_v19 = vmul.f32 %v4823_v27, %v5835_v55 }
 0x734   :  { %v1347_v42 = vpop.xlane.xlu1 %1346 }
 0x735   :  { %4830 = vrcp.f32 %v1347_v42  ;;  %v1141_v52 = vpack.c.bf16 %v1132_v19, %v1131_v41 }
 0x736   :  { %v4825_v12 = vpop.eup %4824 }
 0x737   :  { %4335 = vmatmul.mubr.msk.bf16.gmra.mxu1 %vm113_vm1, %v1141_v52  ;;  %v1360_v63 = vmul.f32 %v4825_v12, %v5840_v29 }
 0x738   :  { %v1350_v58 = vpop.xlane.xlu0 %1349  ;;  %4362 = vmatprep.mubr.msk.bf16.mxu1 %vm5034_vm2, %v7062_v2 }
 0x739   :  { %4832 = vrcp.f32 %v1350_v58 }
 0x73a   :  { %v4827_v62 = vpop.eup %4826 }
 0x73b   :  { %v1361_v34 = vmul.f32 %v4827_v62, %v5845_v47 }
 0x73c   :  { %v1353_v7 = vpop.xlane.xlu1 %1352 }
 0x73d   :  { %v1372_v46 = vpack.c.bf16 %v1361_v34, %v1360_v63  ;;  %4834 = vrcp.f32 %v1353_v7 }
 0x73e   :  { %v4829_v55 = vpop.eup %4828 }
 0x73f   :  { %4363 = vmatmul.mubr.msk.bf16.vlgmr.msra.gmra.mxu1 %vm113_vm1, %v1372_v46  ;;  %v1362_v32 = vmul.f32 %v4829_v55, %v5849_v24  ;;  %v4700_v24 = vld [vmem:[%s7016_s14 + $0x8] sm:$0xff]  }
 0x740   :  { %4366 = vmatprep.mubr.msk.bf16.mxu1 %vm5034_vm2, %v7062_v2  ;;  %4375 = vmatpush3.bf16.msra.mxu0 %v4700_v24 }
 0x741   :  { %4376 = vmatprep.subr.bf16.mxu0 %v7062_v2 }
 0x742   :  { %v4831_v1 = vpop.eup %4830 }
 0x743   :  { %v1363_v8 = vmul.f32 %v4831_v1, %v5853_v11 }
 0x745   :  { %v1373_v40 = vpack.c.bf16 %v1363_v8, %v1362_v32 }
 0x746   :  { %v4833_v29 = vpop.eup %4832 }
 0x747   :  { %4367 = vmatmul.mubr.msk.bf16.gmra.mxu1 %vm113_vm1, %v1373_v40  ;;  %v1364_v60 = vmul.f32 %v4833_v29, %v5857_v36  ;;  %v4701_v36 = vld [vmem:[%s7016_s14] sm:$0xff]  }
 0x748   :  { %4370 = vmatprep.mubr.msk.bf16.mxu1 %vm5034_vm2, %v7062_v2  ;;  %4377 = vmatpush3.bf16.msra.mxu0 %v4701_v36 }
 0x749   :  { %4406 = vmatprep.subr.bf16.mxu0 %v7062_v2 }
 0x74a   :  { %v4835_v47 = vpop.eup %4834 }
 0x74b   :  { %v1365_v50 = vmul.f32 %v4835_v47, %v5861_v51 }
 0x74d   :  { %v1374_v30 = vpack.c.bf16 %v1365_v50, %v1364_v60 }
 0x74f   :  { %4371 = vmatmul.mubr.msk.bf16.gmra.mxu1 %vm113_vm1, %v1374_v30 }
 0x750   :  { %4394 = vmatprep.mubr.msk.bf16.mxu1 %vm5034_vm2, %v7062_v2 }
 0x777   :  { %v961_v11 = vpop.f32.mrf.mxu1 }
 0x778   :  { %v962_v45 = vadd.f32 %v961_v11, %v5703_v53 }
 0x779   :  { %v4292_v49 = vpop.f32.mrf.mxu1 }
 0x77b   :  { %v964_v44 = vpop.f32.mrf.mxu1 }
 0x77c   :  { %v965_v18 = vadd.f32 %v964_v44, %v5705_v28 }
 0x77d   :  { %v4293_v51 = vpop.f32.mrf.mxu1 }
 0x77f   :  { %v969_v37 = vpop.f32.mrf.mxu1 }
 0x780   :  { %v970_v58 = vadd.f32 %v969_v37, %v5707_v6 }
 0x781   :  { %v4296_v25 = vpop.f32.mrf.mxu1 }
 0x783   :  { %v972_v26 = vpop.f32.mrf.mxu1 }
 0x784   :  { %v973_v62 = vadd.f32 %v972_v26, %v5709_v38 }
 0x785   :  { %v4297_v3 = vpop.f32.mrf.mxu1 }
 0x787   :  { %v977_v5 = vpop.f32.mrf.mxu1 }
 0x788   :  { %v978_v8 = vadd.f32 %v977_v5, %v5711_v43  ;;  %v5000_v5 = vld [vmem:[%s7054_s1] sm:$0xff] }
 0x789   :  { %v4300_v57 = vpop.f32.mrf.mxu1 }
 0x78b   :  { %v980_v61 = vpop.f32.mrf.mxu1 }
 0x78c   :  { %v981_v6 = vadd.f32 %v980_v61, %v5713_v31  ;;  %v3866_v31 = vld [vmem:[%s7017_s15] ss:$0 sm:$0xff] }
 0x78d   :  { %v4301_v20 = vpop.f32.mrf.mxu1 }
 0x7e7   :  { %v1188_v15 = vpop.f32.mrf.mxu1 }
 0x7e8   :  { %v1211_v0 = vadd.f32 %v1188_v15, %v962_v45 }
 0x7e9   :  { %v4328_v22 = vpop.f32.mrf.mxu1 }
 0x7eb   :  { %v1191_v4 = vpop.f32.mrf.mxu1 }
 0x7ec   :  { %v1212_v13 = vadd.f32 %v1191_v4, %v965_v18 }
 0x7ed   :  { %v4329_v10 = vpop.f32.mrf.mxu1 }
 0x7ef   :  { %v1196_v9 = vpop.f32.mrf.mxu1 }
 0x7f0   :  { %v1213_v53 = vadd.f32 %v1196_v9, %v970_v58 }
 0x7f1   :  { %v4332_v17 = vpop.f32.mrf.mxu1 }
 0x7f2   :  { %v7075_v17 = vld [vmem:[#allocation5_spill] sm:$0xff] }
 0x7f3   :  { %v1199_v59 = vpop.f32.mrf.mxu1 }
 0x7f4   :  { %v1214_v28 = vadd.f32 %v1199_v59, %v973_v62 }
 0x7f5   :  { %v4333_v35 = vpop.f32.mrf.mxu1 }
 0x7f7   :  { %v1204_v21 = vpop.f32.mrf.mxu1 }
 0x7f8   :  { %v1215_v40 = vadd.f32 %v1204_v21, %v978_v8 }
 0x7f9   :  { %v4336_v48 = vpop.f32.mrf.mxu1 }
 0x7fb   :  { %v1207_v54 = vpop.f32.mrf.mxu1 }
 0x7fc   :  { %v1216_v29 = vadd.f32 %v1207_v54, %v981_v6 }
 0x7fd   :  { %v4337_v56 = vpop.f32.mrf.mxu1 }
 0x7ff   :  { %v1421_v39 = vpop.f32.mrf.mxu1 }
 0x800   :  { %v1444_v41 = vadd.f32 %v1421_v39, %v1211_v0 }
 0x801   :  { %v4364_v33 = vpop.f32.mrf.mxu1 }
 0x803   :  { %v1424_v27 = vpop.f32.mrf.mxu1 }
 0x804   :  { %v1445_v19 = vadd.f32 %v1424_v27, %v1212_v13 }
 0x805   :  { %v4365_v42 = vpop.f32.mrf.mxu1 }
 0x806   :  { %v1454_v52 = vpack.c.bf16 %v1445_v19, %v1444_v41 }
 0x807   :  { %v1429_v12 = vpop.f32.mrf.mxu1 }
 0x808   :  { %4379 = vmatmul.mubr.msk.bf16.vlgmr.msra.gmra.mxu0 %vm178_vm0, %v1454_v52  ;;  %v1446_v7 = vadd.f32 %v1429_v12, %v1213_v53 }
 0x809   :  { %v4368_v63 = vpop.f32.mrf.mxu1  ;;  %4382 = vmatprep.mubr.msk.bf16.mxu0 %vm5034_vm2, %v7062_v2 }
 0x80b   :  { %v1432_v34 = vpop.f32.mrf.mxu1 }
 0x80c   :  { %v1447_v46 = vadd.f32 %v1432_v34, %v1214_v28 }
 0x80d   :  { %v4369_v55 = vpop.f32.mrf.mxu1 }
 0x80e   :  { %v1455_v1 = vpack.c.bf16 %v1447_v46, %v1446_v7 }
 0x80f   :  { %v1437_v32 = vpop.f32.mrf.mxu1 }
 0x810   :  { %4383 = vmatmul.mubr.msk.bf16.gmra.mxu0 %vm178_vm0, %v1455_v1  ;;  %v1448_v60 = vadd.f32 %v1437_v32, %v1215_v40 }
 0x811   :  { %v4372_v38 = vpop.f32.mrf.mxu1  ;;  %4386 = vmatprep.mubr.msk.bf16.mxu0 %vm5034_vm2, %v7062_v2 }
 0x813   :  { %v1440_v47 = vpop.f32.mrf.mxu1 }
 0x814   :  { %v1449_v50 = vadd.f32 %v1440_v47, %v1216_v29 }
 0x815   :  { %v4373_v30 = vpop.f32.mrf.mxu1 }
 0x816   :  { %v1456_v24 = vpack.c.bf16 %v1449_v50, %v1448_v60 }
 0x818   :  { %4387 = vmatmul.mubr.msk.bf16.gmra.mxu0 %vm178_vm0, %v1456_v24 }
 0x819   :  { %4422 = vmatprep.mubr.msk.bf16.mxu0 %vm5034_vm2, %v7062_v2 }
 0x8c8   :  { %v1512_v43 = vpop.f32.mrf.mxu0 }
 0x8c9   :  { %v1535_v11 = vadd.f32 %v1512_v43, %v5198_v16  ;;  %v4702_v43 = vld [vmem:[%s7020_s18 + $0x8] sm:$0xff]  }
 0x8ca   :  { %v4380_v49 = vpop.f32.mrf.mxu0  ;;  %4391 = vmatpush3.bf16.msra.mxu1 %v4702_v43  ;;  %v3869_v43 = vld [vmem:[%s7021_s19] ss:$0 sm:$0xff] }
 0x8cb   :  { %v5961_v44 = vadd.f32 %v3866_v31, %v1535_v11  ;;  %4392 = vmatprep.subr.bf16.mxu1 %v7062_v2 }
 0x8cc   :  { %v1515_v36 = vpop.f32.mrf.mxu0 }
 0x8cd   :  { %v1536_v51 = vadd.f32 %v1515_v36, %v5210_v23  ;;  %v1556_v37 = vsel %vm178_vm0, %v5961_v44, 0.0 }
 0x8ce   :  { %1557 = vadd.xlane.f32.xlu0 %v1556_v37  ;;  %v4381_v25 = vpop.f32.mrf.mxu0 }
 0x8cf   :  { %v5966_v26 = vadd.f32 %v3866_v31, %v1536_v51 }
 0x8d0   :  { %v1520_v3 = vpop.f32.mrf.mxu0 }
 0x8d1   :  { %v1537_v57 = vadd.f32 %v5000_v5, %v1520_v3  ;;  %v1559_v16 = vsel %vm178_vm0, %v5966_v26, 0.0 }
 0x8d2   :  { %1560 = vadd.xlane.f32.xlu1 %v1559_v16  ;;  %v4384_v61 = vpop.f32.mrf.mxu0 }
 0x8d3   :  { %v5973_v20 = vadd.f32 %v3866_v31, %v1537_v57 }
 0x8d4   :  { %v1523_v23 = vpop.f32.mrf.mxu0 }
 0x8d5   :  { %v1538_v15 = vadd.f32 %v1523_v23, %v5196_v14  ;;  %v1562_v22 = vsel %vm178_vm0, %v5973_v20, 0.0 }
 0x8d6   :  { %1563 = vadd.xlane.f32.xlu0 %v1562_v22  ;;  %v4385_v4 = vpop.f32.mrf.mxu0 }
 0x8d7   :  { %v5978_v10 = vadd.f32 %v3866_v31, %v1538_v15 }
 0x8d8   :  { %v1528_v9 = vpop.f32.mrf.mxu0 }
 0x8d9   :  { %v1539_v59 = vadd.f32 %v1528_v9, %v7075_v17  ;;  %v1565_v35 = vsel %vm178_vm0, %v5978_v10, 0.0 }
 0x8da   :  { %1566 = vadd.xlane.f32.xlu1 %v1565_v35  ;;  %v4388_v21 = vpop.f32.mrf.mxu0 }
 0x8db   :  { %v5983_v48 = vadd.f32 %v3866_v31, %v1539_v59  ;;  %v3867_v59 = vld [vmem:[%s7018_s16] ss:$0 sm:$0xff] }
 0x8dc   :  { %v1531_v54 = vpop.f32.mrf.mxu0 }
 0x8dd   :  { %v1540_v56 = vadd.f32 %v5000_v5, %v1531_v54  ;;  %v1568_v14 = vsel %vm178_vm0, %v5983_v48, 0.0 }
 0x8de   :  { %1569 = vadd.xlane.f32.xlu0 %v1568_v14  ;;  %v4389_v39 = vpop.f32.mrf.mxu0 }
 0x8df   :  { %v5987_v45 = vadd.f32 %v3866_v31, %v1540_v56  ;;  %v4703_v31 = vld [vmem:[%s7020_s18] sm:$0xff]  }
 0x8e0   :  { %4393 = vmatpush3.bf16.msra.mxu1 %v4703_v31 }
 0x8e1   :  { %v1571_v18 = vsel %vm178_vm0, %v5987_v45, 0.0  ;;  %4434 = vmatprep.subr.bf16.mxu1 %v7062_v2 }
 0x8e2   :  { %1572 = vadd.xlane.f32.xlu1 %v1571_v18  ;;  %v3868_v18 = vld [vmem:[%s7019_s17] ss:$0 sm:$0xff] }
 0x957   :  { %v1558_v33 = vpop.xlane.xlu0 %1557 }
 0x958   :  { %v1574_v0 = vmul.f32 0.03125, %v1558_v33 }
 0x95a   :  { %v1580_v13 = vsub.f32 %v5961_v44, %v1574_v0 }
 0x95b   :  { %v1561_v27 = vpop.xlane.xlu1 %1560 }
 0x95c   :  { %v1575_v41 = vmul.f32 0.03125, %v1561_v27  ;;  %v1586_v19 = vmul.f32 %v1580_v13, %v1580_v13 }
 0x95e   :  { %v5993_v42 = vsub.f32 %v5966_v26, %v1575_v41  ;;  %v1592_v52 = vsel %vm178_vm0, %v1586_v19, 0.0 }
 0x95f   :  { %v1564_v12 = vpop.xlane.xlu0 %1563  ;;  %1593 = vadd.xlane.f32.xlu0 %v1592_v52 }
 0x960   :  { %v1576_v58 = vmul.f32 0.03125, %v1564_v12  ;;  %v1587_v62 = vmul.f32 %v5993_v42, %v5993_v42 }
 0x962   :  { %v5999_v63 = vsub.f32 %v5973_v20, %v1576_v58  ;;  %v1595_v53 = vsel %vm178_vm0, %v1587_v62, 0.0 }
 0x963   :  { %v1567_v28 = vpop.xlane.xlu1 %1566  ;;  %1596 = vadd.xlane.f32.xlu1 %v1595_v53 }
 0x964   :  { %v1577_v34 = vmul.f32 0.03125, %v1567_v28  ;;  %v1588_v7 = vmul.f32 %v5999_v63, %v5999_v63 }
 0x966   :  { %v6005_v46 = vsub.f32 %v5978_v10, %v1577_v34  ;;  %v1598_v55 = vsel %vm178_vm0, %v1588_v7, 0.0 }
 0x967   :  { %1599 = vadd.xlane.f32.xlu0 %v1598_v55  ;;  %v1570_v1 = vpop.xlane.xlu0 %1569 }
 0x968   :  { %v1578_v32 = vmul.f32 0.03125, %v1570_v1  ;;  %v1589_v8 = vmul.f32 %v6005_v46, %v6005_v46 }
 0x96a   :  { %v6011_v6 = vsub.f32 %v5983_v48, %v1578_v32  ;;  %v1601_v38 = vsel %vm178_vm0, %v1589_v8, 0.0 }
 0x96b   :  { %1602 = vadd.xlane.f32.xlu1 %v1601_v38  ;;  %v1573_v40 = vpop.xlane.xlu1 %1572 }
 0x96c   :  { %v1579_v29 = vmul.f32 0.03125, %v1573_v40  ;;  %v1590_v47 = vmul.f32 %v6011_v6, %v6011_v6  ;;  %v4705_v40 = vld [vmem:[%s7022_s20 + $0x30] sm:$0xff]  }
 0x96e   :  { %v1585_v60 = vsub.f32 %v5987_v45, %v1579_v29  ;;  %v1604_v50 = vsel %vm178_vm0, %v1590_v47, 0.0  ;;  %v4706_v29 = vld [vmem:[%s7022_s20 + $0x28] sm:$0xff]   ;;  %v4707_v47 = vld [vmem:[%s7022_s20 + $0x20] sm:$0xff]  }
 0x96f   :  { %1605 = vadd.xlane.f32.xlu0 %v1604_v50  ;;  %v4709_v50 = vld [vmem:[%s7022_s20 + $0x10] sm:$0xff]  }
 0x970   :  { %v1591_v30 = vmul.f32 %v1585_v60, %v1585_v60 }
 0x972   :  { %v1607_v24 = vsel %vm178_vm0, %v1591_v30, 0.0  ;;  %v4710_v30 = vld [vmem:[%s7022_s20 + $0x8] sm:$0xff]  }
 0x973   :  { %1608 = vadd.xlane.f32.xlu1 %v1607_v24  ;;  %v4711_v24 = vld [vmem:[%s7022_s20] sm:$0xff]  }
 0x9e8   :  { %v1594_v11 = vpop.xlane.xlu0 %1593 }
 0x9e9   :  { %v1610_v49 = vmul.f32 0.03125, %v1594_v11 }
 0x9eb   :  { %v1616_v36 = vadd.f32 1e-06, %v1610_v49 }
 0x9ec   :  { %v1597_v51 = vpop.xlane.xlu1 %1596 }
 0x9ed   :  { %4836 = vrsqrt.f32 %v1616_v36  ;;  %v1611_v37 = vmul.f32 0.03125, %v1597_v51 }
 0x9ef   :  { %v1617_v25 = vadd.f32 1e-06, %v1611_v37 }
 0x9f0   :  { %v1600_v3 = vpop.xlane.xlu0 %1599 }
 0x9f1   :  { %4838 = vrsqrt.f32 %v1617_v25  ;;  %v1612_v5 = vmul.f32 0.03125, %v1600_v3 }
 0x9f3   :  { %v1618_v57 = vadd.f32 1e-06, %v1612_v5 }
 0x9f4   :  { %v1603_v16 = vpop.xlane.xlu1 %1602 }
 0x9f5   :  { %4840 = vrsqrt.f32 %v1618_v57  ;;  %v1613_v61 = vmul.f32 0.03125, %v1603_v16 }
 0x9f7   :  { %v1619_v23 = vadd.f32 1e-06, %v1613_v61 }
 0x9f8   :  { %v1606_v15 = vpop.xlane.xlu0 %1605 }
 0x9f9   :  { %4842 = vrsqrt.f32 %v1619_v23  ;;  %v1614_v22 = vmul.f32 0.03125, %v1606_v15 }
 0x9fa   :  { %v4837_v4 = vpop.eup %4836 }
 0x9fb   :  { %v1628_v9 = vmul.f32 %v4837_v4, %v1580_v13  ;;  %v1620_v17 = vadd.f32 1e-06, %v1614_v22 }
 0x9fc   :  { %v1609_v35 = vpop.xlane.xlu1 %1608 }
 0x9fd   :  { %4844 = vrsqrt.f32 %v1620_v17  ;;  %v1615_v21 = vmul.f32 0.03125, %v1609_v35  ;;  %v1640_v56 = vmul.f32 %v3867_v59, %v1628_v9 }
 0x9fe   :  { %v4839_v54 = vpop.eup %4838 }
 0x9ff   :  { %v1629_v14 = vmul.f32 %v4839_v54, %v5993_v42  ;;  %v1621_v39 = vadd.f32 1e-06, %v1615_v21  ;;  %v1652_v13 = vadd.f32 %v3868_v18, %v1640_v56 }
 0xa01   :  { %v1641_v33 = vmul.f32 %v3867_v59, %v1629_v14  ;;  %4846 = vrsqrt.f32 %v1621_v39 }
 0xa02   :  { %v4841_v0 = vpop.eup %4840 }
 0xa03   :  { %v1653_v27 = vadd.f32 %v3868_v18, %v1641_v33  ;;  %v1630_v41 = vmul.f32 %v4841_v0, %v5999_v63 }
 0xa05   :  { %v1662_v19 = vpack.c.bf16 %v1653_v27, %v1652_v13  ;;  %v1642_v58 = vmul.f32 %v3867_v59, %v1630_v41 }
 0xa06   :  { %v4843_v52 = vpop.eup %4842 }
 0xa07   :  { %4395 = vmatmul.mubr.msk.bf16.vlgmr.msra.gmra.mxu1 %vm178_vm0, %v1662_v19  ;;  %v1631_v12 = vmul.f32 %v4843_v52, %v6005_v46  ;;  %v1654_v53 = vadd.f32 %v3868_v18, %v1642_v58 }
 0xa08   :  { %4398 = vmatprep.mubr.msk.bf16.mxu1 %vm5034_vm2, %v7062_v2 }
 0xa09   :  { %v1643_v42 = vmul.f32 %v3867_v59, %v1631_v12 }
 0xa0a   :  { %v4845_v62 = vpop.eup %4844 }
 0xa0b   :  { %v1655_v28 = vadd.f32 %v3868_v18, %v1643_v42  ;;  %v1632_v34 = vmul.f32 %v4845_v62, %v6011_v6  ;;  %v4704_v6 = vld [vmem:[%s7022_s20 + $0x38] sm:$0xff]  }
 0xa0c   :  { %4407 = vmatpush3.bf16.msra.mxu0 %v4704_v6 }
 0xa0d   :  { %v1663_v7 = vpack.c.bf16 %v1655_v28, %v1654_v53  ;;  %v1644_v1 = vmul.f32 %v3867_v59, %v1632_v34  ;;  %4408 = vmatprep.subr.bf16.mxu0 %v7062_v2 }
 0xa0e   :  { %v4847_v55 = vpop.eup %4846 }
 0xa0f   :  { %4399 = vmatmul.mubr.msk.bf16.gmra.mxu1 %vm178_vm0, %v1663_v7  ;;  %v1633_v63 = vmul.f32 %v4847_v55, %v1585_v60  ;;  %v1656_v32 = vadd.f32 %v3868_v18, %v1644_v1  ;;  %v4708_v60 = vld [vmem:[%s7022_s20 + $0x18] sm:$0xff]  }
 0xa10   :  { %4402 = vmatprep.mubr.msk.bf16.mxu1 %vm5034_vm2, %v7062_v2  ;;  %4409 = vmatpush3.bf16.msra.mxu0 %v4705_v40 }
 0xa11   :  { %v1645_v46 = vmul.f32 %v3867_v59, %v1633_v63  ;;  %4410 = vmatprep.subr.bf16.mxu0 %v7062_v2 }
 0xa13   :  { %v1657_v8 = vadd.f32 %v3868_v18, %v1645_v46 }
 0xa14   :  { %4411 = vmatpush3.bf16.msra.mxu0 %v4706_v29 }
 0xa15   :  { %v1664_v38 = vpack.c.bf16 %v1657_v8, %v1656_v32  ;;  %4412 = vmatprep.subr.bf16.mxu0 %v7062_v2 }
 0xa17   :  { %4403 = vmatmul.mubr.msk.bf16.gmra.mxu1 %vm178_vm0, %v1664_v38 }
 0xa18   :  { %4438 = vmatprep.mubr.msk.bf16.mxu1 %vm5034_vm2, %v7062_v2  ;;  %4413 = vmatpush3.bf16.msra.mxu0 %v4707_v47 }
 0xa19   :  { %4414 = vmatprep.subr.bf16.mxu0 %v7062_v2 }
 0xa1c   :  { %4415 = vmatpush3.bf16.msra.mxu0 %v4708_v60 }
 0xa1d   :  { %4416 = vmatprep.subr.bf16.mxu0 %v7062_v2 }
 0xa20   :  { %4417 = vmatpush3.bf16.msra.mxu0 %v4709_v50 }
 0xa21   :  { %4418 = vmatprep.subr.bf16.mxu0 %v7062_v2 }
 0xa24   :  { %4419 = vmatpush3.bf16.msra.mxu0 %v4710_v30 }
 0xa25   :  { %4420 = vmatprep.subr.bf16.mxu0 %v7062_v2 }
 0xa28   :  { %4421 = vmatpush3.bf16.msra.mxu0 %v4711_v24 }
 0xa29   :  { %4450 = vmatprep.subr.bf16.mxu0 %v7062_v2 }
 0xac7   :  { %v1727_v31 = vpop.f32.mrf.mxu1 }
 0xac8   :  { %v1728_v11 = vadd.f32 %v3869_v43, %v1727_v31 }
 0xac9   :  { %v4396_v49 = vpop.f32.mrf.mxu1 }
 0xaca   :  { %v1756_v36 = vmul.f32 0.044715, %v1728_v11  ;;  %v1750_v29 = vmul.f32 0.5, %v1728_v11 }
 0xacb   :  { %v1730_v51 = vpop.f32.mrf.mxu1 }
 0xacc   :  { %v1762_v37 = vmul.f32 %v1756_v36, %v1728_v11  ;;  %v1731_v25 = vadd.f32 %v3869_v43, %v1730_v51 }
 0xacd   :  { %v4397_v3 = vpop.f32.mrf.mxu1 }
 0xace   :  { %v1768_v5 = vmul.f32 %v1762_v37, %v1728_v11  ;;  %v1757_v57 = vmul.f32 0.044715, %v1731_v25  ;;  %v1751_v47 = vmul.f32 0.5, %v1731_v25 }
 0xacf   :  { %v1735_v16 = vpop.f32.mrf.mxu1 }
 0xad0   :  { %v1774_v61 = vadd.f32 %v1768_v5, %v1728_v11  ;;  %v1763_v23 = vmul.f32 %v1757_v57, %v1731_v25  ;;  %v1736_v15 = vadd.f32 %v3869_v43, %v1735_v16 }
 0xad1   :  { %v4400_v22 = vpop.f32.mrf.mxu1 }
 0xad2   :  { %v1780_v4 = vmul.f32 0.7978846, %v1774_v61  ;;  %v1769_v9 = vmul.f32 %v1763_v23, %v1731_v25  ;;  %v1758_v17 = vmul.f32 0.044715, %v1736_v15  ;;  %v1752_v51 = vmul.f32 0.5, %v1736_v15 }
 0xad3   :  { %v1738_v59 = vpop.f32.mrf.mxu1 }
 0xad4   :  { %4848 = vtanh.f32 %v1780_v4  ;;  %v1775_v35 = vadd.f32 %v1769_v9, %v1731_v25  ;;  %v1764_v21 = vmul.f32 %v1758_v17, %v1736_v15  ;;  %v1739_v54 = vadd.f32 %v3869_v43, %v1738_v59 }
 0xad5   :  { %v4401_v56 = vpop.f32.mrf.mxu1 }
 0xad6   :  { %v1781_v14 = vmul.f32 0.7978846, %v1775_v35  ;;  %v1770_v39 = vmul.f32 %v1764_v21, %v1736_v15  ;;  %v1759_v18 = vmul.f32 0.044715, %v1739_v54  ;;  %v1753_v37 = vmul.f32 0.5, %v1739_v54 }
 0xad7   :  { %v1743_v33 = vpop.f32.mrf.mxu1  ;;  %v3883_v35 = vld [vmem:[%s7023_s21] ss:$0 sm:$0xff] }
 0xad8   :  { %4850 = vtanh.f32 %v1781_v14  ;;  %v1765_v0 = vmul.f32 %v1759_v18, %v1739_v54  ;;  %v1744_v13 = vadd.f32 %v3869_v43, %v1743_v33  ;;  %v1776_v27 = vadd.f32 %v1770_v39, %v1736_v15 }
 0xad9   :  { %v4404_v41 = vpop.f32.mrf.mxu1 }
 0xada   :  { %v1771_v19 = vmul.f32 %v1765_v0, %v1739_v54  ;;  %v1760_v52 = vmul.f32 0.044715, %v1744_v13  ;;  %v1782_v12 = vmul.f32 0.7978846, %v1776_v27  ;;  %v1754_v23 = vmul.f32 0.5, %v1744_v13 }
 0xadb   :  { %v1746_v58 = vpop.f32.mrf.mxu1 }
 0xadc   :  { %v1766_v42 = vmul.f32 %v1760_v52, %v1744_v13  ;;  %v1747_v62 = vadd.f32 %v3869_v43, %v1746_v58  ;;  %v1777_v53 = vadd.f32 %v1771_v19, %v1739_v54  ;;  %4852 = vtanh.f32 %v1782_v12 }
 0xadd   :  { %v4405_v28 = vpop.f32.mrf.mxu1 }
 0xade   :  { %v1772_v34 = vmul.f32 %v1766_v42, %v1744_v13  ;;  %v1761_v7 = vmul.f32 0.044715, %v1747_v62  ;;  %v1783_v55 = vmul.f32 0.7978846, %v1777_v53  ;;  %v1755_v22 = vmul.f32 0.5, %v1747_v62 }
 0xae0   :  { %v1767_v63 = vmul.f32 %v1761_v7, %v1747_v62  ;;  %4854 = vtanh.f32 %v1783_v55  ;;  %v1778_v1 = vadd.f32 %v1772_v34, %v1744_v13 }
 0xae1   :  { %v4849_v46 = vpop.eup %4848 }
 0xae2   :  { %v1773_v32 = vmul.f32 %v1767_v63, %v1747_v62  ;;  %v1784_v8 = vmul.f32 0.7978846, %v1778_v1  ;;  %v1792_v38 = vadd.f32 1.0, %v4849_v46 }
 0xae4   :  { %v1779_v6 = vadd.f32 %v1773_v32, %v1747_v62  ;;  %4856 = vtanh.f32 %v1784_v8  ;;  %v1798_v30 = vmul.f32 %v1792_v38, %v1750_v29 }
 0xae5   :  { %v4851_v40 = vpop.eup %4850 }
 0xae6   :  { %v1793_v60 = vadd.f32 1.0, %v4851_v40  ;;  %v1785_v50 = vmul.f32 0.7978846, %v1779_v6 }
 0xae8   :  { %v1799_v24 = vmul.f32 %v1793_v60, %v1751_v47  ;;  %4858 = vtanh.f32 %v1785_v50 }
 0xae9   :  { %v4853_v43 = vpop.eup %4852 }
 0xaea   :  { %v1820_v31 = vpack.c.bf16 %v1799_v24, %v1798_v30  ;;  %v1794_v49 = vadd.f32 1.0, %v4853_v43 }
 0xaec   :  { %4423 = vmatmul.mubr.bf16.vlgmr.msra.gmra.mxu0 %v1820_v31  ;;  %v1800_v5 = vmul.f32 %v1794_v49, %v1752_v51 }
 0xaed   :  { %v4855_v36 = vpop.eup %4854  ;;  %4426 = vmatprep.mubr.msk.bf16.mxu0 %vm5034_vm2, %v7062_v2 }
 0xaee   :  { %v1795_v3 = vadd.f32 1.0, %v4855_v36 }
 0xaf0   :  { %v1801_v57 = vmul.f32 %v1795_v3, %v1753_v37 }
 0xaf1   :  { %v4857_v11 = vpop.eup %4856 }
 0xaf2   :  { %v1821_v25 = vpack.c.bf16 %v1801_v57, %v1800_v5  ;;  %v1796_v16 = vadd.f32 1.0, %v4857_v11 }
 0xaf4   :  { %4427 = vmatmul.mubr.bf16.gmra.mxu0 %v1821_v25  ;;  %v1802_v9 = vmul.f32 %v1796_v16, %v1754_v23 }
 0xaf5   :  { %v4859_v61 = vpop.eup %4858  ;;  %4430 = vmatprep.mubr.msk.bf16.mxu0 %vm5034_vm2, %v7062_v2 }
 0xaf6   :  { %v1797_v4 = vadd.f32 1.0, %v4859_v61 }
 0xaf8   :  { %v1803_v17 = vmul.f32 %v1797_v4, %v1755_v22 }
 0xafa   :  { %v1822_v59 = vpack.c.bf16 %v1803_v17, %v1802_v9  ;;  %v4712_v17 = vld [vmem:[%s7012_s10 + $0x18] sm:$0xff]  }
 0xafb   :  { %4451 = vmatpush3.bf16.msra.mxu0 %v4712_v17 }
 0xafc   :  { %4431 = vmatmul.mubr.bf16.gmra.mxu0 %v1822_v59  ;;  %v4714_v59 = vld [vmem:[%s7057_s26 + $0x18] sm:$0xff]   ;;  %4452 = vmatprep.subr.bf16.mxu0 %v7062_v2 }
 0xafd   :  { %4454 = vmatprep.mubr.msk.bf16.mxu0 %vm5034_vm2, %v7062_v2  ;;  %4435 = vmatpush3.bf16.msra.mxu1 %v4714_v59 }
 0xafe   :  { %4436 = vmatprep.subr.bf16.mxu1 %v7062_v2 }
 0xbac   :  { %v1905_v15 = vpop.f32.mrf.mxu0 }
 0xbad   :  { %v1928_v21 = vadd.f32 %v1905_v15, %v5961_v44  ;;  %v4713_v15 = vld [vmem:[%s7012_s10 + $0x10] sm:$0xff]  }
 0xbae   :  { %v4424_v54 = vpop.f32.mrf.mxu0  ;;  %4453 = vmatpush3.bf16.msra.mxu0 %v4713_v15 }
 0xbaf   :  { %v6091_v56 = vadd.f32 %v3883_v35, %v1928_v21  ;;  %4482 = vmatprep.subr.bf16.mxu0 %v7062_v2 }
 0xbb0   :  { %v1908_v14 = vpop.f32.mrf.mxu0 }
 0xbb1   :  { %v1929_v39 = vadd.f32 %v1908_v14, %v5966_v26  ;;  %v1951_v18 = vsel %vm178_vm0, %v6091_v56, 0.0 }
 0xbb2   :  { %1952 = vadd.xlane.f32.xlu0 %v1951_v18  ;;  %v4425_v33 = vpop.f32.mrf.mxu0 }
 0xbb3   :  { %v6096_v0 = vadd.f32 %v3883_v35, %v1929_v39 }
 0xbb4   :  { %v1913_v13 = vpop.f32.mrf.mxu0 }
 0xbb5   :  { %v1930_v27 = vadd.f32 %v1913_v13, %v5973_v20  ;;  %v1954_v41 = vsel %vm178_vm0, %v6096_v0, 0.0 }
 0xbb6   :  { %1955 = vadd.xlane.f32.xlu1 %v1954_v41  ;;  %v4428_v44 = vpop.f32.mrf.mxu0 }
 0xbb7   :  { %v6101_v19 = vadd.f32 %v3883_v35, %v1930_v27 }
 0xbb8   :  { %v1916_v52 = vpop.f32.mrf.mxu0 }
 0xbb9   :  { %7076 = vst [vmem:[#allocation5_spill] sm:$0xff] %v6101_v19  ;;  %v1931_v26 = vadd.f32 %v1916_v52, %v5978_v10  ;;  %v1957_v12 = vsel %vm178_vm0, %v6101_v19, 0.0 }
 0xbba   :  { %1958 = vadd.xlane.f32.xlu0 %v1957_v12  ;;  %v4429_v58 = vpop.f32.mrf.mxu0 }
 0xbbb   :  { %v6106_v42 = vadd.f32 %v3883_v35, %v1931_v26 }
 0xbbc   :  { %v1921_v62 = vpop.f32.mrf.mxu0 }
 0xbbd   :  { %7077 = vst [vmem:[#allocation6_spill] sm:$0xff] %v6106_v42  ;;  %v1932_v20 = vadd.f32 %v1921_v62, %v5983_v48  ;;  %v1960_v53 = vsel %vm178_vm0, %v6106_v42, 0.0 }
 0xbbe   :  { %1961 = vadd.xlane.f32.xlu1 %v1960_v53  ;;  %v4432_v28 = vpop.f32.mrf.mxu0 }
 0xbbf   :  { %v6111_v34 = vadd.f32 %v3883_v35, %v1932_v20  ;;  %v3886_v28 = vld [vmem:[%s7058_s3 + $0x1] ss:$0 sm:$0xff] }
 0xbc0   :  { %v1924_v7 = vpop.f32.mrf.mxu0 }
 0xbc1   :  { %7078 = vst [vmem:[#allocation7_spill] sm:$0xff] %v6111_v34  ;;  %v1933_v10 = vadd.f32 %v1924_v7, %v5987_v45  ;;  %v1963_v55 = vsel %vm178_vm0, %v6111_v34, 0.0 }
 0xbc2   :  { %1964 = vadd.xlane.f32.xlu0 %v1963_v55  ;;  %v4433_v63 = vpop.f32.mrf.mxu0 }
 0xbc3   :  { %v6116_v1 = vadd.f32 %v3883_v35, %v1933_v10  ;;  %v4715_v35 = vld [vmem:[%s7057_s26 + $0x10] sm:$0xff]  }
 0xbc4   :  { %4437 = vmatpush3.bf16.msra.mxu1 %v4715_v35 }
 0xbc5   :  { %7079 = vst [vmem:[#allocation8_spill] sm:$0xff] %v6116_v1  ;;  %v1966_v48 = vsel %vm178_vm0, %v6116_v1, 0.0  ;;  %4466 = vmatprep.subr.bf16.mxu1 %v7062_v2 }
 0xbc6   :  { %1967 = vadd.xlane.f32.xlu1 %v1966_v48 }
 0xc3b   :  { %v1953_v46 = vpop.xlane.xlu0 %1952 }
 0xc3c   :  { %v1969_v32 = vmul.f32 0.03125, %v1953_v46 }
 0xc3e   :  { %v6121_v8 = vsub.f32 %v6091_v56, %v1969_v32  ;;  %v3887_v32 = vld [vmem:[%s7059_s4 + $0x1] ss:$0 sm:$0xff] }
 0xc3f   :  { %v1956_v38 = vpop.xlane.xlu1 %1955 }
 0xc40   :  { %v1970_v6 = vmul.f32 0.03125, %v1956_v38  ;;  %v1981_v45 = vmul.f32 %v6121_v8, %v6121_v8 }
 0xc42   :  { %v6126_v40 = vsub.f32 %v6096_v0, %v1970_v6  ;;  %v1987_v29 = vsel %vm178_vm0, %v1981_v45, 0.0 }
 0xc43   :  { %v1959_v47 = vpop.xlane.xlu0 %1958  ;;  %1988 = vadd.xlane.f32.xlu0 %v1987_v29 }
 0xc44   :  { %v1971_v60 = vmul.f32 0.03125, %v1959_v47  ;;  %v1982_v50 = vmul.f32 %v6126_v40, %v6126_v40 }
 0xc46   :  { %v6132_v30 = vsub.f32 %v6101_v19, %v1971_v60  ;;  %v1990_v24 = vsel %vm178_vm0, %v1982_v50, 0.0  ;;  %v4716_v60 = vld [vmem:[%s7014_s12 + $0x18] sm:$0xff]  }
 0xc47   :  { %v1962_v43 = vpop.xlane.xlu1 %1961  ;;  %1991 = vadd.xlane.f32.xlu1 %v1990_v24 }
 0xc48   :  { %v1972_v31 = vmul.f32 0.03125, %v1962_v43  ;;  %v1983_v49 = vmul.f32 %v6132_v30, %v6132_v30  ;;  %v4717_v43 = vld [vmem:[%s7014_s12 + $0x10] sm:$0xff]  }
 0xc4a   :  { %v6138_v36 = vsub.f32 %v6106_v42, %v1972_v31  ;;  %v1993_v51 = vsel %vm178_vm0, %v1983_v49, 0.0 }
 0xc4b   :  { %1994 = vadd.xlane.f32.xlu0 %v1993_v51  ;;  %v1965_v37 = vpop.xlane.xlu0 %1964 }
 0xc4c   :  { %v1973_v3 = vmul.f32 0.03125, %v1965_v37  ;;  %v1984_v5 = vmul.f32 %v6138_v36, %v6138_v36 }
 0xc4e   :  { %v6144_v57 = vsub.f32 %v6111_v34, %v1973_v3  ;;  %v1996_v11 = vsel %vm178_vm0, %v1984_v5, 0.0 }
 0xc4f   :  { %1997 = vadd.xlane.f32.xlu1 %v1996_v11  ;;  %v1968_v25 = vpop.xlane.xlu1 %1967 }
 0xc50   :  { %v1974_v16 = vmul.f32 0.03125, %v1968_v25  ;;  %v1985_v61 = vmul.f32 %v6144_v57, %v6144_v57 }
 0xc52   :  { %v6150_v23 = vsub.f32 %v6116_v1, %v1974_v16  ;;  %v1999_v22 = vsel %vm178_vm0, %v1985_v61, 0.0 }
 0xc53   :  { %2000 = vadd.xlane.f32.xlu0 %v1999_v22 }
 0xc54   :  { %v1986_v4 = vmul.f32 %v6150_v23, %v6150_v23 }
 0xc56   :  { %v2002_v9 = vsel %vm178_vm0, %v1986_v4, 0.0 }
 0xc57   :  { %2003 = vadd.xlane.f32.xlu1 %v2002_v9 }
 0xccc   :  { %v1989_v21 = vpop.xlane.xlu0 %1988 }
 0xccd   :  { %v2005_v54 = vmul.f32 0.03125, %v1989_v21 }
 0xccf   :  { %v2011_v14 = vadd.f32 1e-06, %v2005_v54 }
 0xcd0   :  { %v1992_v39 = vpop.xlane.xlu1 %1991 }
 0xcd1   :  { %4860 = vrsqrt.f32 %v2011_v14  ;;  %v2006_v18 = vmul.f32 0.03125, %v1992_v39  ;;  %v6233_v39 = vld [vmem:[%s7060_s0 + $0x2] ss:$0 sm:$0xff] }
 0xcd3   :  { %v2012_v33 = vadd.f32 1e-06, %v2006_v18 }
 0xcd4   :  { %v1995_v13 = vpop.xlane.xlu0 %1994 }
 0xcd5   :  { %4862 = vrsqrt.f32 %v2012_v33  ;;  %v2007_v27 = vmul.f32 0.03125, %v1995_v13  ;;  %v6242_v33 = vld [vmem:[%s7060_s0 + $0x3] ss:$0 sm:$0xff] }
 0xcd7   :  { %v2013_v41 = vadd.f32 1e-06, %v2007_v27 }
 0xcd8   :  { %v1998_v44 = vpop.xlane.xlu1 %1997 }
 0xcd9   :  { %4864 = vrsqrt.f32 %v2013_v41  ;;  %v2008_v52 = vmul.f32 0.03125, %v1998_v44 }
 0xcdb   :  { %v2014_v26 = vadd.f32 1e-06, %v2008_v52 }
 0xcdc   :  { %v2001_v12 = vpop.xlane.xlu0 %2000 }
 0xcdd   :  { %4866 = vrsqrt.f32 %v2014_v26  ;;  %v2009_v58 = vmul.f32 0.03125, %v2001_v12 }
 0xcde   :  { %v4861_v62 = vpop.eup %4860 }
 0xcdf   :  { %v2023_v20 = vmul.f32 %v4861_v62, %v6121_v8  ;;  %v2015_v53 = vadd.f32 1e-06, %v2009_v58 }
 0xce0   :  { %v2004_v7 = vpop.xlane.xlu1 %2003 }
 0xce1   :  { %4868 = vrsqrt.f32 %v2015_v53  ;;  %v2010_v10 = vmul.f32 0.03125, %v2004_v7  ;;  %v2035_v63 = vmul.f32 %v3886_v28, %v2023_v20 }
 0xce2   :  { %v4863_v55 = vpop.eup %4862 }
 0xce3   :  { %v2024_v48 = vmul.f32 %v4863_v55, %v6126_v40  ;;  %v2016_v46 = vadd.f32 1e-06, %v2010_v10  ;;  %v2047_v6 = vadd.f32 %v3887_v32, %v2035_v63 }
 0xce5   :  { %v2036_v38 = vmul.f32 %v3886_v28, %v2024_v48  ;;  %4870 = vrsqrt.f32 %v2016_v46 }
 0xce6   :  { %v4865_v8 = vpop.eup %4864 }
 0xce7   :  { %v2048_v45 = vadd.f32 %v3887_v32, %v2036_v38  ;;  %v2025_v29 = vmul.f32 %v4865_v8, %v6132_v30 }
 0xce9   :  { %v2058_v47 = vpack.c.bf16 %v2048_v45, %v2047_v6  ;;  %v2037_v24 = vmul.f32 %v3886_v28, %v2025_v29 }
 0xcea   :  { %v4867_v50 = vpop.eup %4866 }
 0xceb   :  { %4439 = vmatmul.mubr.msk.bf16.vlgmr.msra.gmra.mxu1 %vm178_vm0, %v2058_v47  ;;  %4455 = vmatmul.mubr.msk.bf16.vlgmr.msra.gmra.mxu0 %vm178_vm0, %v2058_v47  ;;  %v2026_v40 = vmul.f32 %v4867_v50, %v6138_v36  ;;  %v2049_v49 = vadd.f32 %v3887_v32, %v2037_v24  ;;  %v3904_v50 = vld [vmem:[%s7013_s11 + $0x1] ss:$0 sm:$0xff] }
 0xcec   :  { %4442 = vmatprep.mubr.msk.bf16.mxu1 %vm5034_vm2, %v7062_v2  ;;  %4458 = vmatprep.mubr.msk.bf16.mxu0 %vm5034_vm2, %v7062_v2 }
 0xced   :  { %v2038_v30 = vmul.f32 %v3886_v28, %v2026_v40  ;;  %4467 = vmatpush3.bf16.msra.mxu1 %v4716_v60 }
 0xcee   :  { %v4869_v31 = vpop.eup %4868  ;;  %4468 = vmatprep.subr.bf16.mxu1 %v7062_v2 }
 0xcef   :  { %v2050_v51 = vadd.f32 %v3887_v32, %v2038_v30  ;;  %v2027_v36 = vmul.f32 %v4869_v31, %v6144_v57 }
 0xcf1   :  { %v2059_v37 = vpack.c.bf16 %v2050_v51, %v2049_v49  ;;  %4469 = vmatpush3.bf16.msra.mxu1 %v4717_v43  ;;  %v2039_v11 = vmul.f32 %v3886_v28, %v2027_v36 }
 0xcf2   :  { %v4871_v3 = vpop.eup %4870  ;;  %4500 = vmatprep.subr.bf16.mxu1 %v7062_v2 }
 0xcf3   :  { %4443 = vmatmul.mubr.msk.bf16.gmra.mxu1 %vm178_vm0, %v2059_v37  ;;  %4459 = vmatmul.mubr.msk.bf16.gmra.mxu0 %vm178_vm0, %v2059_v37  ;;  %v2028_v5 = vmul.f32 %v4871_v3, %v6150_v23  ;;  %v2051_v57 = vadd.f32 %v3887_v32, %v2039_v11  ;;  %v3893_v23 = vld [vmem:[%s7011_s9 + $0x1] ss:$0 sm:$0xff] }
 0xcf4   :  { %4446 = vmatprep.mubr.msk.bf16.mxu1 %vm5034_vm2, %v7062_v2  ;;  %4462 = vmatprep.mubr.msk.bf16.mxu0 %vm5034_vm2, %v7062_v2 }
 0xcf5   :  { %v2040_v25 = vmul.f32 %v3886_v28, %v2028_v5 }
 0xcf7   :  { %v2052_v16 = vadd.f32 %v3887_v32, %v2040_v25  ;;  %v3915_v25 = vld [vmem:[%s7015_s13 + $0x1] ss:$0 sm:$0xff] }
 0xcf9   :  { %v2060_v61 = vpack.c.bf16 %v2052_v16, %v2051_v57 }
 0xcfb   :  { %4447 = vmatmul.mubr.msk.bf16.gmra.mxu1 %vm178_vm0, %v2060_v61  ;;  %4463 = vmatmul.mubr.msk.bf16.gmra.mxu0 %vm178_vm0, %v2060_v61 }
 0xcfc   :  { %4470 = vmatprep.mubr.msk.bf16.mxu1 %vm5034_vm2, %v7062_v2  ;;  %4488 = vmatprep.mubr.msk.bf16.mxu0 %vm5034_vm2, %v7062_v2 }
 0xd03   :  { %4471 = vmatmul.mubr.msk.bf16.vlgmr.msra.gmra.mxu1 %vm178_vm0, %v2058_v47 }
 0xd04   :  { %4474 = vmatprep.mubr.msk.bf16.mxu1 %vm5034_vm2, %v7062_v2 }
 0xd0b   :  { %4475 = vmatmul.mubr.msk.bf16.gmra.mxu1 %vm178_vm0, %v2059_v37 }
 0xd0c   :  { %4478 = vmatprep.mubr.msk.bf16.mxu1 %vm5034_vm2, %v7062_v2 }
 0xd13   :  { %4479 = vmatmul.mubr.msk.bf16.gmra.mxu1 %vm178_vm0, %v2060_v61 }
 0xd14   :  { %4506 = vmatprep.mubr.msk.bf16.mxu1 %vm5034_vm2, %v7062_v2 }
 0xdab   :  { %v2124_v22 = vpop.f32.mrf.mxu1  ;;  %v6222_v4 = vpop.f32.mrf.mxu0 }
 0xdac   :  { %v6224_v59 = vadd.f32 %v3893_v23, %v2124_v22 }
 0xdad   :  { %v4440_v9 = vpop.f32.mrf.mxu1  ;;  %v4456_v17 = vpop.f32.mrf.mxu0 }
 0xdae   :  { %v6237_v18 = vmul.f32 %v6233_v39, %v6224_v59  ;;  %v6246_v13 = vmul.f32 %v6242_v33, %v6224_v59 }
 0xdaf   :  { %v2127_v15 = vpop.f32.mrf.mxu1  ;;  %v6226_v35 = vpop.f32.mrf.mxu0 }
 0xdb0   :  { %v6228_v21 = vadd.f32 %v3893_v23, %v2127_v15 }
 0xdb1   :  { %v4441_v54 = vpop.f32.mrf.mxu1  ;;  %v4457_v14 = vpop.f32.mrf.mxu0 }
 0xdb2   :  { %v6250_v27 = vmul.f32 %v6233_v39, %v6228_v21  ;;  %v6254_v41 = vmul.f32 %v6242_v33, %v6228_v21 }
 0xdb3   :  { %v2132_v44 = vpop.f32.mrf.mxu1  ;;  %v2214_v52 = vpop.f32.mrf.mxu0 }
 0xdb4   :  { %v6260_v20 = vadd.f32 %v3893_v23, %v2132_v44  ;;  %v2215_v15 = vadd.f32 %v3904_v50, %v2214_v52 }
 0xdb5   :  { %v4444_v58 = vpop.f32.mrf.mxu1  ;;  %v4460_v62 = vpop.f32.mrf.mxu0 }
 0xdb6   :  { %v6266_v63 = vmul.f32 %v6233_v39, %v6260_v20  ;;  %v6270_v48 = vmul.f32 %v6242_v33, %v6260_v20 }
 0xdb7   :  { %v2135_v53 = vpop.f32.mrf.mxu1  ;;  %v2217_v28 = vpop.f32.mrf.mxu0 }
 0xdb8   :  { %v6262_v7 = vadd.f32 %v3893_v23, %v2135_v53 }
 0xdb9   :  { %v4445_v10 = vpop.f32.mrf.mxu1  ;;  %v4461_v55 = vpop.f32.mrf.mxu0 }
 0xdba   :  { %v6274_v46 = vmul.f32 %v6233_v39, %v6262_v7  ;;  %v6278_v32 = vmul.f32 %v6242_v33, %v6262_v7 }
 0xdbb   :  { %v2140_v38 = vpop.f32.mrf.mxu1  ;;  %v2222_v8 = vpop.f32.mrf.mxu0 }
 0xdbc   :  { %v6284_v60 = vadd.f32 %v3893_v23, %v2140_v38  ;;  %v2223_v31 = vadd.f32 %v3904_v50, %v2222_v8  ;;  %v2210_v38 = vadd.f32 %v3904_v50, %v6226_v35 }
 0xdbd   :  { %v4448_v29 = vpop.f32.mrf.mxu1  ;;  %v4464_v47 = vpop.f32.mrf.mxu0 }
 0xdbe   :  { %v6293_v36 = vmul.f32 %v6233_v39, %v6284_v60  ;;  %v6297_v37 = vmul.f32 %v6242_v33, %v6284_v60 }
 0xdbf   :  { %v2143_v40 = vpop.f32.mrf.mxu1  ;;  %v2225_v24 = vpop.f32.mrf.mxu0 }
 0xdc0   :  { %v6289_v30 = vadd.f32 %v3893_v23, %v2143_v40  ;;  %v2226_v43 = vadd.f32 %v3904_v50, %v2225_v24  ;;  %v2218_v23 = vadd.f32 %v3904_v50, %v2217_v28  ;;  %v2207_v24 = vadd.f32 %v3904_v50, %v6222_v4 }
 0xdc1   :  { %v4449_v49 = vpop.f32.mrf.mxu1  ;;  %v4465_v51 = vpop.f32.mrf.mxu0 }
 0xdc2   :  { %v6301_v3 = vmul.f32 %v6233_v39, %v6289_v30  ;;  %v6305_v5 = vmul.f32 %v6242_v33, %v6289_v30  ;;  %v2322_v11 = vpack.c.bf16 %v2226_v43, %v2223_v31  ;;  %v2321_v44 = vpack.c.bf16 %v2218_v23, %v2215_v15 }
 0xdc3   :  { %v2288_v57 = vpop.f32.mrf.mxu1  ;;  %v2320_v35 = vpack.c.bf16 %v2210_v38, %v2207_v24  ;;  %v6384_v38 = vld [vmem:[%s7060_s0 + $0x1] ss:$0 sm:$0xff] }
 0xdc4   :  { %v6315_v9 = vsel %vm178_vm0, %v2322_v11, 0  ;;  %v6317_v17 = vadd.f32 %v3915_v25, %v2288_v57  ;;  %v6345_v29 = vsel %vm178_vm0, %v2321_v44, 0 }
 0xdc5   :  { %v4472_v22 = vpop.f32.mrf.mxu1  ;;  %4483 = vmatpush3.bf16.xpose.msra.mxu0 %v6315_v9  ;;  %4501 = vmatpush3.bf16.xpose.msra.mxu1 %v6315_v9 }
 0xdc6   :  { %4484 = vmatprep.subr.bf16.mxu0 %v7062_v2  ;;  %4502 = vmatprep.subr.bf16.mxu1 %v7062_v2  ;;  %v6327_v62 = vmul.f32 %v6233_v39, %v6317_v17  ;;  %v6339_v28 = vmul.f32 %v6242_v33, %v6317_v17 }
 0xdc7   :  { %v2291_v54 = vpop.f32.mrf.mxu1 }
 0xdc8   :  { %v6322_v14 = vadd.f32 %v3915_v25, %v2291_v54  ;;  %v6369_v54 = vsel %vm178_vm0, %v2320_v35, 0  ;;  %v2476_v35 = vmul.f32 %v6384_v38, %v6224_v59 }
 0xdc9   :  { %v4473_v58 = vpop.f32.mrf.mxu1 }
 0xdca   :  { %v6331_v53 = vmul.f32 %v6233_v39, %v6322_v14  ;;  %v6335_v52 = vmul.f32 %v6242_v33, %v6322_v14  ;;  %v6377_v58 = vld [vmem:[%s7060_s0] ss:$0 sm:$0xff] }
 0xdcb   :  { %v2296_v10 = vpop.f32.mrf.mxu1 }
 0xdcc   :  { %v2297_v40 = vadd.f32 %v3915_v25, %v2296_v10  ;;  %v2312_v10 = vmul.f32 %v6377_v58, %v6228_v21 }
 0xdcd   :  { %v4476_v8 = vpop.f32.mrf.mxu1  ;;  %4485 = vmatpush3.bf16.xpose.msra.mxu0 %v6345_v29  ;;  %4503 = vmatpush3.bf16.xpose.msra.mxu1 %v6345_v29 }
 0xdce   :  { %4486 = vmatprep.subr.bf16.mxu0 %v7062_v2  ;;  %4504 = vmatprep.subr.bf16.mxu1 %v7062_v2  ;;  %v6355_v51 = vmul.f32 %v6233_v39, %v2297_v40  ;;  %v6364_v4 = vmul.f32 %v6242_v33, %v2297_v40  ;;  %v2477_v8 = vmul.f32 %v6384_v38, %v6228_v21 }
 0xdcf   :  { %v2299_v43 = vpop.f32.mrf.mxu1 }
 0xdd0   :  { %v2300_v31 = vadd.f32 %v3915_v25, %v2299_v43  ;;  %v2311_v43 = vmul.f32 %v6377_v58, %v6224_v59  ;;  %v2482_v61 = vpack.c.bf16 %v2477_v8, %v2476_v35  ;;  %v2315_v35 = vmul.f32 %v6377_v58, %v6284_v60 }
 0xdd1   :  { %v4477_v49 = vpop.f32.mrf.mxu1 }
 0xdd2   :  { %v6358_v11 = vmul.f32 %v6233_v39, %v2300_v31  ;;  %v6361_v57 = vmul.f32 %v6242_v33, %v2300_v31  ;;  %v2620_v45 = vmul.f32 %v6384_v38, %v2300_v31  ;;  %v2467_v6 = vmul.f32 %v6377_v58, %v2300_v31 }
 0xdd3   :  { %v2304_v50 = vpop.f32.mrf.mxu1  ;;  %v2618_v31 = vmul.f32 %v6384_v38, %v6322_v14 }
 0xdd4   :  { %v2305_v22 = vadd.f32 %v3915_v25, %v2304_v50 }
 0xdd5   :  { %v4480_v15 = vpop.f32.mrf.mxu1  ;;  %4487 = vmatpush3.bf16.xpose.msra.mxu0 %v6369_v54  ;;  %4505 = vmatpush3.bf16.xpose.msra.mxu1 %v6369_v54 }
 0xdd6   :  { %4518 = vmatprep.subr.bf16.mxu0 %v7062_v2  ;;  %4536 = vmatprep.subr.bf16.mxu1 %v7062_v2  ;;  %v2468_v50 = vmul.f32 %v6377_v58, %v2305_v22  ;;  %v2621_v15 = vmul.f32 %v6384_v38, %v2305_v22  ;;  %v6398_v21 = vmul.f32 %v6233_v39, %v2305_v22 }
 0xdd7   :  { %v2307_v24 = vpop.f32.mrf.mxu1  ;;  %v6401_v47 = vmul.f32 %v6242_v33, %v2305_v22 }
 0xdd8   :  { %v2308_v49 = vadd.f32 %v3915_v25, %v2307_v24  ;;  %v2317_v24 = vpack.c.bf16 %v2312_v10, %v2311_v43 }
 0xdd9   :  { %v4481_v44 = vpop.f32.mrf.mxu1 }
 0xdda   :  { %v2469_v55 = vmul.f32 %v6377_v58, %v2308_v49  ;;  %v2622_v23 = vmul.f32 %v6384_v38, %v2308_v49  ;;  %v6406_v59 = vmul.f32 %v6233_v39, %v2308_v49  ;;  %v6409_v25 = vmul.f32 %v6242_v33, %v2308_v49 }
 0xddb   :  { %v2619_v39 = vmul.f32 %v6384_v38, %v2297_v40  ;;  %v2314_v33 = vmul.f32 %v6377_v58, %v6262_v7  ;;  %v2480_v49 = vmul.f32 %v6384_v38, %v6284_v60 }
 0xddc   :  { %v2628_v12 = vpack.c.bf16 %v2622_v23, %v2621_v15  ;;  %v2475_v16 = vpack.c.bf16 %v2469_v55, %v2468_v50  ;;  %4489 = vmatmul.mubr.msk.bf16.vlgmr.msra.gmra.mxu0 %vm178_vm0, %v2317_v24  ;;  %4507 = vmatmul.mubr.msk.bf16.vlgmr.msra.gmra.mxu1 %vm178_vm0, %v2482_v61  ;;  %v2466_v55 = vmul.f32 %v6377_v58, %v2297_v40  ;;  %v6472_v24 = vld [vmem:[%s7061_s5] sm:$0xff] }
 0xddd   :  { %v2479_v23 = vmul.f32 %v6384_v38, %v6262_v7  ;;  %v2627_v10 = vpack.c.bf16 %v2620_v45, %v2619_v39  ;;  %4492 = vmatprep.mubr.msk.bf16.mxu0 %vm5034_vm2, %v7062_v2  ;;  %4510 = vmatprep.mubr.msk.bf16.mxu1 %vm5034_vm2, %v7062_v2  ;;  %v2478_v7 = vmul.f32 %v6384_v38, %v6260_v20 }
 0xdde   :  { %4519 = vmatpush3.bf16.msra.mxu0 %v2628_v12  ;;  %4537 = vmatpush3.bf16.msra.mxu1 %v2475_v16  ;;  %v2313_v12 = vmul.f32 %v6377_v58, %v6260_v20  ;;  %v2465_v16 = vmul.f32 %v6377_v58, %v6322_v14  ;;  %v2474_v61 = vpack.c.bf16 %v2467_v6, %v2466_v55 }
 0xddf   :  { %4520 = vmatprep.subr.bf16.mxu0 %v7062_v2  ;;  %4538 = vmatprep.subr.bf16.mxu1 %v7062_v2  ;;  %v2617_v40 = vmul.f32 %v6384_v38, %v6317_v17  ;;  %v2464_v45 = vmul.f32 %v6377_v58, %v6317_v17  ;;  %v2483_v43 = vpack.c.bf16 %v2479_v23, %v2478_v7 }
 0xde0   :  { %v2318_v8 = vpack.c.bf16 %v2314_v33, %v2313_v12  ;;  %v2316_v20 = vmul.f32 %v6377_v58, %v6289_v30  ;;  %v2481_v17 = vmul.f32 %v6384_v38, %v6289_v30 }
 0xde1   :  { %v2626_v6 = vpack.c.bf16 %v2618_v31, %v2617_v40  ;;  %v2473_v14 = vpack.c.bf16 %v2465_v16, %v2464_v45  ;;  %v6481_v31 = vld [vmem:[%s7061_s5 + $0x8] sm:$0xff]  ;;  %v6490_v45 = vld [vmem:[%s7061_s5 + $0x10] sm:$0xff] }
 0xde2   :  { %4521 = vmatpush3.bf16.msra.mxu0 %v2627_v10  ;;  %4539 = vmatpush3.bf16.msra.mxu1 %v2474_v61  ;;  %v2319_v50 = vpack.c.bf16 %v2316_v20, %v2315_v35  ;;  %v2484_v15 = vpack.c.bf16 %v2481_v17, %v2480_v49  ;;  %v6499_v35 = vld [vmem:[%s7061_s5 + $0x18] sm:$0xff] }
 0xde3   :  { %4522 = vmatprep.subr.bf16.mxu0 %v7062_v2  ;;  %4540 = vmatprep.subr.bf16.mxu1 %v7062_v2 }
 0xde4   :  { %4493 = vmatmul.mubr.msk.bf16.gmra.mxu0 %vm178_vm0, %v2318_v8  ;;  %4511 = vmatmul.mubr.msk.bf16.gmra.mxu1 %vm178_vm0, %v2483_v43 }
 0xde5   :  { %4496 = vmatprep.mubr.msk.bf16.mxu0 %vm5034_vm2, %v7062_v2  ;;  %4514 = vmatprep.mubr.msk.bf16.mxu1 %vm5034_vm2, %v7062_v2 }
 0xde6   :  { %4523 = vmatpush3.bf16.msra.mxu0 %v2626_v6  ;;  %4541 = vmatpush3.bf16.msra.mxu1 %v2473_v14 }
 0xde7   :  { %4554 = vmatprep.subr.bf16.mxu0 %v7062_v2  ;;  %4572 = vmatprep.subr.bf16.mxu1 %v7062_v2 }
 0xdec   :  { %4497 = vmatmul.mubr.msk.bf16.gmra.mxu0 %vm178_vm0, %v2319_v50  ;;  %4515 = vmatmul.mubr.msk.bf16.gmra.mxu1 %vm178_vm0, %v2484_v15 }
 0xded   :  { %4524 = vmatprep.mubr.msk.bf16.mxu0 %vm5034_vm2, %v7062_v2  ;;  %4542 = vmatprep.mubr.msk.bf16.mxu1 %vm5034_vm2, %v7062_v2 }
 0xe9c   :  { %v6467_v30 = vpop.f32.mrf.mxu0  ;;  %v2528_v58 = vpop.f32.mrf.mxu1 }
 0xe9d   :  { %v2529_v60 = vadd.f32 %v6472_v24, %v2528_v58 }
 0xe9e   :  { %v4490_v38 = vpop.f32.mrf.mxu0  ;;  %v4508_v39 = vpop.f32.mrf.mxu1 }
 0xe9f   :  { %v2551_v55 = vsel %vm113_vm1, %v2529_v60, -inf }
 0xea0   :  { %v6475_v33 = vpop.f32.mrf.mxu0  ;;  %2552 = vmax.xlane.f32.xlu0 %v2551_v55  ;;  %v2531_v23 = vpop.f32.mrf.mxu1  ;;  %v6508_v55 = vld [vmem:[%s7061_s5 + $0x20] sm:$0xff] }
 0xea1   :  { %v2532_v10 = vadd.f32 %v6481_v31, %v2531_v23 }
 0xea2   :  { %v4491_v12 = vpop.f32.mrf.mxu0  ;;  %v4509_v16 = vpop.f32.mrf.mxu1 }
 0xea3   :  { %v2554_v7 = vsel %vm113_vm1, %v2532_v10, -inf }
 0xea4   :  { %v6484_v61 = vpop.f32.mrf.mxu0  ;;  %2555 = vmax.xlane.f32.xlu1 %v2554_v7  ;;  %v2536_v40 = vpop.f32.mrf.mxu1 }
 0xea5   :  { %v2537_v8 = vadd.f32 %v6490_v45, %v2536_v40 }
 0xea6   :  { %v4494_v43 = vpop.f32.mrf.mxu0  ;;  %v4512_v6 = vpop.f32.mrf.mxu1 }
 0xea7   :  { %v2557_v20 = vsel %vm113_vm1, %v2537_v8, -inf  ;;  %v6517_v6 = vld [vmem:[%s7061_s5 + $0x28] sm:$0xff] }
 0xea8   :  { %v6493_v14 = vpop.f32.mrf.mxu0  ;;  %2558 = vmax.xlane.f32.xlu0 %v2557_v20  ;;  %v2539_v17 = vpop.f32.mrf.mxu1 }
 0xea9   :  { %v2540_v49 = vadd.f32 %v6499_v35, %v2539_v17 }
 0xeaa   :  { %v4495_v50 = vpop.f32.mrf.mxu0  ;;  %v4513_v15 = vpop.f32.mrf.mxu1 }
 0xeab   :  { %v2560_v38 = vsel %vm113_vm1, %v2540_v49, -inf }
 0xeac   :  { %v6502_v58 = vpop.f32.mrf.mxu0  ;;  %2561 = vmax.xlane.f32.xlu1 %v2560_v38  ;;  %v2544_v39 = vpop.f32.mrf.mxu1 }
 0xead   :  { %v2545_v23 = vadd.f32 %v6508_v55, %v2544_v39 }
 0xeae   :  { %v4498_v12 = vpop.f32.mrf.mxu0  ;;  %v4516_v16 = vpop.f32.mrf.mxu1 }
 0xeaf   :  { %v2563_v40 = vsel %vm113_vm1, %v2545_v23, -inf }
 0xeb0   :  { %v6511_v7 = vpop.f32.mrf.mxu0  ;;  %2564 = vmax.xlane.f32.xlu0 %v2563_v40  ;;  %v2547_v43 = vpop.f32.mrf.mxu1 }
 0xeb1   :  { %v2548_v20 = vadd.f32 %v6517_v6, %v2547_v43 }
 0xeb2   :  { %v4499_v17 = vpop.f32.mrf.mxu0  ;;  %v4517_v50 = vpop.f32.mrf.mxu1 }
 0xeb3   :  { %v2566_v15 = vsel %vm113_vm1, %v2548_v20, -inf }
 0xeb4   :  { %2567 = vmax.xlane.f32.xlu1 %v2566_v15 }
 0xf29   :  { %v2553_v38 = vpop.xlane.xlu0 %2552 }
 0xf2a   :  { %v2569_v39 = vsub.f32 %v2529_v60, %v2553_v38 }
 0xf2c   :  { %v2575_v12 = vmul.f32 1.442695, %v2569_v39 }
 0xf2d   :  { %v2556_v16 = vpop.xlane.xlu1 %2555 }
 0xf2e   :  { %4872 = vpow2.f32 %v2575_v12  ;;  %v2570_v44 = vsub.f32 %v2532_v10, %v2556_v16  ;;  %v6532_v12 = vadd.f32 %v6481_v31, %v6475_v33  ;;  %v6536_v16 = vadd.f32 %v6490_v45, %v6484_v61 }
 0xf30   :  { %v2577_v40 = vmul.f32 1.442695, %v2570_v44  ;;  %v2404_v33 = vsel %vm113_vm1, %v6536_v16, -inf  ;;  %v2401_v61 = vsel %vm113_vm1, %v6532_v12, -inf }
 0xf31   :  { %v2559_v22 = vpop.xlane.xlu0 %2558 }
 0xf32   :  { %4874 = vpow2.f32 %v2577_v40  ;;  %v2571_v26 = vsub.f32 %v2537_v8, %v2559_v22 }
 0xf34   :  { %v2579_v1 = vmul.f32 1.442695, %v2571_v26 }
 0xf35   :  { %v2562_v34 = vpop.xlane.xlu1 %2561 }
 0xf36   :  { %4876 = vpow2.f32 %v2579_v1  ;;  %v2572_v42 = vsub.f32 %v2540_v49, %v2562_v34  ;;  %v6527_v49 = vadd.f32 %v6472_v24, %v6467_v30  ;;  %v6543_v30 = vadd.f32 %v6499_v35, %v6493_v14 }
 0xf38   :  { %v2581_v43 = vmul.f32 1.442695, %v2572_v42  ;;  %v2398_v40 = vsel %vm113_vm1, %v6527_v49, -inf }
 0xf39   :  { %v2565_v17 = vpop.xlane.xlu0 %2564 }
 0xf3a   :  { %4878 = vpow2.f32 %v2581_v43  ;;  %v2573_v50 = vsub.f32 %v2545_v23, %v2565_v17  ;;  %v6547_v17 = vadd.f32 %v6508_v55, %v6502_v58 }
 0xf3b   :  { %v4873_v19 = vpop.eup %4872 }
 0xf3c   :  { %v2583_v15 = vmul.f32 1.442695, %v2573_v50  ;;  %v2587_v60 = vsel %vm113_vm1, %v4873_v19, 0.0  ;;  %v6555_v50 = vadd.f32 %v6517_v6, %v6511_v7  ;;  %v2410_v14 = vsel %vm113_vm1, %v6547_v17, -inf }
 0xf3d   :  { %2588 = vadd.xlane.f32.xlu0 %v2587_v60  ;;  %v2568_v38 = vpop.xlane.xlu1 %2567 }
 0xf3e   :  { %4880 = vpow2.f32 %v2583_v15  ;;  %v2574_v10 = vsub.f32 %v2548_v20, %v2568_v38  ;;  %v2407_v15 = vsel %vm113_vm1, %v6543_v30, -inf  ;;  %v2413_v58 = vsel %vm113_vm1, %v6555_v50, -inf }
 0xf3f   :  { %v4875_v44 = vpop.eup %4874 }
 0xf40   :  { %v2585_v39 = vmul.f32 1.442695, %v2574_v10  ;;  %v2590_v22 = vsel %vm113_vm1, %v4875_v44, 0.0 }
 0xf41   :  { %2591 = vadd.xlane.f32.xlu1 %v2590_v22 }
 0xf42   :  { %4882 = vpow2.f32 %v2585_v39 }
 0xf43   :  { %v4877_v1 = vpop.eup %4876 }
 0xf44   :  { %v2593_v42 = vsel %vm113_vm1, %v4877_v1, 0.0 }
 0xf45   :  { %2594 = vadd.xlane.f32.xlu0 %v2593_v42 }
 0xf47   :  { %v4879_v34 = vpop.eup %4878 }
 0xf48   :  { %v2596_v26 = vsel %vm113_vm1, %v4879_v34, 0.0 }
 0xf49   :  { %2597 = vadd.xlane.f32.xlu1 %v2596_v26 }
 0xf4b   :  { %v4881_v8 = vpop.eup %4880 }
 0xf4c   :  { %v2599_v23 = vsel %vm113_vm1, %v4881_v8, 0.0 }
 0xf4d   :  { %2600 = vadd.xlane.f32.xlu0 %v2599_v23 }
 0xf4f   :  { %v4883_v20 = vpop.eup %4882 }
 0xf50   :  { %v2602_v43 = vsel %vm113_vm1, %v4883_v20, 0.0 }
 0xf51   :  { %2399 = vmax.xlane.f32.xlu0 %v2398_v40  ;;  %2603 = vadd.xlane.f32.xlu1 %v2602_v43 }
 0xf55   :  { %2405 = vmax.xlane.f32.xlu0 %v2404_v33  ;;  %2402 = vmax.xlane.f32.xlu1 %v2401_v61 }
 0xf59   :  { %2411 = vmax.xlane.f32.xlu0 %v2410_v14  ;;  %2408 = vmax.xlane.f32.xlu1 %v2407_v15 }
 0xf5d   :  { %2414 = vmax.xlane.f32.xlu1 %v2413_v58 }
 0xfc6   :  { %v2589_v60 = vpop.xlane.xlu0 %2588 }
 0xfc7   :  { %4884 = vrcp.f32 %v2589_v60 }
 0xfca   :  { %v2592_v38 = vpop.xlane.xlu1 %2591 }
 0xfcb   :  { %4886 = vrcp.f32 %v2592_v38 }
 0xfce   :  { %v2595_v10 = vpop.xlane.xlu0 %2594 }
 0xfcf   :  { %4888 = vrcp.f32 %v2595_v10 }
 0xfd2   :  { %v2598_v7 = vpop.xlane.xlu1 %2597 }
 0xfd3   :  { %4890 = vrcp.f32 %v2598_v7 }
 0xfd4   :  { %v4885_v39 = vpop.eup %4884 }
 0xfd5   :  { %v2611_v26 = vmul.f32 %v4885_v39, %v4873_v19 }
 0xfd6   :  { %v2601_v22 = vpop.xlane.xlu0 %2600 }
 0xfd7   :  { %4892 = vrcp.f32 %v2601_v22 }
 0xfd8   :  { %v4887_v42 = vpop.eup %4886 }
 0xfd9   :  { %v2612_v23 = vmul.f32 %v4887_v42, %v4875_v44 }
 0xfda   :  { %v2604_v40 = vpop.xlane.xlu1 %2603 }
 0xfdb   :  { %v2623_v43 = vpack.c.bf16 %v2612_v23, %v2611_v26  ;;  %4894 = vrcp.f32 %v2604_v40 }
 0xfdc   :  { %v4889_v33 = vpop.eup %4888 }
 0xfdd   :  { %4525 = vmatmul.mubr.msk.bf16.vlgmr.msra.gmra.mxu0 %vm113_vm1, %v2623_v43  ;;  %v2613_v14 = vmul.f32 %v4889_v33, %v4877_v1  ;;  %v7080_v1 = vpack.c.bf16 %v6250_v27, %v6237_v18  ;;  %v7082_v18 = vpack.c.bf16 %v6301_v3, %v6293_v36  ;;  %v7083_v27 = vpack.c.bf16 %v6254_v41, %v6246_v13 }
 0xfde   :  { %4555 = vmatpush3.bf16.xpose.msra.mxu0 %v6315_v9  ;;  %4528 = vmatprep.mubr.msk.bf16.mxu0 %vm5034_vm2, %v7062_v2 }
 0xfdf   :  { %4556 = vmatprep.subr.bf16.mxu0 %v7062_v2 }
 0xfe0   :  { %v4891_v61 = vpop.eup %4890 }
 0xfe1   :  { %v2614_v15 = vmul.f32 %v4891_v61, %v4879_v34  ;;  %v7081_v34 = vpack.c.bf16 %v6274_v46, %v6266_v63  ;;  %v7084_v63 = vpack.c.bf16 %v6278_v32, %v6270_v48  ;;  %v7085_v46 = vpack.c.bf16 %v6305_v5, %v6297_v37 }
 0xfe3   :  { %v2624_v58 = vpack.c.bf16 %v2614_v15, %v2613_v14 }
 0xfe4   :  { %v4893_v19 = vpop.eup %4892 }
 0xfe5   :  { %4529 = vmatmul.mubr.msk.bf16.gmra.mxu0 %vm113_vm1, %v2624_v58  ;;  %v2615_v60 = vmul.f32 %v4893_v19, %v4881_v8 }
 0xfe6   :  { %4557 = vmatpush3.bf16.xpose.msra.mxu0 %v6345_v29  ;;  %4532 = vmatprep.mubr.msk.bf16.mxu0 %vm5034_vm2, %v7062_v2 }
 0xfe7   :  { %4558 = vmatprep.subr.bf16.mxu0 %v7062_v2 }
 0xfe8   :  { %v4895_v44 = vpop.eup %4894 }
 0xfe9   :  { %v2616_v38 = vmul.f32 %v4895_v44, %v4883_v20  ;;  %v2400_v44 = vpop.xlane.xlu0 %2399 }
 0xfeb   :  { %v2625_v10 = vpack.c.bf16 %v2616_v38, %v2615_v60 }
 0xfed   :  { %4533 = vmatmul.mubr.msk.bf16.gmra.mxu0 %vm113_vm1, %v2625_v10 }
 0xfee   :  { %4559 = vmatpush3.bf16.xpose.msra.mxu0 %v6369_v54  ;;  %4560 = vmatprep.mubr.msk.bf16.mxu0 %vm5034_vm2, %v7062_v2 }
 0xfef   :  { %4590 = vmatprep.subr.bf16.mxu0 %v7062_v2 }
 0xff5   :  { %4561 = vmatmul.mubr.msk.bf16.vlgmr.msra.gmra.mxu0 %vm178_vm0, %v7080_v1 }
 0xff6   :  { %4591 = vmatpush3.bf16.xpose.msra.mxu0 %v6315_v9  ;;  %4564 = vmatprep.mubr.msk.bf16.mxu0 %vm5034_vm2, %v7062_v2 }
 0xff7   :  { %4592 = vmatprep.subr.bf16.mxu0 %v7062_v2 }
 0xffd   :  { %4565 = vmatmul.mubr.msk.bf16.gmra.mxu0 %vm178_vm0, %v7081_v34 }
 0xffe   :  { %4593 = vmatpush3.bf16.xpose.msra.mxu0 %v6345_v29  ;;  %4568 = vmatprep.mubr.msk.bf16.mxu0 %vm5034_vm2, %v7062_v2 }
 0xfff   :  { %4594 = vmatprep.subr.bf16.mxu0 %v7062_v2 }
0x1005   :  { %4569 = vmatmul.mubr.msk.bf16.gmra.mxu0 %vm178_vm0, %v7082_v18  ;;  %v2403_v18 = vpop.xlane.xlu1 %2402 }
0x1006   :  { %4595 = vmatpush3.bf16.xpose.msra.mxu0 %v6369_v54  ;;  %4596 = vmatprep.mubr.msk.bf16.mxu0 %vm5034_vm2, %v7062_v2 }
0x1007   :  { %4626 = vmatprep.subr.bf16.mxu0 %v7062_v2 }
0x100d   :  { %4597 = vmatmul.mubr.msk.bf16.vlgmr.msra.gmra.mxu0 %vm178_vm0, %v7083_v27 }
0x100e   :  { %4600 = vmatprep.mubr.msk.bf16.mxu0 %vm5034_vm2, %v7062_v2 }
0x1015   :  { %4601 = vmatmul.mubr.msk.bf16.gmra.mxu0 %vm178_vm0, %v7084_v63  ;;  %v2406_v63 = vpop.xlane.xlu0 %2405 }
0x1016   :  { %4604 = vmatprep.mubr.msk.bf16.mxu0 %vm5034_vm2, %v7062_v2 }
0x101d   :  { %4605 = vmatmul.mubr.msk.bf16.gmra.mxu0 %vm178_vm0, %v7085_v46 }
0x101e   :  { %4630 = vmatprep.mubr.msk.bf16.mxu0 %vm5034_vm2, %v7062_v2 }
0x109d   :  { %v6620_v13 = vpop.f32.mrf.mxu0 }
0x109f   :  { %v4526_v41 = vpop.f32.mrf.mxu0 }
0x10a1   :  { %v6622_v36 = vpop.f32.mrf.mxu0 }
0x10a3   :  { %v4527_v3 = vpop.f32.mrf.mxu0 }
0x10a4   :  { %v2416_v3 = vsub.f32 %v6527_v49, %v2400_v44 }
0x10a5   :  { %v6624_v48 = vpop.f32.mrf.mxu0 }
0x10a7   :  { %v4530_v32 = vpop.f32.mrf.mxu0 }
0x10a9   :  { %v6626_v9 = vpop.f32.mrf.mxu0 }
0x10ab   :  { %v4531_v29 = vpop.f32.mrf.mxu0 }
0x10ad   :  { %v6628_v54 = vpop.f32.mrf.mxu0 }
0x10af   :  { %v4534_v37 = vpop.f32.mrf.mxu0 }
0x10b1   :  { %v6630_v5 = vpop.f32.mrf.mxu0 }
0x10b3   :  { %v4535_v8 = vpop.f32.mrf.mxu0 }
0x10b4   :  { %v2418_v8 = vsub.f32 %v6536_v16, %v2406_v63 }
0x10b5   :  { %v2813_v20 = vpop.f32.mrf.mxu0 }
0x10b6   :  { %v6633_v7 = vadd.f32 %v6472_v24, %v2813_v20  ;;  %v2409_v20 = vpop.xlane.xlu1 %2408 }
0x10b7   :  { %v4562_v39 = vpop.f32.mrf.mxu0 }
0x10b8   :  { %v2836_v22 = vsel %vm113_vm1, %v6633_v7, -inf }
0x10b9   :  { %2837 = vmax.xlane.f32.xlu0 %v2836_v22  ;;  %v2816_v42 = vpop.f32.mrf.mxu0  ;;  %v2422_v22 = vmul.f32 1.442695, %v2416_v3 }
0x10ba   :  { %v6638_v26 = vadd.f32 %v6481_v31, %v2816_v42  ;;  %v2417_v42 = vsub.f32 %v6532_v12, %v2403_v18 }
0x10bb   :  { %v4563_v23 = vpop.f32.mrf.mxu0  ;;  %4896 = vpow2.f32 %v2422_v22 }
0x10bc   :  { %v2839_v40 = vsel %vm113_vm1, %v6638_v26, -inf  ;;  %v2412_v23 = vpop.xlane.xlu0 %2411  ;;  %v2424_v16 = vmul.f32 1.442695, %v2417_v42 }
0x10bd   :  { %2840 = vmax.xlane.f32.xlu1 %v2839_v40  ;;  %v2821_v43 = vpop.f32.mrf.mxu0 }
0x10be   :  { %v6643_v33 = vadd.f32 %v6490_v45, %v2821_v43 }
0x10bf   :  { %v4566_v61 = vpop.f32.mrf.mxu0 }
0x10c0   :  { %v2842_v14 = vsel %vm113_vm1, %v6643_v33, -inf  ;;  %v2426_v61 = vmul.f32 1.442695, %v2418_v8 }
0x10c1   :  { %2843 = vmax.xlane.f32.xlu0 %v2842_v14  ;;  %v2824_v15 = vpop.f32.mrf.mxu0 }
0x10c2   :  { %v6648_v58 = vadd.f32 %v6499_v35, %v2824_v15  ;;  %v2419_v15 = vsub.f32 %v6543_v30, %v2409_v20  ;;  %4898 = vpow2.f32 %v2426_v61 }
0x10c3   :  { %v4567_v19 = vpop.f32.mrf.mxu0  ;;  %4900 = vpow2.f32 %v2424_v16 }
0x10c4   :  { %v2845_v60 = vsel %vm113_vm1, %v6648_v58, -inf  ;;  %v2415_v19 = vpop.xlane.xlu1 %2414 }
0x10c5   :  { %2846 = vmax.xlane.f32.xlu1 %v2845_v60  ;;  %v2829_v38 = vpop.f32.mrf.mxu0 }
0x10c6   :  { %v6653_v10 = vadd.f32 %v6508_v55, %v2829_v38 }
0x10c7   :  { %v4570_v1 = vpop.f32.mrf.mxu0 }
0x10c8   :  { %v2848_v34 = vsel %vm113_vm1, %v6653_v10, -inf  ;;  %v2428_v1 = vmul.f32 1.442695, %v2419_v15 }
0x10c9   :  { %2849 = vmax.xlane.f32.xlu0 %v2848_v34  ;;  %v2832_v27 = vpop.f32.mrf.mxu0 }
0x10ca   :  { %v6658_v46 = vadd.f32 %v6517_v6, %v2832_v27 }
0x10cb   :  { %v4571_v41 = vpop.f32.mrf.mxu0 }
0x10cc   :  { %v2851_v32 = vsel %vm113_vm1, %v6658_v46, -inf }
0x10cd   :  { %2852 = vmax.xlane.f32.xlu1 %v2851_v32  ;;  %v3038_v29 = vpop.f32.mrf.mxu0 }
0x10ce   :  { %v6664_v37 = vadd.f32 %v6472_v24, %v3038_v29  ;;  %v2420_v24 = vsub.f32 %v6547_v17, %v2412_v23  ;;  %v2421_v17 = vsub.f32 %v6555_v50, %v2415_v19  ;;  %v6693_v29 = vpop.eup %4896 }
0x10cf   :  { %v4598_v39 = vpop.f32.mrf.mxu0  ;;  %v2434_v22 = vsel %vm113_vm1, %v6693_v29, 0.0 }
0x10d0   :  { %v3061_v40 = vsel %vm113_vm1, %v6664_v37, -inf  ;;  %v6698_v39 = vpop.eup %4898 }
0x10d1   :  { %3062 = vmax.xlane.f32.xlu0 %v3061_v40  ;;  %v3041_v49 = vpop.f32.mrf.mxu0  ;;  %v6704_v42 = vpop.eup %4900  ;;  %v2440_v40 = vsel %vm113_vm1, %v6698_v39, 0.0 }
0x10d2   :  { %v6671_v43 = vadd.f32 %v6481_v31, %v3041_v49  ;;  %v2430_v31 = vmul.f32 1.442695, %v2420_v24 }
0x10d3   :  { %v4599_v14 = vpop.f32.mrf.mxu0 }
0x10d4   :  { %v3064_v12 = vsel %vm113_vm1, %v6671_v43, -inf  ;;  %4902 = vpow2.f32 %v2430_v31 }
0x10d5   :  { %3065 = vmax.xlane.f32.xlu1 %v3064_v12  ;;  %v3046_v44 = vpop.f32.mrf.mxu0  ;;  %4904 = vpow2.f32 %v2428_v1 }
0x10d6   :  { %v6678_v60 = vadd.f32 %v6490_v45, %v3046_v44  ;;  %v2432_v45 = vmul.f32 1.442695, %v2421_v17 }
0x10d7   :  { %v4602_v38 = vpop.f32.mrf.mxu0 }
0x10d8   :  { %v3067_v34 = vsel %vm113_vm1, %v6678_v60, -inf  ;;  %4906 = vpow2.f32 %v2432_v45 }
0x10d9   :  { %3068 = vmax.xlane.f32.xlu0 %v3067_v34  ;;  %v3049_v30 = vpop.f32.mrf.mxu0 }
0x10da   :  { %v6684_v18 = vadd.f32 %v6499_v35, %v3049_v30 }
0x10db   :  { %v4603_v27 = vpop.f32.mrf.mxu0 }
0x10dc   :  { %v3070_v63 = vsel %vm113_vm1, %v6684_v18, -inf }
0x10dd   :  { %3071 = vmax.xlane.f32.xlu1 %v3070_v63  ;;  %v3054_v41 = vpop.f32.mrf.mxu0 }
0x10de   :  { %v6689_v3 = vadd.f32 %v6508_v55, %v3054_v41 }
0x10df   :  { %v4606_v50 = vpop.f32.mrf.mxu0 }
0x10e0   :  { %v3073_v32 = vsel %vm113_vm1, %v6689_v3, -inf }
0x10e1   :  { %3074 = vmax.xlane.f32.xlu0 %v3073_v32  ;;  %v3057_v35 = vpop.f32.mrf.mxu0  ;;  %v6706_v23 = vpop.eup %4902 }
0x10e2   :  { %v6696_v8 = vadd.f32 %v6517_v6, %v3057_v35  ;;  %v2437_v6 = vsel %vm113_vm1, %v6704_v42, 0.0  ;;  %v6712_v49 = vpop.eup %4904  ;;  %v2446_v61 = vsel %vm113_vm1, %v6706_v23, 0.0 }
0x10e3   :  { %v4607_v20 = vpop.f32.mrf.mxu0  ;;  %v2443_v24 = vsel %vm113_vm1, %v6712_v49, 0.0 }
0x10e4   :  { %v3076_v55 = vsel %vm113_vm1, %v6696_v8, -inf }
0x10e5   :  { %2435 = vadd.xlane.f32.xlu0 %v2434_v22  ;;  %3077 = vmax.xlane.f32.xlu1 %v3076_v55  ;;  %v6718_v14 = vpop.eup %4906 }
0x10e6   :  { %v2449_v16 = vsel %vm113_vm1, %v6718_v14, 0.0 }
0x10e9   :  { %2441 = vadd.xlane.f32.xlu0 %v2440_v40  ;;  %2438 = vadd.xlane.f32.xlu1 %v2437_v6 }
0x10ed   :  { %2447 = vadd.xlane.f32.xlu0 %v2446_v61  ;;  %2444 = vadd.xlane.f32.xlu1 %v2443_v24 }
0x10f1   :  { %2450 = vadd.xlane.f32.xlu1 %v2449_v16 }
0x1142   :  { %v2838_v15 = vpop.xlane.xlu0 %2837 }
0x1143   :  { %v2854_v12 = vsub.f32 %v6633_v7, %v2838_v15 }
0x1145   :  { %v2860_v19 = vmul.f32 1.442695, %v2854_v12 }
0x1146   :  { %v2841_v44 = vpop.xlane.xlu1 %2840 }
0x1147   :  { %4908 = vpow2.f32 %v2860_v19  ;;  %v2855_v31 = vsub.f32 %v6638_v26, %v2841_v44 }
0x1149   :  { %v2862_v38 = vmul.f32 1.442695, %v2855_v31 }
0x114a   :  { %v2844_v1 = vpop.xlane.xlu0 %2843 }
0x114b   :  { %4910 = vpow2.f32 %v2862_v38  ;;  %v2856_v17 = vsub.f32 %v6643_v33, %v2844_v1 }
0x114d   :  { %v2864_v34 = vmul.f32 1.442695, %v2856_v17 }
0x114e   :  { %v2847_v30 = vpop.xlane.xlu1 %2846 }
0x114f   :  { %4912 = vpow2.f32 %v2864_v34  ;;  %v2857_v27 = vsub.f32 %v6648_v58, %v2847_v30 }
0x1151   :  { %v2866_v45 = vmul.f32 1.442695, %v2857_v27 }
0x1152   :  { %v2850_v63 = vpop.xlane.xlu0 %2849 }
0x1153   :  { %4914 = vpow2.f32 %v2866_v45  ;;  %v2858_v7 = vsub.f32 %v6653_v10, %v2850_v63 }
0x1154   :  { %v6727_v41 = vpop.eup %4908 }
0x1155   :  { %v2868_v50 = vmul.f32 1.442695, %v2858_v7  ;;  %v2872_v26 = vsel %vm113_vm1, %v6727_v41, 0.0 }
0x1156   :  { %2873 = vadd.xlane.f32.xlu0 %v2872_v26  ;;  %v2853_v32 = vpop.xlane.xlu1 %2852 }
0x1157   :  { %4916 = vpow2.f32 %v2868_v50  ;;  %v2859_v33 = vsub.f32 %v6658_v46, %v2853_v32 }
0x1158   :  { %v6732_v35 = vpop.eup %4910 }
0x1159   :  { %v2870_v20 = vmul.f32 1.442695, %v2859_v33  ;;  %v2875_v58 = vsel %vm113_vm1, %v6732_v35, 0.0 }
0x115a   :  { %v3063_v22 = vpop.xlane.xlu0 %3062  ;;  %2876 = vadd.xlane.f32.xlu1 %v2875_v58 }
0x115b   :  { %4918 = vpow2.f32 %v2870_v20  ;;  %v3079_v10 = vsub.f32 %v6664_v37, %v3063_v22 }
0x115c   :  { %v6737_v55 = vpop.eup %4912 }
0x115d   :  { %v3085_v40 = vmul.f32 1.442695, %v3079_v10  ;;  %v2878_v6 = vsel %vm113_vm1, %v6737_v55, 0.0 }
0x115e   :  { %2879 = vadd.xlane.f32.xlu0 %v2878_v6  ;;  %v3066_v61 = vpop.xlane.xlu1 %3065 }
0x115f   :  { %4920 = vpow2.f32 %v3085_v40  ;;  %v3080_v46 = vsub.f32 %v6671_v43, %v3066_v61 }
0x1160   :  { %v6742_v24 = vpop.eup %4914 }
0x1161   :  { %v3087_v16 = vmul.f32 1.442695, %v3080_v46  ;;  %v2881_v15 = vsel %vm113_vm1, %v6742_v24, 0.0 }
0x1162   :  { %v3069_v12 = vpop.xlane.xlu0 %3068  ;;  %2882 = vadd.xlane.f32.xlu1 %v2881_v15 }
0x1163   :  { %4922 = vpow2.f32 %v3087_v16  ;;  %v3081_v37 = vsub.f32 %v6678_v60, %v3069_v12 }
0x1164   :  { %v6747_v19 = vpop.eup %4916 }
0x1165   :  { %v3089_v44 = vmul.f32 1.442695, %v3081_v37  ;;  %v2884_v31 = vsel %vm113_vm1, %v6747_v19, 0.0 }
0x1166   :  { %2885 = vadd.xlane.f32.xlu0 %v2884_v31  ;;  %v3072_v38 = vpop.xlane.xlu1 %3071 }
0x1167   :  { %4924 = vpow2.f32 %v3089_v44  ;;  %v3082_v43 = vsub.f32 %v6684_v18, %v3072_v38 }
0x1168   :  { %v6752_v1 = vpop.eup %4918 }
0x1169   :  { %v3091_v17 = vmul.f32 1.442695, %v3082_v43  ;;  %v2887_v34 = vsel %vm113_vm1, %v6752_v1, 0.0 }
0x116a   :  { %v3075_v30 = vpop.xlane.xlu0 %3074  ;;  %2888 = vadd.xlane.f32.xlu1 %v2887_v34 }
0x116b   :  { %4926 = vpow2.f32 %v3091_v17  ;;  %v3083_v60 = vsub.f32 %v6689_v3, %v3075_v30  ;;  %v7086_v30 = vpack.c.bf16 %v6406_v59, %v6398_v21  ;;  %v7088_v59 = vpack.c.bf16 %v6331_v53, %v6327_v62 }
0x116c   :  { %v6757_v27 = vpop.eup %4920 }
0x116d   :  { %v3093_v45 = vmul.f32 1.442695, %v3083_v60  ;;  %v3097_v63 = vsel %vm113_vm1, %v6757_v27, 0.0 }
0x116e   :  { %3098 = vadd.xlane.f32.xlu0 %v3097_v63  ;;  %v3078_v7 = vpop.xlane.xlu1 %3077  ;;  %v2436_v18 = vpop.xlane.xlu0 %2435 }
0x116f   :  { %4928 = vpow2.f32 %v3093_v45  ;;  %v3084_v50 = vsub.f32 %v6696_v8, %v3078_v7 }
0x1170   :  { %v6762_v26 = vpop.eup %4922  ;;  %4930 = vrcp.f32 %v2436_v18 }
0x1171   :  { %v3095_v32 = vmul.f32 1.442695, %v3084_v50  ;;  %v3100_v33 = vsel %vm113_vm1, %v6762_v26, 0.0 }
0x1172   :  { %3101 = vadd.xlane.f32.xlu1 %v3100_v33  ;;  %v2439_v3 = vpop.xlane.xlu1 %2438  ;;  %v2442_v8 = vpop.xlane.xlu0 %2441 }
0x1173   :  { %4932 = vpow2.f32 %v3095_v32 }
0x1174   :  { %v6766_v20 = vpop.eup %4924  ;;  %4934 = vrcp.f32 %v2439_v3 }
0x1175   :  { %v3103_v58 = vsel %vm113_vm1, %v6766_v20, 0.0 }
0x1176   :  { %3104 = vadd.xlane.f32.xlu0 %v3103_v58  ;;  %v2445_v22 = vpop.xlane.xlu1 %2444  ;;  %v2448_v12 = vpop.xlane.xlu0 %2447 }
0x1177   :  { %4936 = vrcp.f32 %v2445_v22  ;;  %v7089_v22 = vpack.c.bf16 %v6409_v25, %v6401_v47 }
0x1178   :  { %v6770_v10 = vpop.eup %4926  ;;  %4938 = vrcp.f32 %v2442_v8 }
0x1179   :  { %v3106_v40 = vsel %vm113_vm1, %v6770_v10, 0.0 }
0x117a   :  { %3107 = vadd.xlane.f32.xlu1 %v3106_v40  ;;  %v2451_v46 = vpop.xlane.xlu1 %2450 }
0x117b   :  { %4940 = vrcp.f32 %v2451_v46 }
0x117c   :  { %v6774_v6 = vpop.eup %4928  ;;  %4942 = vrcp.f32 %v2448_v12 }
0x117d   :  { %v3109_v61 = vsel %vm113_vm1, %v6774_v6, 0.0  ;;  %v4931_v16 = vpop.eup %4930 }
0x117e   :  { %3110 = vadd.xlane.f32.xlu0 %v3109_v61  ;;  %v2458_v31 = vmul.f32 %v4931_v16, %v6693_v29  ;;  %v7090_v61 = vpack.c.bf16 %v6361_v57, %v6364_v4  ;;  %v7091_v16 = vpack.c.bf16 %v6335_v52, %v6339_v28 }
0x1180   :  { %v6778_v15 = vpop.eup %4932 }
0x1181   :  { %v3112_v37 = vsel %vm113_vm1, %v6778_v15, 0.0  ;;  %v4935_v44 = vpop.eup %4934 }
0x1182   :  { %3113 = vadd.xlane.f32.xlu1 %v3112_v37  ;;  %v2459_v38 = vmul.f32 %v4935_v44, %v6704_v42  ;;  %v7087_v42 = vpack.c.bf16 %v6358_v11, %v6355_v51 }
0x1184   :  { %v2470_v43 = vpack.c.bf16 %v2459_v38, %v2458_v31  ;;  %v4937_v17 = vpop.eup %4936 }
0x1185   :  { %v4939_v34 = vpop.eup %4938  ;;  %v2461_v60 = vmul.f32 %v4937_v17, %v6712_v49 }
0x1186   :  { %4543 = vmatmul.mubr.msk.bf16.vlgmr.msra.gmra.mxu1 %vm113_vm1, %v2470_v43  ;;  %v2460_v29 = vmul.f32 %v4939_v34, %v6698_v39 }
0x1187   :  { %4573 = vmatpush3.bf16.msra.mxu1 %v7086_v30  ;;  %4546 = vmatprep.mubr.msk.bf16.mxu1 %vm5034_vm2, %v7062_v2 }
0x1188   :  { %4574 = vmatprep.subr.bf16.mxu1 %v7062_v2  ;;  %v2471_v45 = vpack.c.bf16 %v2461_v60, %v2460_v29  ;;  %v4941_v63 = vpop.eup %4940 }
0x1189   :  { %v4943_v21 = vpop.eup %4942  ;;  %v2463_v39 = vmul.f32 %v4941_v63, %v6718_v14 }
0x118a   :  { %v2462_v51 = vmul.f32 %v4943_v21, %v6706_v23 }
0x118b   :  { %4575 = vmatpush3.bf16.msra.mxu1 %v7087_v42 }
0x118c   :  { %4576 = vmatprep.subr.bf16.mxu1 %v7062_v2  ;;  %v2472_v11 = vpack.c.bf16 %v2463_v39, %v2462_v51 }
0x118e   :  { %4547 = vmatmul.mubr.msk.bf16.gmra.mxu1 %vm113_vm1, %v2471_v45 }
0x118f   :  { %4577 = vmatpush3.bf16.msra.mxu1 %v7088_v59  ;;  %4550 = vmatprep.mubr.msk.bf16.mxu1 %vm5034_vm2, %v7062_v2 }
0x1190   :  { %4608 = vmatprep.subr.bf16.mxu1 %v7062_v2 }
0x1196   :  { %4551 = vmatmul.mubr.msk.bf16.gmra.mxu1 %vm113_vm1, %v2472_v11 }
0x1197   :  { %4578 = vmatprep.mubr.msk.bf16.mxu1 %vm5034_vm2, %v7062_v2 }
0x11df   :  { %v2874_v49 = vpop.xlane.xlu0 %2873 }
0x11e0   :  { %4944 = vrcp.f32 %v2874_v49 }
0x11e3   :  { %v2877_v7 = vpop.xlane.xlu1 %2876 }
0x11e4   :  { %4946 = vrcp.f32 %v2877_v7 }
0x11e7   :  { %v2880_v62 = vpop.xlane.xlu0 %2879 }
0x11e8   :  { %4948 = vrcp.f32 %v2880_v62 }
0x11eb   :  { %v2883_v53 = vpop.xlane.xlu1 %2882 }
0x11ec   :  { %4950 = vrcp.f32 %v2883_v53 }
0x11ed   :  { %v4945_v18 = vpop.eup %4944 }
0x11ee   :  { %v2896_v32 = vmul.f32 %v4945_v18, %v6727_v41 }
0x11ef   :  { %v2886_v14 = vpop.xlane.xlu0 %2885 }
0x11f0   :  { %4952 = vrcp.f32 %v2886_v14 }
0x11f1   :  { %v4947_v50 = vpop.eup %4946 }
0x11f2   :  { %v2897_v23 = vmul.f32 %v4947_v50, %v6732_v35 }
0x11f3   :  { %v2889_v33 = vpop.xlane.xlu1 %2888 }
0x11f4   :  { %v2908_v3 = vpack.c.bf16 %v2897_v23, %v2896_v32  ;;  %4954 = vrcp.f32 %v2889_v33 }
0x11f5   :  { %v4949_v58 = vpop.eup %4948 }
0x11f6   :  { %4579 = vmatmul.mubr.msk.bf16.vlgmr.msra.gmra.mxu1 %vm113_vm1, %v2908_v3  ;;  %v2898_v35 = vmul.f32 %v4949_v58, %v6737_v55 }
0x11f7   :  { %4609 = vmatpush3.bf16.msra.mxu1 %v7089_v22  ;;  %v3099_v8 = vpop.xlane.xlu0 %3098  ;;  %4582 = vmatprep.mubr.msk.bf16.mxu1 %vm5034_vm2, %v7062_v2 }
0x11f8   :  { %4610 = vmatprep.subr.bf16.mxu1 %v7062_v2  ;;  %4956 = vrcp.f32 %v3099_v8 }
0x11f9   :  { %v4951_v41 = vpop.eup %4950 }
0x11fa   :  { %v2899_v40 = vmul.f32 %v4951_v41, %v6742_v24 }
0x11fb   :  { %4611 = vmatpush3.bf16.msra.mxu1 %v7090_v61  ;;  %v3102_v46 = vpop.xlane.xlu1 %3101 }
0x11fc   :  { %4958 = vrcp.f32 %v3102_v46  ;;  %4612 = vmatprep.subr.bf16.mxu1 %v7062_v2  ;;  %v2909_v47 = vpack.c.bf16 %v2899_v40, %v2898_v35 }
0x11fd   :  { %v4953_v25 = vpop.eup %4952 }
0x11fe   :  { %4583 = vmatmul.mubr.msk.bf16.gmra.mxu1 %vm113_vm1, %v2909_v47  ;;  %v2900_v4 = vmul.f32 %v4953_v25, %v6747_v19 }
0x11ff   :  { %4613 = vmatpush3.bf16.msra.mxu1 %v7091_v16  ;;  %v3105_v12 = vpop.xlane.xlu0 %3104  ;;  %4586 = vmatprep.mubr.msk.bf16.mxu1 %vm5034_vm2, %v7062_v2 }
0x1200   :  { %4642 = vmatprep.subr.bf16.mxu1 %v7062_v2  ;;  %4960 = vrcp.f32 %v3105_v12 }
0x1201   :  { %v4955_v57 = vpop.eup %4954 }
0x1202   :  { %v2901_v55 = vmul.f32 %v4955_v57, %v6752_v1 }
0x1203   :  { %v3108_v24 = vpop.xlane.xlu1 %3107 }
0x1204   :  { %4962 = vrcp.f32 %v3108_v24  ;;  %v2910_v37 = vpack.c.bf16 %v2901_v55, %v2900_v4 }
0x1205   :  { %v4957_v44 = vpop.eup %4956 }
0x1206   :  { %4587 = vmatmul.mubr.msk.bf16.gmra.mxu1 %vm113_vm1, %v2910_v37  ;;  %v3121_v31 = vmul.f32 %v4957_v44, %v6757_v27 }
0x1207   :  { %v3111_v52 = vpop.xlane.xlu0 %3110  ;;  %4614 = vmatprep.mubr.msk.bf16.mxu1 %vm5034_vm2, %v7062_v2 }
0x1208   :  { %4964 = vrcp.f32 %v3111_v52 }
0x1209   :  { %v4959_v28 = vpop.eup %4958 }
0x120a   :  { %v3122_v38 = vmul.f32 %v4959_v28, %v6762_v26 }
0x120b   :  { %v3114_v43 = vpop.xlane.xlu1 %3113 }
0x120c   :  { %v3133_v19 = vpack.c.bf16 %v3122_v38, %v3121_v31  ;;  %4966 = vrcp.f32 %v3114_v43 }
0x120d   :  { %v4961_v1 = vpop.eup %4960 }
0x120e   :  { %4615 = vmatmul.mubr.msk.bf16.vlgmr.msra.gmra.mxu1 %vm113_vm1, %v3133_v19  ;;  %v3123_v34 = vmul.f32 %v4961_v1, %v6766_v20  ;;  %v4718_v20 = vld [vmem:[%s7016_s14 + $0x18] sm:$0xff]  }
0x120f   :  { %4618 = vmatprep.mubr.msk.bf16.mxu1 %vm5034_vm2, %v7062_v2  ;;  %4627 = vmatpush3.bf16.msra.mxu0 %v4718_v20 }
0x1210   :  { %4628 = vmatprep.subr.bf16.mxu0 %v7062_v2 }
0x1211   :  { %v4963_v17 = vpop.eup %4962 }
0x1212   :  { %v3124_v30 = vmul.f32 %v4963_v17, %v6770_v10 }
0x1214   :  { %v3134_v60 = vpack.c.bf16 %v3124_v30, %v3123_v34 }
0x1215   :  { %v4965_v27 = vpop.eup %4964 }
0x1216   :  { %4619 = vmatmul.mubr.msk.bf16.gmra.mxu1 %vm113_vm1, %v3134_v60  ;;  %v3125_v29 = vmul.f32 %v4965_v27, %v6774_v6  ;;  %v4719_v6 = vld [vmem:[%s7016_s14 + $0x10] sm:$0xff]  }
0x1217   :  { %4622 = vmatprep.mubr.msk.bf16.mxu1 %vm5034_vm2, %v7062_v2  ;;  %4629 = vmatpush3.bf16.msra.mxu0 %v4719_v6 }
0x1218   :  { %4658 = vmatprep.subr.bf16.mxu0 %v7062_v2 }
0x1219   :  { %v4967_v26 = vpop.eup %4966 }
0x121a   :  { %v3126_v42 = vmul.f32 %v4967_v26, %v6778_v15 }
0x121c   :  { %v3135_v45 = vpack.c.bf16 %v3126_v42, %v3125_v29 }
0x121e   :  { %4623 = vmatmul.mubr.msk.bf16.gmra.mxu1 %vm113_vm1, %v3135_v45 }
0x121f   :  { %4646 = vmatprep.mubr.msk.bf16.mxu1 %vm5034_vm2, %v7062_v2 }
0x1246   :  { %v2738_v10 = vpop.f32.mrf.mxu1 }
0x1247   :  { %v2739_v61 = vadd.f32 %v2738_v10, %v6620_v13 }
0x1248   :  { %v4544_v63 = vpop.f32.mrf.mxu1 }
0x124a   :  { %v2741_v21 = vpop.f32.mrf.mxu1 }
0x124b   :  { %v2742_v46 = vadd.f32 %v2741_v21, %v6622_v36 }
0x124c   :  { %v4545_v15 = vpop.f32.mrf.mxu1 }
0x124e   :  { %v2746_v59 = vpop.f32.mrf.mxu1 }
0x124f   :  { %v2747_v44 = vadd.f32 %v2746_v59, %v6624_v48 }
0x1250   :  { %v4548_v39 = vpop.f32.mrf.mxu1 }
0x1252   :  { %v2749_v51 = vpop.f32.mrf.mxu1 }
0x1253   :  { %v2750_v52 = vadd.f32 %v2749_v51, %v6626_v9 }
0x1254   :  { %v4549_v11 = vpop.f32.mrf.mxu1 }
0x1255   :  { %v7092_v11 = vld [vmem:[#allocation5_spill] sm:$0xff] }
0x1256   :  { %v2754_v49 = vpop.f32.mrf.mxu1 }
0x1257   :  { %v2755_v34 = vadd.f32 %v2754_v49, %v6628_v54 }
0x1258   :  { %v4552_v7 = vpop.f32.mrf.mxu1 }
0x125a   :  { %v2757_v62 = vpop.f32.mrf.mxu1 }
0x125b   :  { %v2758_v48 = vadd.f32 %v2757_v62, %v6630_v5  ;;  %v3955_v5 = vld [vmem:[%s7017_s15 + $0x1] ss:$0 sm:$0xff] }
0x125c   :  { %v4553_v53 = vpop.f32.mrf.mxu1 }
0x12b6   :  { %v2957_v18 = vpop.f32.mrf.mxu1 }
0x12b7   :  { %v2980_v25 = vadd.f32 %v2957_v18, %v2739_v61  ;;  %v7093_v18 = vld [vmem:[#allocation6_spill] sm:$0xff] }
0x12b8   :  { %v4580_v14 = vpop.f32.mrf.mxu1 }
0x12ba   :  { %v2960_v50 = vpop.f32.mrf.mxu1 }
0x12bb   :  { %v2981_v16 = vadd.f32 %v2960_v50, %v2742_v46 }
0x12bc   :  { %v4581_v32 = vpop.f32.mrf.mxu1 }
0x12be   :  { %v2965_v23 = vpop.f32.mrf.mxu1 }
0x12bf   :  { %v2982_v13 = vadd.f32 %v2965_v23, %v2747_v44 }
0x12c0   :  { %v4584_v33 = vpop.f32.mrf.mxu1 }
0x12c1   :  { %v7094_v33 = vld [vmem:[#allocation7_spill] sm:$0xff] }
0x12c2   :  { %v2968_v3 = vpop.f32.mrf.mxu1 }
0x12c3   :  { %v2983_v36 = vadd.f32 %v2968_v3, %v2750_v52 }
0x12c4   :  { %v4585_v58 = vpop.f32.mrf.mxu1 }
0x12c6   :  { %v2973_v22 = vpop.f32.mrf.mxu1 }
0x12c7   :  { %v2984_v30 = vadd.f32 %v2973_v22, %v2755_v34 }
0x12c8   :  { %v4588_v8 = vpop.f32.mrf.mxu1 }
0x12ca   :  { %v2976_v41 = vpop.f32.mrf.mxu1 }
0x12cb   :  { %v2985_v60 = vadd.f32 %v2976_v41, %v2758_v48 }
0x12cc   :  { %v4589_v35 = vpop.f32.mrf.mxu1 }
0x12cd   :  { %v7095_v35 = vld [vmem:[#allocation8_spill] sm:$0xff] }
0x12ce   :  { %v3182_v40 = vpop.f32.mrf.mxu1 }
0x12cf   :  { %v3205_v57 = vadd.f32 %v3182_v40, %v2980_v25 }
0x12d0   :  { %v4616_v47 = vpop.f32.mrf.mxu1 }
0x12d2   :  { %v3185_v12 = vpop.f32.mrf.mxu1 }
0x12d3   :  { %v3206_v4 = vadd.f32 %v3185_v12, %v2981_v16 }
0x12d4   :  { %v4617_v55 = vpop.f32.mrf.mxu1 }
0x12d5   :  { %v3216_v24 = vpack.c.bf16 %v3206_v4, %v3205_v57 }
0x12d6   :  { %v3190_v37 = vpop.f32.mrf.mxu1 }
0x12d7   :  { %4631 = vmatmul.mubr.msk.bf16.vlgmr.msra.gmra.mxu0 %vm178_vm0, %v3216_v24  ;;  %v3207_v38 = vadd.f32 %v3190_v37, %v2982_v13 }
0x12d8   :  { %v4620_v28 = vpop.f32.mrf.mxu1  ;;  %4634 = vmatprep.mubr.msk.bf16.mxu0 %vm5034_vm2, %v7062_v2 }
0x12da   :  { %v3193_v31 = vpop.f32.mrf.mxu1 }
0x12db   :  { %v3208_v43 = vadd.f32 %v3193_v31, %v2983_v36 }
0x12dc   :  { %v4621_v19 = vpop.f32.mrf.mxu1 }
0x12dd   :  { %v3217_v1 = vpack.c.bf16 %v3208_v43, %v3207_v38 }
0x12de   :  { %v3198_v17 = vpop.f32.mrf.mxu1 }
0x12df   :  { %4635 = vmatmul.mubr.msk.bf16.gmra.mxu0 %vm178_vm0, %v3217_v1  ;;  %v3209_v26 = vadd.f32 %v3198_v17, %v2984_v30 }
0x12e0   :  { %v4624_v9 = vpop.f32.mrf.mxu1  ;;  %4638 = vmatprep.mubr.msk.bf16.mxu0 %vm5034_vm2, %v7062_v2 }
0x12e2   :  { %v3201_v27 = vpop.f32.mrf.mxu1 }
0x12e3   :  { %v3210_v29 = vadd.f32 %v3201_v27, %v2985_v60 }
0x12e4   :  { %v4625_v42 = vpop.f32.mrf.mxu1 }
0x12e5   :  { %v3218_v45 = vpack.c.bf16 %v3210_v29, %v3209_v26 }
0x12e7   :  { %4639 = vmatmul.mubr.msk.bf16.gmra.mxu0 %vm178_vm0, %v3218_v45 }
0x12e8   :  { %4674 = vmatprep.mubr.msk.bf16.mxu0 %vm5034_vm2, %v7062_v2 }
0x1397   :  { %v3274_v54 = vpop.f32.mrf.mxu0 }
0x1398   :  { %v3297_v20 = vadd.f32 %v3274_v54, %v6091_v56 }
0x1399   :  { %v4632_v10 = vpop.f32.mrf.mxu0 }
0x139a   :  { %v6878_v63 = vadd.f32 %v3955_v5, %v3297_v20  ;;  %v4720_v20 = vld [vmem:[%s7020_s18 + $0x18] sm:$0xff]   ;;  %v4721_v10 = vld [vmem:[%s7020_s18 + $0x10] sm:$0xff]  }
0x139b   :  { %v3277_v21 = vpop.f32.mrf.mxu0  ;;  %4643 = vmatpush3.bf16.msra.mxu1 %v4720_v20 }
0x139c   :  { %v3298_v6 = vadd.f32 %v3277_v21, %v6096_v0  ;;  %v3321_v15 = vsel %vm178_vm0, %v6878_v63, 0.0  ;;  %4644 = vmatprep.subr.bf16.mxu1 %v7062_v2 }
0x139d   :  { %3322 = vadd.xlane.f32.xlu0 %v3321_v15  ;;  %v4633_v59 = vpop.f32.mrf.mxu0 }
0x139e   :  { %v6883_v39 = vadd.f32 %v3955_v5, %v3298_v6 }
0x139f   :  { %v3282_v51 = vpop.f32.mrf.mxu0  ;;  %4645 = vmatpush3.bf16.msra.mxu1 %v4721_v10 }
0x13a0   :  { %v3299_v49 = vadd.f32 %v3282_v51, %v7092_v11  ;;  %v3324_v7 = vsel %vm178_vm0, %v6883_v39, 0.0 }
0x13a1   :  { %3325 = vadd.xlane.f32.xlu1 %v3324_v7  ;;  %v4636_v56 = vpop.f32.mrf.mxu0 }
0x13a2   :  { %v3313_v62 = vadd.f32 %v3955_v5, %v3299_v49 }
0x13a3   :  { %v3285_v53 = vpop.f32.mrf.mxu0 }
0x13a4   :  { %v3300_v14 = vadd.f32 %v3285_v53, %v7093_v18  ;;  %v3327_v0 = vsel %vm178_vm0, %v3313_v62, 0.0 }
0x13a5   :  { %3328 = vadd.xlane.f32.xlu0 %v3327_v0  ;;  %v4637_v50 = vpop.f32.mrf.mxu0 }
0x13a6   :  { %v6890_v32 = vadd.f32 %v3955_v5, %v3300_v14 }
0x13a7   :  { %v3290_v23 = vpop.f32.mrf.mxu0 }
0x13a8   :  { %v3301_v3 = vadd.f32 %v3290_v23, %v7094_v33  ;;  %v3330_v58 = vsel %vm178_vm0, %v6890_v32, 0.0 }
0x13a9   :  { %3331 = vadd.xlane.f32.xlu1 %v3330_v58  ;;  %v4640_v22 = vpop.f32.mrf.mxu0 }
0x13aa   :  { %v6895_v8 = vadd.f32 %v3955_v5, %v3301_v3  ;;  %v3958_v3 = vld [vmem:[%s7018_s16 + $0x1] ss:$0 sm:$0xff] }
0x13ab   :  { %v3293_v41 = vpop.f32.mrf.mxu0 }
0x13ac   :  { %v3302_v40 = vadd.f32 %v3293_v41, %v7095_v35  ;;  %v3333_v61 = vsel %vm178_vm0, %v6895_v8, 0.0 }
0x13ad   :  { %3334 = vadd.xlane.f32.xlu0 %v3333_v61  ;;  %v4641_v46 = vpop.f32.mrf.mxu0 }
0x13ae   :  { %v3316_v47 = vadd.f32 %v3955_v5, %v3302_v40  ;;  %v3959_v46 = vld [vmem:[%s7019_s17 + $0x1] ss:$0 sm:$0xff] }
0x13b0   :  { %v3336_v25 = vsel %vm178_vm0, %v3316_v47, 0.0 }
0x13b1   :  { %3337 = vadd.xlane.f32.xlu1 %v3336_v25 }
0x1426   :  { %v3323_v16 = vpop.xlane.xlu0 %3322 }
0x1427   :  { %v3339_v12 = vmul.f32 0.03125, %v3323_v16 }
0x1429   :  { %v3345_v57 = vsub.f32 %v6878_v63, %v3339_v12 }
0x142a   :  { %v3326_v4 = vpop.xlane.xlu1 %3325 }
0x142b   :  { %v3340_v55 = vmul.f32 0.03125, %v3326_v4  ;;  %v3351_v24 = vmul.f32 %v3345_v57, %v3345_v57 }
0x142d   :  { %v3346_v37 = vsub.f32 %v6883_v39, %v3340_v55  ;;  %v3357_v44 = vsel %vm178_vm0, %v3351_v24, 0.0 }
0x142e   :  { %v3329_v52 = vpop.xlane.xlu0 %3328  ;;  %3358 = vadd.xlane.f32.xlu0 %v3357_v44 }
0x142f   :  { %v3341_v28 = vmul.f32 0.03125, %v3329_v52  ;;  %v3352_v13 = vmul.f32 %v3346_v37, %v3346_v37 }
0x1431   :  { %v6904_v36 = vsub.f32 %v3313_v62, %v3341_v28  ;;  %v3360_v31 = vsel %vm178_vm0, %v3352_v13, 0.0 }
0x1432   :  { %v3332_v38 = vpop.xlane.xlu1 %3331  ;;  %3361 = vadd.xlane.f32.xlu1 %v3360_v31 }
0x1433   :  { %v3342_v43 = vmul.f32 0.03125, %v3332_v38  ;;  %v3353_v19 = vmul.f32 %v6904_v36, %v6904_v36 }
0x1435   :  { %v3348_v1 = vsub.f32 %v6890_v32, %v3342_v43  ;;  %v3363_v17 = vsel %vm178_vm0, %v3353_v19, 0.0 }
0x1436   :  { %3364 = vadd.xlane.f32.xlu0 %v3363_v17  ;;  %v3335_v34 = vpop.xlane.xlu0 %3334 }
0x1437   :  { %v3343_v48 = vmul.f32 0.03125, %v3335_v34  ;;  %v3354_v9 = vmul.f32 %v3348_v1, %v3348_v1 }
0x1439   :  { %v3349_v30 = vsub.f32 %v6895_v8, %v3343_v48  ;;  %v3366_v60 = vsel %vm178_vm0, %v3354_v9, 0.0  ;;  %v4722_v9 = vld [vmem:[%s7022_s20 + $0x78] sm:$0xff]  }
0x143a   :  { %3367 = vadd.xlane.f32.xlu1 %v3366_v60  ;;  %v3338_v27 = vpop.xlane.xlu1 %3337  ;;  %4659 = vmatpush3.bf16.msra.mxu0 %v4722_v9  ;;  %v4724_v60 = vld [vmem:[%s7022_s20 + $0x68] sm:$0xff]  }
0x143b   :  { %v3344_v26 = vmul.f32 0.03125, %v3338_v27  ;;  %v3355_v29 = vmul.f32 %v3349_v30, %v3349_v30  ;;  %4660 = vmatprep.subr.bf16.mxu0 %v7062_v2  ;;  %v4725_v27 = vld [vmem:[%s7022_s20 + $0x60] sm:$0xff]  }
0x143d   :  { %v3350_v42 = vsub.f32 %v3316_v47, %v3344_v26  ;;  %v3369_v45 = vsel %vm178_vm0, %v3355_v29, 0.0  ;;  %v4726_v26 = vld [vmem:[%s7022_s20 + $0x58] sm:$0xff]   ;;  %v4727_v29 = vld [vmem:[%s7022_s20 + $0x50] sm:$0xff]  }
0x143e   :  { %3370 = vadd.xlane.f32.xlu0 %v3369_v45  ;;  %v4729_v45 = vld [vmem:[%s7022_s20 + $0x40] sm:$0xff]  }
0x143f   :  { %v3356_v54 = vmul.f32 %v3350_v42, %v3350_v42 }
0x1441   :  { %v3372_v5 = vsel %vm178_vm0, %v3356_v54, 0.0  ;;  %v3965_v54 = vld [vmem:[%s7021_s19 + $0x1] ss:$0 sm:$0xff] }
0x1442   :  { %3373 = vadd.xlane.f32.xlu1 %v3372_v5 }
0x14b7   :  { %v3359_v21 = vpop.xlane.xlu0 %3358 }
0x14b8   :  { %v3375_v6 = vmul.f32 0.03125, %v3359_v21 }
0x14ba   :  { %v3381_v15 = vadd.f32 1e-06, %v3375_v6 }
0x14bb   :  { %v3362_v59 = vpop.xlane.xlu1 %3361 }
0x14bc   :  { %4968 = vrsqrt.f32 %v3381_v15  ;;  %v3376_v51 = vmul.f32 0.03125, %v3362_v59 }
0x14be   :  { %v3382_v11 = vadd.f32 1e-06, %v3376_v51 }
0x14bf   :  { %v3365_v49 = vpop.xlane.xlu0 %3364 }
0x14c0   :  { %4970 = vrsqrt.f32 %v3382_v11  ;;  %v3377_v7 = vmul.f32 0.03125, %v3365_v49 }
0x14c2   :  { %v3383_v56 = vadd.f32 1e-06, %v3377_v7 }
0x14c3   :  { %v3368_v62 = vpop.xlane.xlu1 %3367 }
0x14c4   :  { %4972 = vrsqrt.f32 %v3383_v56  ;;  %v3378_v53 = vmul.f32 0.03125, %v3368_v62 }
0x14c6   :  { %v3384_v18 = vadd.f32 1e-06, %v3378_v53 }
0x14c7   :  { %v3371_v14 = vpop.xlane.xlu0 %3370 }
0x14c8   :  { %4974 = vrsqrt.f32 %v3384_v18  ;;  %v3379_v0 = vmul.f32 0.03125, %v3371_v14 }
0x14c9   :  { %v4969_v50 = vpop.eup %4968 }
0x14ca   :  { %v3393_v23 = vmul.f32 %v4969_v50, %v3345_v57  ;;  %v3385_v33 = vadd.f32 1e-06, %v3379_v0 }
0x14cb   :  { %v3374_v58 = vpop.xlane.xlu1 %3373 }
0x14cc   :  { %4976 = vrsqrt.f32 %v3385_v33  ;;  %v3380_v22 = vmul.f32 0.03125, %v3374_v58  ;;  %v3405_v35 = vmul.f32 %v3958_v3, %v3393_v23 }
0x14cd   :  { %v4971_v41 = vpop.eup %4970 }
0x14ce   :  { %v3394_v40 = vmul.f32 %v4971_v41, %v3346_v37  ;;  %v3386_v61 = vadd.f32 1e-06, %v3380_v22  ;;  %v3417_v16 = vadd.f32 %v3959_v46, %v3405_v35 }
0x14d0   :  { %v3406_v47 = vmul.f32 %v3958_v3, %v3394_v40  ;;  %4978 = vrsqrt.f32 %v3386_v61 }
0x14d1   :  { %v4973_v25 = vpop.eup %4972 }
0x14d2   :  { %v3418_v12 = vadd.f32 %v3959_v46, %v3406_v47  ;;  %v3395_v57 = vmul.f32 %v4973_v25, %v6904_v36 }
0x14d4   :  { %v3428_v4 = vpack.c.bf16 %v3418_v12, %v3417_v16  ;;  %v3407_v44 = vmul.f32 %v3958_v3, %v3395_v57 }
0x14d5   :  { %v4975_v55 = vpop.eup %4974 }
0x14d6   :  { %v3396_v24 = vmul.f32 %v4975_v55, %v3348_v1  ;;  %4647 = vmatmul.mubr.msk.bf16.vlgmr.msra.gmra.mxu1 %vm178_vm0, %v3428_v4  ;;  %v3419_v13 = vadd.f32 %v3959_v46, %v3407_v44 }
0x14d7   :  { %4650 = vmatprep.mubr.msk.bf16.mxu1 %vm5034_vm2, %v7062_v2 }
0x14d8   :  { %v3408_v37 = vmul.f32 %v3958_v3, %v3396_v24 }
0x14d9   :  { %v4977_v52 = vpop.eup %4976 }
0x14da   :  { %v3397_v28 = vmul.f32 %v4977_v52, %v3349_v30  ;;  %v3420_v31 = vadd.f32 %v3959_v46, %v3408_v37  ;;  %v4723_v30 = vld [vmem:[%s7022_s20 + $0x70] sm:$0xff]  }
0x14db   :  { %4661 = vmatpush3.bf16.msra.mxu0 %v4723_v30 }
0x14dc   :  { %v3429_v38 = vpack.c.bf16 %v3420_v31, %v3419_v13  ;;  %v3409_v36 = vmul.f32 %v3958_v3, %v3397_v28  ;;  %4662 = vmatprep.subr.bf16.mxu0 %v7062_v2 }
0x14dd   :  { %v4979_v43 = vpop.eup %4978 }
0x14de   :  { %v3398_v19 = vmul.f32 %v4979_v43, %v3350_v42  ;;  %4651 = vmatmul.mubr.msk.bf16.gmra.mxu1 %vm178_vm0, %v3429_v38  ;;  %v3421_v17 = vadd.f32 %v3959_v46, %v3409_v36  ;;  %v4728_v42 = vld [vmem:[%s7022_s20 + $0x48] sm:$0xff]  }
0x14df   :  { %4654 = vmatprep.mubr.msk.bf16.mxu1 %vm5034_vm2, %v7062_v2  ;;  %4663 = vmatpush3.bf16.msra.mxu0 %v4724_v60 }
0x14e0   :  { %v3410_v1 = vmul.f32 %v3958_v3, %v3398_v19  ;;  %4664 = vmatprep.subr.bf16.mxu0 %v7062_v2 }
0x14e2   :  { %v3422_v34 = vadd.f32 %v3959_v46, %v3410_v1 }
0x14e3   :  { %4665 = vmatpush3.bf16.msra.mxu0 %v4725_v27 }
0x14e4   :  { %v3430_v48 = vpack.c.bf16 %v3422_v34, %v3421_v17  ;;  %4666 = vmatprep.subr.bf16.mxu0 %v7062_v2 }
0x14e6   :  { %4655 = vmatmul.mubr.msk.bf16.gmra.mxu1 %vm178_vm0, %v3430_v48 }
0x14e7   :  { %4667 = vmatpush3.bf16.msra.mxu0 %v4726_v26 }
0x14e8   :  { %4668 = vmatprep.subr.bf16.mxu0 %v7062_v2 }
0x14eb   :  { %4669 = vmatpush3.bf16.msra.mxu0 %v4727_v29 }
0x14ec   :  { %4670 = vmatprep.subr.bf16.mxu0 %v7062_v2 }
0x14ef   :  { %4671 = vmatpush3.bf16.msra.mxu0 %v4728_v42 }
0x14f0   :  { %4672 = vmatprep.subr.bf16.mxu0 %v7062_v2 }
0x14f3   :  { %4673 = vmatpush3.bf16.msra.mxu0 %v4729_v45 }
0x1596   :  { %v3494_v5 = vpop.f32.mrf.mxu1 }
0x1597   :  { %v3495_v20 = vadd.f32 %v3965_v54, %v3494_v5 }
0x1598   :  { %v4648_v10 = vpop.f32.mrf.mxu1 }
0x1599   :  { %v3523_v21 = vmul.f32 0.044715, %v3495_v20  ;;  %v3517_v9 = vmul.f32 0.5, %v3495_v20 }
0x159a   :  { %v3497_v6 = vpop.f32.mrf.mxu1 }
0x159b   :  { %v3529_v15 = vmul.f32 %v3523_v21, %v3495_v20  ;;  %v3498_v59 = vadd.f32 %v3965_v54, %v3497_v6 }
0x159c   :  { %v4649_v51 = vpop.f32.mrf.mxu1 }
0x159d   :  { %v3535_v11 = vmul.f32 %v3529_v15, %v3495_v20  ;;  %v3524_v49 = vmul.f32 0.044715, %v3498_v59  ;;  %v3518_v30 = vmul.f32 0.5, %v3498_v59 }
0x159e   :  { %v3502_v7 = vpop.f32.mrf.mxu1 }
0x159f   :  { %v3541_v56 = vadd.f32 %v3535_v11, %v3495_v20  ;;  %v3530_v62 = vmul.f32 %v3524_v49, %v3498_v59  ;;  %v3503_v53 = vadd.f32 %v3965_v54, %v3502_v7 }
0x15a0   :  { %v4652_v18 = vpop.f32.mrf.mxu1 }
0x15a1   :  { %v3547_v14 = vmul.f32 0.7978846, %v3541_v56  ;;  %v3536_v0 = vmul.f32 %v3530_v62, %v3498_v59  ;;  %v3525_v50 = vmul.f32 0.044715, %v3503_v53  ;;  %v3519_v10 = vmul.f32 0.5, %v3503_v53 }
0x15a2   :  { %v3505_v23 = vpop.f32.mrf.mxu1 }
0x15a3   :  { %4980 = vtanh.f32 %v3547_v14  ;;  %v3542_v33 = vadd.f32 %v3536_v0, %v3498_v59  ;;  %v3531_v3 = vmul.f32 %v3525_v50, %v3503_v53  ;;  %v3506_v58 = vadd.f32 %v3965_v54, %v3505_v23  ;;  %v3996_v50 = vld [vmem:[%s7023_s21 + $0x1] ss:$0 sm:$0xff] }
0x15a4   :  { %v4653_v22 = vpop.f32.mrf.mxu1 }
0x15a5   :  { %v3548_v41 = vmul.f32 0.7978846, %v3542_v33  ;;  %v3537_v35 = vmul.f32 %v3531_v3, %v3503_v53  ;;  %v3526_v40 = vmul.f32 0.044715, %v3506_v58  ;;  %v3520_v21 = vmul.f32 0.5, %v3506_v58 }
0x15a6   :  { %v3510_v61 = vpop.f32.mrf.mxu1 }
0x15a7   :  { %4982 = vtanh.f32 %v3548_v41  ;;  %v3543_v46 = vadd.f32 %v3537_v35, %v3503_v53  ;;  %v3532_v47 = vmul.f32 %v3526_v40, %v3506_v58  ;;  %v3511_v25 = vadd.f32 %v3965_v54, %v3510_v61 }
0x15a8   :  { %v4656_v16 = vpop.f32.mrf.mxu1 }
0x15a9   :  { %v3549_v12 = vmul.f32 0.7978846, %v3543_v46  ;;  %v3538_v57 = vmul.f32 %v3532_v47, %v3506_v58  ;;  %v3527_v4 = vmul.f32 0.044715, %v3511_v25  ;;  %v3521_v7 = vmul.f32 0.5, %v3511_v25 }
0x15aa   :  { %v3513_v55 = vpop.f32.mrf.mxu1 }
0x15ab   :  { %4984 = vtanh.f32 %v3549_v12  ;;  %v3544_v24 = vadd.f32 %v3538_v57, %v3506_v58  ;;  %v3533_v44 = vmul.f32 %v3527_v4, %v3511_v25  ;;  %v3514_v37 = vadd.f32 %v3965_v54, %v3513_v55 }
0x15ac   :  { %v4657_v52 = vpop.f32.mrf.mxu1 }
0x15ad   :  { %v3550_v28 = vmul.f32 0.7978846, %v3544_v24  ;;  %v3539_v13 = vmul.f32 %v3533_v44, %v3511_v25  ;;  %v3528_v31 = vmul.f32 0.044715, %v3514_v37  ;;  %v3522_v56 = vmul.f32 0.5, %v3514_v37 }
0x15af   :  { %4986 = vtanh.f32 %v3550_v28  ;;  %v3545_v38 = vadd.f32 %v3539_v13, %v3511_v25  ;;  %v3534_v43 = vmul.f32 %v3528_v31, %v3514_v37 }
0x15b0   :  { %v4981_v19 = vpop.eup %4980 }
0x15b1   :  { %v3551_v36 = vmul.f32 0.7978846, %v3545_v38  ;;  %v3540_v1 = vmul.f32 %v3534_v43, %v3514_v37  ;;  %v3559_v17 = vadd.f32 1.0, %v4981_v19 }
0x15b3   :  { %4988 = vtanh.f32 %v3551_v36  ;;  %v3546_v34 = vadd.f32 %v3540_v1, %v3514_v37  ;;  %v3565_v26 = vmul.f32 %v3559_v17, %v3517_v9 }
0x15b4   :  { %v4983_v48 = vpop.eup %4982 }
0x15b5   :  { %v3560_v60 = vadd.f32 1.0, %v4983_v48  ;;  %v3552_v27 = vmul.f32 0.7978846, %v3546_v34 }
0x15b7   :  { %v3566_v29 = vmul.f32 %v3560_v60, %v3518_v30  ;;  %4990 = vtanh.f32 %v3552_v27 }
0x15b8   :  { %v4985_v42 = vpop.eup %4984 }
0x15b9   :  { %v3588_v45 = vpack.c.bf16 %v3566_v29, %v3565_v26  ;;  %v3561_v54 = vadd.f32 1.0, %v4985_v42 }
0x15bb   :  { %4675 = vmatmul.mubr.bf16.vlgmr.msra.gmra.mxu0 %v3588_v45  ;;  %v3567_v15 = vmul.f32 %v3561_v54, %v3519_v10 }
0x15bc   :  { %v4987_v5 = vpop.eup %4986  ;;  %4678 = vmatprep.mubr.msk.bf16.mxu0 %vm5034_vm2, %v7062_v2 }
0x15bd   :  { %v3562_v6 = vadd.f32 1.0, %v4987_v5 }
0x15bf   :  { %v3568_v51 = vmul.f32 %v3562_v6, %v3520_v21 }
0x15c0   :  { %v4989_v20 = vpop.eup %4988 }
0x15c1   :  { %v3589_v59 = vpack.c.bf16 %v3568_v51, %v3567_v15  ;;  %v3563_v11 = vadd.f32 1.0, %v4989_v20 }
0x15c3   :  { %4679 = vmatmul.mubr.bf16.gmra.mxu0 %v3589_v59  ;;  %v3569_v18 = vmul.f32 %v3563_v11, %v3521_v7 }
0x15c4   :  { %v4991_v49 = vpop.eup %4990  ;;  %4682 = vmatprep.mubr.msk.bf16.mxu0 %vm5034_vm2, %v7062_v2 }
0x15c5   :  { %v3564_v62 = vadd.f32 1.0, %v4991_v49  ;;  %v3997_v49 = vld [vmem:[%s7024_s22] ss:$0 sm:$0xff]  ;;  %s5035_s22 = smov [#allocation2]  }
0x15c6   :  { %s3794_s18 = sshll.u32 %s5035_s22, 4  ;;  %s3795_s18 = int_to_ptr.vmem [resolvable:$true] %s3794_s18 }
0x15c7   :  { %v3570_v14 = vmul.f32 %v3564_v62, %v3522_v56  ;;  %v3998_v62 = vld [vmem:[%s7025_s23] ss:$0 sm:$0xff]  ;;  %s5011_s23 = scalar_lea.vmem %s3795_s18, 512  ;;  %p5016_p1 = scmp.lt.s32.totalorder %s3795_s18, %s3795_s18 }
0x15c8   :  { %p5012_p0 = scmp.ne.s32.totalorder %s3795_s18, %s5011_s23  ;;  %p5017_p2 = scmp.lt.s32.totalorder %s5011_s23, %s5011_s23 }
0x15c9   :  { %v3590_v0 = vpack.c.bf16 %v3570_v14, %v3569_v18 }
0x15ca   :  { %p5018_p3 = por %p5017_p2, %p5016_p1 }
0x15cb   :  { %4683 = vmatmul.mubr.bf16.gmra.mxu0 %v3590_v0 }
0x15cc   :  { %p5019_p4 = pnand %p5018_p3, %p5012_p0 }
0x167b   :  { %v3673_v53 = vpop.f32.mrf.mxu0 }
0x167c   :  { %v3694_v23 = vadd.f32 %v3673_v53, %v6878_v63 }
0x167d   :  { %v4676_v33 = vpop.f32.mrf.mxu0 }
0x167e   :  { %v3706_v3 = vadd.f32 %v3996_v50, %v3694_v23 }
0x167f   :  { %v3676_v58 = vpop.f32.mrf.mxu0 }
0x1680   :  { %v3695_v22 = vadd.f32 %v3676_v58, %v6883_v39  ;;  %v3712_v2 = vsel %vm178_vm0, %v3706_v3, 0.0 }
0x1681   :  { %3713 = vadd.xlane.f32.xlu0 %v3712_v2  ;;  %v4677_v41 = vpop.f32.mrf.mxu0 }
0x1682   :  { %v3707_v35 = vadd.f32 %v3996_v50, %v3695_v22 }
0x1683   :  { %v3681_v40 = vpop.f32.mrf.mxu0 }
0x1684   :  { %v3715_v61 = vsel %vm178_vm0, %v3707_v35, 0.0 }
0x1685   :  { %3716 = vadd.xlane.f32.xlu1 %v3715_v61  ;;  %v4680_v46 = vpop.f32.mrf.mxu0 }
0x1687   :  { %v3683_v47 = vpop.f32.mrf.mxu0 }
0x1688   :  { %v3696_v25 = vadd.f32 %v3683_v47, %v6890_v32 }
0x1689   :  { %v4681_v16 = vpop.f32.mrf.mxu0 }
0x168a   :  { %v3708_v63 = vadd.f32 %v3996_v50, %v3696_v25 }
0x168b   :  { %v3688_v12 = vpop.f32.mrf.mxu0 }
0x168c   :  { %v3697_v57 = vadd.f32 %v3688_v12, %v6895_v8  ;;  %v3718_v39 = vsel %vm178_vm0, %v3708_v63, 0.0 }
0x168d   :  { %3719 = vadd.xlane.f32.xlu0 %v3718_v39  ;;  %v4684_v4 = vpop.f32.mrf.mxu0 }
0x168e   :  { %v3709_v55 = vadd.f32 %v3996_v50, %v3697_v57 }
0x168f   :  { %v3691_v24 = vpop.f32.mrf.mxu0 }
0x1690   :  { %v3721_v44 = vsel %vm178_vm0, %v3709_v55, 0.0 }
0x1691   :  { %3722 = vadd.xlane.f32.xlu1 %v3721_v44  ;;  %v4685_v37 = vpop.f32.mrf.mxu0 }
0x170a   :  { %v3714_v52 = vpop.xlane.xlu0 %3713 }
0x170b   :  { %v3724_v28 = vmul.f32 0.03125, %v3714_v52 }
0x170d   :  { %v3728_v13 = vsub.f32 %v3706_v3, %v3724_v28 }
0x170e   :  { %v3717_v31 = vpop.xlane.xlu1 %3716 }
0x170f   :  { %v3725_v32 = vmul.f32 0.03125, %v3717_v31  ;;  %v3732_v38 = vmul.f32 %v3728_v13, %v3728_v13 }
0x1711   :  { %v3729_v43 = vsub.f32 %v3707_v35, %v3725_v32  ;;  %v3736_v19 = vsel %vm178_vm0, %v3732_v38, 0.0 }
0x1712   :  { %3737 = vadd.xlane.f32.xlu0 %v3736_v19 }
0x1713   :  { %v3733_v8 = vmul.f32 %v3729_v43, %v3729_v43 }
0x1715   :  { %v3739_v36 = vsel %vm178_vm0, %v3733_v8, 0.0 }
0x1716   :  { %v3720_v1 = vpop.xlane.xlu0 %3719  ;;  %3740 = vadd.xlane.f32.xlu1 %v3739_v36 }
0x1717   :  { %v3726_v17 = vmul.f32 0.03125, %v3720_v1 }
0x1719   :  { %v3730_v34 = vsub.f32 %v3708_v63, %v3726_v17 }
0x171a   :  { %v3723_v48 = vpop.xlane.xlu1 %3722 }
0x171b   :  { %v3727_v9 = vmul.f32 0.03125, %v3723_v48  ;;  %v3734_v30 = vmul.f32 %v3730_v34, %v3730_v34 }
0x171d   :  { %v3731_v60 = vsub.f32 %v3709_v55, %v3727_v9  ;;  %v3742_v27 = vsel %vm178_vm0, %v3734_v30, 0.0 }
0x171e   :  { %3743 = vadd.xlane.f32.xlu0 %v3742_v27 }
0x171f   :  { %v3735_v26 = vmul.f32 %v3731_v60, %v3731_v60 }
0x1721   :  { %v3745_v29 = vsel %vm178_vm0, %v3735_v26, 0.0 }
0x1722   :  { %3746 = vadd.xlane.f32.xlu1 %v3745_v29 }
0x179b   :  { %v3738_v42 = vpop.xlane.xlu0 %3737 }
0x179c   :  { %v3748_v45 = vmul.f32 0.03125, %v3738_v42 }
0x179e   :  { %v3752_v54 = vadd.f32 1e-06, %v3748_v45 }
0x179f   :  { %v3741_v5 = vpop.xlane.xlu1 %3740 }
0x17a0   :  { %4992 = vrsqrt.f32 %v3752_v54  ;;  %v3749_v10 = vmul.f32 0.03125, %v3741_v5 }
0x17a2   :  { %v3753_v21 = vadd.f32 1e-06, %v3749_v10 }
0x17a4   :  { %4994 = vrsqrt.f32 %v3753_v21 }
0x17a7   :  { %v3744_v6 = vpop.xlane.xlu0 %3743 }
0x17a8   :  { %v3750_v15 = vmul.f32 0.03125, %v3744_v6 }
0x17aa   :  { %v3754_v51 = vadd.f32 1e-06, %v3750_v15 }
0x17ab   :  { %v3747_v20 = vpop.xlane.xlu1 %3746 }
0x17ac   :  { %4996 = vrsqrt.f32 %v3754_v51  ;;  %v3751_v59 = vmul.f32 0.03125, %v3747_v20 }
0x17ad   :  { %v4993_v11 = vpop.eup %4992 }
0x17ae   :  { %v3760_v7 = vmul.f32 %v4993_v11, %v3728_v13  ;;  %v3755_v56 = vadd.f32 1e-06, %v3751_v59 }
0x17b0   :  { %v3770_v18 = vmul.f32 %v3997_v49, %v3760_v7  ;;  %4998 = vrsqrt.f32 %v3755_v56 }
0x17b1   :  { %v4995_v14 = vpop.eup %4994 }
0x17b2   :  { %v3761_v0 = vmul.f32 %v4995_v14, %v3729_v43  ;;  %v3780_v53 = vadd.f32 %v3998_v62, %v3770_v18 }
0x17b4   :  { %v3771_v50 = vmul.f32 %v3997_v49, %v3761_v0  ;;  %3784 = vst.msk [vmem:[#allocation2] sm:$0xff] %vm178_vm0, %v3780_v53 }
0x17b6   :  { %v3781_v23 = vadd.f32 %v3998_v62, %v3771_v50 }
0x17b8   :  { %3785 = vst.msk [vmem:[#allocation2 + $0x8] sm:$0xff] %vm178_vm0, %v3781_v23 }
0x17b9   :  { %v4997_v33 = vpop.eup %4996 }
0x17ba   :  { %v3762_v3 = vmul.f32 %v4997_v33, %v3730_v34 }
0x17bc   :  { %v3772_v58 = vmul.f32 %v3997_v49, %v3762_v3 }
0x17bd   :  { %v4999_v22 = vpop.eup %4998 }
0x17be   :  { %v3763_v2 = vmul.f32 %v4999_v22, %v3731_v60  ;;  %v3782_v41 = vadd.f32 %v3998_v62, %v3772_v58 }
0x17c0   :  { %v3773_v35 = vmul.f32 %v3997_v49, %v3763_v2  ;;  %3787 = vst.msk [vmem:[#allocation2 + $0x10] sm:$0xff] %vm178_vm0, %v3782_v41 }
0x17c2   :  { %v3783_v40 = vadd.f32 %v3998_v62, %v3773_v35 }
0x17c4   :  { %3788 = vst.msk [vmem:[#allocation2 + $0x18] sm:$0xff] %vm178_vm0, %v3783_v40 }
0x17c5   :  { %5022 = shalt.err (!%p5019_p4)
}
0x17c6   :  { %s5036_s0 = smov 128   ;;  %s5037_s3 = smov 8  }
0x17c7   :  { %3800 = dma.vmem_to_hbm [thread:$0]  %s3795_s18, 512, %s7026_s24, [#allocation3], %s5036_s0, %s5036_s0, %s5037_s3  }
0x17c8   :  { %5031 = dma.done.wait [#allocation3], 512  }
0x17c9   :  { %5032 = vsyncadd [#allocation3], 4294966784 }
0x17ca   :  { %3804 = vsyncpa [#allocation3], 1 }

</bundles_post_ra>
